<compile_context>
chip_gen: v6e
topology: v6e:2x2x1
jax: 0.10.0
libtpu: 0.0.40
codegen_flags: <defaults>
</compile_context>

<pallas_src>
import jax
import jax.numpy as jnp
import numpy as np
from jax import lax
from jax.experimental import pallas as pl
from jax.experimental.pallas import tpu as pltpu


# ---------------------------------------------------------------------------
# Fused Pallas kernel: one grid step == one batch tile of B samples, full net
# ---------------------------------------------------------------------------
def _make_fused_kernel(B, Ho, Wo, C0, C1, C2, C3, C4, alpha=0.2, eps=1e-5):
    HW = Ho * Wo

    def leaky(y):
        return jnp.maximum(y, alpha * y)              # LeakyReLU(0.2), single vmax

    def pad_hw(a):
        """(B, Ho, Wo, C) -> (B, Ho+2, Wo+2, C) zero-padded, in registers."""
        C = a.shape[-1]
        zrow = jnp.zeros((B, 1, Wo, C), a.dtype)
        a = jnp.concatenate([zrow, a, zrow], axis=1)          # pad H
        zcol = jnp.zeros((B, Ho + 2, 1, C), a.dtype)
        return jnp.concatenate([zcol, a, zcol], axis=2)       # pad W

    def conv_block(a, w_ref, b_ref, cin, cout):
        """3x3 stride-1 conv + InstanceNorm + LeakyReLU, one fused-K matmul."""
        ap = pad_hw(a)                                        # (B, Ho+2, Wo+2, cin) f32
        taps = [ap[:, kh:kh + Ho, kw:kw + Wo, :]
                for kh in range(3) for kw in range(3)]
        lhs = jnp.concatenate(taps, axis=-1).reshape(B * HW, 9 * cin)
        y = jnp.dot(lhs.astype(jnp.bfloat16), w_ref[...],
                    preferred_element_type=jnp.float32) + b_ref[...]
        y = y.reshape(B, HW, cout)
        # InstanceNorm2d (affine=False), per-sample two-pass stats in f32.
        mu = jnp.mean(y, axis=1, keepdims=True)
        d = y - mu
        var = jnp.mean(d * d, axis=1, keepdims=True)
        return leaky(d * lax.rsqrt(var + eps))                # (B, HW, cout) f32

    def kernel(p1_ref, w1_ref, b1_ref, w2_ref, b2_ref, w3_ref, b3_ref,
               w4_ref, b4_ref, wp_ref, bp_ref, o_ref):
        # --- block 1: stride-2 conv (no norm) on wrapper-built patches -------
        lhs1 = p1_ref[...].reshape(B * HW, 9 * C0)            # bf16 already
        y1 = jnp.dot(lhs1, w1_ref[...], preferred_element_type=jnp.float32)
        y1 = leaky(y1 + b1_ref[...])                          # (B*HW, C1) f32

        # --- blocks 2-4: in-kernel im2col + InstanceNorm + LeakyReLU ---------
        y2 = conv_block(y1.reshape(B, Ho, Wo, C1), w2_ref, b2_ref, C1, C2)
        y3 = conv_block(y2.reshape(B, Ho, Wo, C2), w3_ref, b3_ref, C2, C3)
        y4 = conv_block(y3.reshape(B, Ho, Wo, C3), w4_ref, b4_ref, C3, C4)

        # --- project_avg: mean over HW first, then 1x1 conv (linearity) ------
        m = jnp.mean(y4, axis=1)                              # (B, C4)
        val = jnp.sum(m * wp_ref[...], axis=1, keepdims=True) + bp_ref[...]
        o_ref[...] = val.reshape(1, B, 1)                     # one block per tile

    return kernel


# ---------------------------------------------------------------------------
# Wrapper
# ---------------------------------------------------------------------------
def _pick_batch_tile(n, max_tile):
    b = 1
    for cand in range(1, min(n, max_tile) + 1):
        if n % cand == 0:
            b = cand
    return b


def one_scale_critic_forward(x_nchw, params, *, max_batch_tile=32):
    """Full OneScaleCritic forward.  Input follows PyTorch NCHW convention."""
    x = jnp.transpose(x_nchw, (0, 2, 3, 1)).astype(jnp.float32)   # NCHW -> NHWC
    N, H, W, C0 = x.shape
    C1 = params["w1"].shape[-1]
    C2 = params["w2"].shape[-1]
    C3 = params["w3"].shape[-1]
    C4 = params["w4"].shape[-1]
    Ho = (H + 2 - 3) // 2 + 1
    Wo = (W + 2 - 3) // 2 + 1
    HW = Ho * Wo
    K1 = 9 * C0

    B = _pick_batch_tile(N, max_batch_tile)
    G = N // B

    # Block-1 im2col (stride 2) in the wrapper: tiny (9*C0 features), built once.
    xpad = jnp.pad(x, ((0, 0), (1, 1), (1, 1), (0, 0)))
    cols = []
    for kh in range(3):
        for kw in range(3):
            cols.append(xpad[:, kh:kh + 2 * Ho - 1:2, kw:kw + 2 * Wo - 1:2, :])
    patches = jnp.concatenate(cols, axis=-1).reshape(N, HW, K1).astype(jnp.bfloat16)

    # Weights pre-cast to bf16 for the MXU; biases / projection kept in f32.
    w1 = params["w1"].reshape(K1, C1).astype(jnp.bfloat16)        # (kh,kw,cin) rows
    b1 = params["b1"].reshape(1, C1).astype(jnp.float32)
    w2 = params["w2"].reshape(9 * C1, C2).astype(jnp.bfloat16)
    b2 = params["b2"].reshape(1, C2).astype(jnp.float32)
    w3 = params["w3"].reshape(9 * C2, C3).astype(jnp.bfloat16)
    b3 = params["b3"].reshape(1, C3).astype(jnp.float32)
    w4 = params["w4"].reshape(9 * C3, C4).astype(jnp.bfloat16)
    b4 = params["b4"].reshape(1, C4).astype(jnp.float32)
    wp = params["wp"].reshape(1, C4).astype(jnp.float32)
    bp = params["bp"].reshape(1, 1).astype(jnp.float32)

    out = pl.pallas_call(
        _make_fused_kernel(B, Ho, Wo, C0, C1, C2, C3, C4),
        out_shape=jax.ShapeDtypeStruct((G, B, 1), jnp.float32),
        grid_spec=pltpu.PrefetchScalarGridSpec(
            num_scalar_prefetch=0,
            grid=(G,),
            in_specs=[
                pl.BlockSpec((B, HW, K1), lambda g: (g, 0, 0)),
                pl.BlockSpec((K1, C1), lambda g: (0, 0)),
                pl.BlockSpec((1, C1), lambda g: (0, 0)),
                pl.BlockSpec((9 * C1, C2), lambda g: (0, 0)),
                pl.BlockSpec((1, C2), lambda g: (0, 0)),
                pl.BlockSpec((9 * C2, C3), lambda g: (0, 0)),
                pl.BlockSpec((1, C3), lambda g: (0, 0)),
                pl.BlockSpec((9 * C3, C4), lambda g: (0, 0)),
                pl.BlockSpec((1, C4), lambda g: (0, 0)),
                pl.BlockSpec((1, C4), lambda g: (0, 0)),
                pl.BlockSpec((1, 1), lambda g: (0, 0)),
            ],
            out_specs=pl.BlockSpec((1, B, 1), lambda g: (g, 0, 0)),
        ),
        compiler_params=pltpu.CompilerParams(
            dimension_semantics=("parallel",)),
    )(patches, w1, b1, w2, b2, w3, b3, w4, b4, wp, bp)

    return out.reshape(N, 1)


# ---------------------------------------------------------------------------
# Pure-JAX reference (for correctness check only)
# ---------------------------------------------------------------------------
def _ref_block(x, w, b, stride, use_norm, alpha=0.2, eps=1e-5):
    y = lax.conv_general_dilated(
        x, w, window_strides=(stride, stride), padding=((1, 1), (1, 1)),
        dimension_numbers=("NHWC", "HWIO", "NHWC"),
        preferred_element_type=jnp.float32) + b
    if use_norm:
        mu = jnp.mean(y, axis=(1, 2), keepdims=True)
        var = jnp.mean((y - mu) ** 2, axis=(1, 2), keepdims=True)
        y = (y - mu) * lax.rsqrt(var + eps)
    return jnp.where(y >= 0.0, y, alpha * y)


def ref_forward(x_nchw, params):
    x = jnp.transpose(x_nchw, (0, 2, 3, 1))
    x = _ref_block(x, params["w1"], params["b1"], 2, False)
    x = _ref_block(x, params["w2"], params["b2"], 1, True)
    x = _ref_block(x, params["w3"], params["b3"], 1, True)
    x = _ref_block(x, params["w4"], params["b4"], 1, True)
    y = jnp.einsum("nhwc,co->nhwo", x, params["wp"].reshape(-1, 1)) + params["bp"]
    return jnp.mean(y, axis=(1, 2, 3)).reshape(-1, 1)


# ---------------------------------------------------------------------------
# Deterministic parameter construction + smoke test
# ---------------------------------------------------------------------------
def init_params(key, Cs):
    ks = jax.random.split(key, 10)
    chans = [Cs[0]] + list(Cs[1:])

    def conv_init(k, cin, cout):
        std = 1.0 / np.sqrt(9.0 * cin)
        return std * jax.random.normal(k, (3, 3, cin, cout), jnp.float32)

    params = {}
    for i in range(4):
        params[f"w{i+1}"] = conv_init(ks[2 * i], chans[i], chans[i + 1])
        params[f"b{i+1}"] = 0.01 * jax.random.normal(ks[2 * i + 1], (chans[i + 1],),
                                                     jnp.float32)
    params["wp"] = (1.0 / np.sqrt(chans[4])) * jax.random.normal(
        ks[8], (chans[4], 1), jnp.float32)
    params["bp"] = 0.01 * jax.random.normal(ks[9], (1,), jnp.float32)
    return params


if __name__ == "__main__":
    key = jax.random.PRNGKey(0)
    k_x, k_p, k_x2 = jax.random.split(key, 3)

    Cs = [4, 8, 16, 16, 16]                                     # [Cin, C1, C2, C3, C4]
    params = init_params(k_p, Cs)

    # Test 1: module-sized input (batch=2), single grid step.
    x = jax.random.normal(k_x, (2, 4, 16, 16), jnp.float32)     # NCHW, as in PyTorch
    out = jax.block_until_ready(jax.jit(one_scale_critic_forward)(x, params))
    assert out.shape == (2, 1), out.shape
    ref = jax.block_until_ready(ref_forward(x, params))
    np.testing.assert_allclose(np.asarray(out), np.asarray(ref), rtol=5e-2, atol=5e-2)

    # Test 2: larger batch exercising multiple grid steps (B=4, grid=(2,)).
    x2 = jax.random.normal(k_x2, (8, 4, 16, 16), jnp.float32)
    out2 = jax.block_until_ready(
        jax.jit(lambda a, p: one_scale_critic_forward(a, p, max_batch_tile=4))(x2, params))
    assert out2.shape == (8, 1), out2.shape
    ref2 = jax.block_until_ready(ref_forward(x2, params))
    np.testing.assert_allclose(np.asarray(out2), np.asarray(ref2), rtol=5e-2, atol=5e-2)

    print("KERNEL_OK")
</pallas_src>

<mosaic_0001>
module attributes {stable_mosaic.version = 11 : i64} {
  func.func @kernel(%arg0: i32, %arg1: memref<2x64x36xbf16, #tpu.memory_space<vmem>>, %arg2: memref<36x8xbf16, #tpu.memory_space<vmem>>, %arg3: memref<1x8xf32, #tpu.memory_space<vmem>>, %arg4: memref<72x16xbf16, #tpu.memory_space<vmem>>, %arg5: memref<1x16xf32, #tpu.memory_space<vmem>>, %arg6: memref<144x16xbf16, #tpu.memory_space<vmem>>, %arg7: memref<1x16xf32, #tpu.memory_space<vmem>>, %arg8: memref<144x16xbf16, #tpu.memory_space<vmem>>, %arg9: memref<1x16xf32, #tpu.memory_space<vmem>>, %arg10: memref<1x16xf32, #tpu.memory_space<vmem>>, %arg11: memref<1x1xf32, #tpu.memory_space<vmem>>, %arg12: memref<1x2x1xf32, #tpu.memory_space<vmem>>) attributes {dimension_semantics = [#tpu.dimension_semantics<parallel>], iteration_bounds = array<i64: 1>, scalar_prefetch = 0 : i64, scratch_operands = 0 : i64, tpu.core_type = #tpu.core_type<tc>, window_params = [{transform_indices = @transform_0, window_bounds = array<i64: 2, 64, 36>}, {pipeline_mode = #tpu.pipeline_mode<synchronous>, transform_indices = @transform_1, window_bounds = array<i64: 36, 8>}, {pipeline_mode = #tpu.pipeline_mode<synchronous>, transform_indices = @transform_2, window_bounds = array<i64: 1, 8>}, {pipeline_mode = #tpu.pipeline_mode<synchronous>, transform_indices = @transform_3, window_bounds = array<i64: 72, 16>}, {pipeline_mode = #tpu.pipeline_mode<synchronous>, transform_indices = @transform_4, window_bounds = array<i64: 1, 16>}, {pipeline_mode = #tpu.pipeline_mode<synchronous>, transform_indices = @transform_5, window_bounds = array<i64: 144, 16>}, {pipeline_mode = #tpu.pipeline_mode<synchronous>, transform_indices = @transform_6, window_bounds = array<i64: 1, 16>}, {pipeline_mode = #tpu.pipeline_mode<synchronous>, transform_indices = @transform_7, window_bounds = array<i64: 144, 16>}, {pipeline_mode = #tpu.pipeline_mode<synchronous>, transform_indices = @transform_8, window_bounds = array<i64: 1, 16>}, {pipeline_mode = #tpu.pipeline_mode<synchronous>, transform_indices = @transform_9, window_bounds = array<i64: 1, 16>}, {pipeline_mode = #tpu.pipeline_mode<synchronous>, transform_indices = @transform_10, window_bounds = array<i64: 1, 1>}, {transform_indices = @transform_11, window_bounds = array<i64: 1, 2, 1>}]} {
    %c0 = arith.constant 0 : index
    %c0_0 = arith.constant 0 : index
    %c0_1 = arith.constant 0 : index
    %0 = vector.load %arg1[%c0, %c0_0, %c0_1] : memref<2x64x36xbf16, #tpu.memory_space<vmem>>, vector<2x64x36xbf16>
    %1 = vector.shape_cast %0 : vector<2x64x36xbf16> to vector<128x36xbf16>
    %c0_2 = arith.constant 0 : index
    %c0_3 = arith.constant 0 : index
    %2 = vector.load %arg2[%c0_2, %c0_3] : memref<36x8xbf16, #tpu.memory_space<vmem>>, vector<36x8xbf16>
    %cst = arith.constant dense<0.000000e+00> : vector<128x8xf32>
    %3 = tpu.matmul %1, %2, %cst {dimension_numbers = #tpu.dot_dimension_numbers<[1], [0], [0], [1], [0, 0, 1, 1], [], []>} : vector<128x36xbf16>, vector<36x8xbf16>, vector<128x8xf32> -> vector<128x8xf32>
    %c0_4 = arith.constant 0 : index
    %c0_5 = arith.constant 0 : index
    %4 = vector.load %arg3[%c0_4, %c0_5] : memref<1x8xf32, #tpu.memory_space<vmem>>, vector<1x8xf32>
    %5 = vector.broadcast %4 : vector<1x8xf32> to vector<128x8xf32>
    %6 = arith.addf %3, %5 : vector<128x8xf32>
    %cst_6 = arith.constant 2.000000e-01 : f32
    %7 = vector.broadcast %cst_6 : f32 to vector<128x8xf32>
    %8 = arith.mulf %7, %6 : vector<128x8xf32>
    %9 = arith.maximumf %6, %8 : vector<128x8xf32>
    %10 = vector.shape_cast %9 : vector<128x8xf32> to vector<2x8x8x8xf32>
    %cst_7 = arith.constant 0.000000e+00 : f32
    %11 = vector.broadcast %cst_7 : f32 to vector<2x1x8x8xf32>
    %12 = tpu.concatenate %11, %10, %11 in 1 : vector<2x1x8x8xf32>, vector<2x8x8x8xf32>, vector<2x1x8x8xf32> -> vector<2x10x8x8xf32>
    %cst_8 = arith.constant 0.000000e+00 : f32
    %13 = vector.broadcast %cst_8 : f32 to vector<2x10x1x8xf32>
    %14 = tpu.concatenate %13, %12, %13 in 2 : vector<2x10x1x8xf32>, vector<2x10x8x8xf32>, vector<2x10x1x8xf32> -> vector<2x10x10x8xf32>
    %15 = vector.extract_strided_slice %14 {offsets = [0, 0, 0, 0], sizes = [2, 8, 8, 8], strides = [1, 1, 1, 1]} : vector<2x10x10x8xf32> to vector<2x8x8x8xf32>
    %16 = vector.extract_strided_slice %14 {offsets = [0, 0, 1, 0], sizes = [2, 8, 8, 8], strides = [1, 1, 1, 1]} : vector<2x10x10x8xf32> to vector<2x8x8x8xf32>
    %17 = vector.extract_strided_slice %14 {offsets = [0, 0, 2, 0], sizes = [2, 8, 8, 8], strides = [1, 1, 1, 1]} : vector<2x10x10x8xf32> to vector<2x8x8x8xf32>
    %18 = vector.extract_strided_slice %14 {offsets = [0, 1, 0, 0], sizes = [2, 8, 8, 8], strides = [1, 1, 1, 1]} : vector<2x10x10x8xf32> to vector<2x8x8x8xf32>
    %19 = vector.extract_strided_slice %14 {offsets = [0, 1, 1, 0], sizes = [2, 8, 8, 8], strides = [1, 1, 1, 1]} : vector<2x10x10x8xf32> to vector<2x8x8x8xf32>
    %20 = vector.extract_strided_slice %14 {offsets = [0, 1, 2, 0], sizes = [2, 8, 8, 8], strides = [1, 1, 1, 1]} : vector<2x10x10x8xf32> to vector<2x8x8x8xf32>
    %21 = vector.extract_strided_slice %14 {offsets = [0, 2, 0, 0], sizes = [2, 8, 8, 8], strides = [1, 1, 1, 1]} : vector<2x10x10x8xf32> to vector<2x8x8x8xf32>
    %22 = vector.extract_strided_slice %14 {offsets = [0, 2, 1, 0], sizes = [2, 8, 8, 8], strides = [1, 1, 1, 1]} : vector<2x10x10x8xf32> to vector<2x8x8x8xf32>
    %23 = vector.extract_strided_slice %14 {offsets = [0, 2, 2, 0], sizes = [2, 8, 8, 8], strides = [1, 1, 1, 1]} : vector<2x10x10x8xf32> to vector<2x8x8x8xf32>
    %24 = tpu.concatenate %15, %16, %17, %18, %19, %20, %21, %22, %23 in 3 : vector<2x8x8x8xf32>, vector<2x8x8x8xf32>, vector<2x8x8x8xf32>, vector<2x8x8x8xf32>, vector<2x8x8x8xf32>, vector<2x8x8x8xf32>, vector<2x8x8x8xf32>, vector<2x8x8x8xf32>, vector<2x8x8x8xf32> -> vector<2x8x8x72xf32>
    %25 = vector.shape_cast %24 : vector<2x8x8x72xf32> to vector<128x72xf32>
    %26 = arith.truncf %25 : vector<128x72xf32> to vector<128x72xbf16>
    %c0_9 = arith.constant 0 : index
    %c0_10 = arith.constant 0 : index
    %27 = vector.load %arg4[%c0_9, %c0_10] : memref<72x16xbf16, #tpu.memory_space<vmem>>, vector<72x16xbf16>
    %cst_11 = arith.constant dense<0.000000e+00> : vector<128x16xf32>
    %28 = tpu.matmul %26, %27, %cst_11 {dimension_numbers = #tpu.dot_dimension_numbers<[1], [0], [0], [1], [0, 0, 1, 1], [], []>} : vector<128x72xbf16>, vector<72x16xbf16>, vector<128x16xf32> -> vector<128x16xf32>
    %c0_12 = arith.constant 0 : index
    %c0_13 = arith.constant 0 : index
    %29 = vector.load %arg5[%c0_12, %c0_13] : memref<1x16xf32, #tpu.memory_space<vmem>>, vector<1x16xf32>
    %30 = vector.broadcast %29 : vector<1x16xf32> to vector<128x16xf32>
    %31 = arith.addf %28, %30 : vector<128x16xf32>
    %32 = vector.shape_cast %31 : vector<128x16xf32> to vector<2x64x16xf32>
    %cst_14 = arith.constant dense<0.000000e+00> : vector<2x16xf32>
    %33 = vector.multi_reduction <add>, %32, %cst_14 [1] : vector<2x64x16xf32> to vector<2x16xf32>
    %34 = vector.shape_cast %33 : vector<2x16xf32> to vector<2x1x16xf32>
    %cst_15 = arith.constant 6.400000e+01 : f32
    %35 = vector.broadcast %cst_15 : f32 to vector<2x1x16xf32>
    %36 = arith.divf %34, %35 : vector<2x1x16xf32>
    %37 = vector.broadcast %36 : vector<2x1x16xf32> to vector<2x64x16xf32>
    %38 = arith.subf %32, %37 : vector<2x64x16xf32>
    %39 = arith.mulf %38, %38 : vector<2x64x16xf32>
    %cst_16 = arith.constant dense<0.000000e+00> : vector<2x16xf32>
    %40 = vector.multi_reduction <add>, %39, %cst_16 [1] : vector<2x64x16xf32> to vector<2x16xf32>
    %41 = vector.shape_cast %40 : vector<2x16xf32> to vector<2x1x16xf32>
    %cst_17 = arith.constant 6.400000e+01 : f32
    %42 = vector.broadcast %cst_17 : f32 to vector<2x1x16xf32>
    %43 = arith.divf %41, %42 : vector<2x1x16xf32>
    %cst_18 = arith.constant 9.99999974E-6 : f32
    %44 = vector.broadcast %cst_18 : f32 to vector<2x1x16xf32>
    %45 = arith.addf %43, %44 : vector<2x1x16xf32>
    %46 = math.rsqrt %45 : vector<2x1x16xf32>
    %47 = vector.broadcast %46 : vector<2x1x16xf32> to vector<2x64x16xf32>
    %48 = arith.mulf %38, %47 : vector<2x64x16xf32>
    %cst_19 = arith.constant 2.000000e-01 : f32
    %49 = vector.broadcast %cst_19 : f32 to vector<2x64x16xf32>
    %50 = arith.mulf %49, %48 : vector<2x64x16xf32>
    %51 = arith.maximumf %48, %50 : vector<2x64x16xf32>
    %52 = vector.shape_cast %51 : vector<2x64x16xf32> to vector<2x8x8x16xf32>
    %cst_20 = arith.constant 0.000000e+00 : f32
    %53 = vector.broadcast %cst_20 : f32 to vector<2x1x8x16xf32>
    %54 = tpu.concatenate %53, %52, %53 in 1 : vector<2x1x8x16xf32>, vector<2x8x8x16xf32>, vector<2x1x8x16xf32> -> vector<2x10x8x16xf32>
    %cst_21 = arith.constant 0.000000e+00 : f32
    %55 = vector.broadcast %cst_21 : f32 to vector<2x10x1x16xf32>
    %56 = tpu.concatenate %55, %54, %55 in 2 : vector<2x10x1x16xf32>, vector<2x10x8x16xf32>, vector<2x10x1x16xf32> -> vector<2x10x10x16xf32>
    %57 = vector.extract_strided_slice %56 {offsets = [0, 0, 0, 0], sizes = [2, 8, 8, 16], strides = [1, 1, 1, 1]} : vector<2x10x10x16xf32> to vector<2x8x8x16xf32>
    %58 = vector.extract_strided_slice %56 {offsets = [0, 0, 1, 0], sizes = [2, 8, 8, 16], strides = [1, 1, 1, 1]} : vector<2x10x10x16xf32> to vector<2x8x8x16xf32>
    %59 = vector.extract_strided_slice %56 {offsets = [0, 0, 2, 0], sizes = [2, 8, 8, 16], strides = [1, 1, 1, 1]} : vector<2x10x10x16xf32> to vector<2x8x8x16xf32>
    %60 = vector.extract_strided_slice %56 {offsets = [0, 1, 0, 0], sizes = [2, 8, 8, 16], strides = [1, 1, 1, 1]} : vector<2x10x10x16xf32> to vector<2x8x8x16xf32>
    %61 = vector.extract_strided_slice %56 {offsets = [0, 1, 1, 0], sizes = [2, 8, 8, 16], strides = [1, 1, 1, 1]} : vector<2x10x10x16xf32> to vector<2x8x8x16xf32>
    %62 = vector.extract_strided_slice %56 {offsets = [0, 1, 2, 0], sizes = [2, 8, 8, 16], strides = [1, 1, 1, 1]} : vector<2x10x10x16xf32> to vector<2x8x8x16xf32>
    %63 = vector.extract_strided_slice %56 {offsets = [0, 2, 0, 0], sizes = [2, 8, 8, 16], strides = [1, 1, 1, 1]} : vector<2x10x10x16xf32> to vector<2x8x8x16xf32>
    %64 = vector.extract_strided_slice %56 {offsets = [0, 2, 1, 0], sizes = [2, 8, 8, 16], strides = [1, 1, 1, 1]} : vector<2x10x10x16xf32> to vector<2x8x8x16xf32>
    %65 = vector.extract_strided_slice %56 {offsets = [0, 2, 2, 0], sizes = [2, 8, 8, 16], strides = [1, 1, 1, 1]} : vector<2x10x10x16xf32> to vector<2x8x8x16xf32>
    %66 = tpu.concatenate %57, %58, %59, %60, %61, %62, %63, %64, %65 in 3 : vector<2x8x8x16xf32>, vector<2x8x8x16xf32>, vector<2x8x8x16xf32>, vector<2x8x8x16xf32>, vector<2x8x8x16xf32>, vector<2x8x8x16xf32>, vector<2x8x8x16xf32>, vector<2x8x8x16xf32>, vector<2x8x8x16xf32> -> vector<2x8x8x144xf32>
    %67 = vector.shape_cast %66 : vector<2x8x8x144xf32> to vector<128x144xf32>
    %68 = arith.truncf %67 : vector<128x144xf32> to vector<128x144xbf16>
    %c0_22 = arith.constant 0 : index
    %c0_23 = arith.constant 0 : index
    %69 = vector.load %arg6[%c0_22, %c0_23] : memref<144x16xbf16, #tpu.memory_space<vmem>>, vector<144x16xbf16>
    %cst_24 = arith.constant dense<0.000000e+00> : vector<128x16xf32>
    %70 = tpu.matmul %68, %69, %cst_24 {dimension_numbers = #tpu.dot_dimension_numbers<[1], [0], [0], [1], [0, 0, 1, 1], [], []>} : vector<128x144xbf16>, vector<144x16xbf16>, vector<128x16xf32> -> vector<128x16xf32>
    %c0_25 = arith.constant 0 : index
    %c0_26 = arith.constant 0 : index
    %71 = vector.load %arg7[%c0_25, %c0_26] : memref<1x16xf32, #tpu.memory_space<vmem>>, vector<1x16xf32>
    %72 = vector.broadcast %71 : vector<1x16xf32> to vector<128x16xf32>
    %73 = arith.addf %70, %72 : vector<128x16xf32>
    %74 = vector.shape_cast %73 : vector<128x16xf32> to vector<2x64x16xf32>
    %cst_27 = arith.constant dense<0.000000e+00> : vector<2x16xf32>
    %75 = vector.multi_reduction <add>, %74, %cst_27 [1] : vector<2x64x16xf32> to vector<2x16xf32>
    %76 = vector.shape_cast %75 : vector<2x16xf32> to vector<2x1x16xf32>
    %cst_28 = arith.constant 6.400000e+01 : f32
    %77 = vector.broadcast %cst_28 : f32 to vector<2x1x16xf32>
    %78 = arith.divf %76, %77 : vector<2x1x16xf32>
    %79 = vector.broadcast %78 : vector<2x1x16xf32> to vector<2x64x16xf32>
    %80 = arith.subf %74, %79 : vector<2x64x16xf32>
    %81 = arith.mulf %80, %80 : vector<2x64x16xf32>
    %cst_29 = arith.constant dense<0.000000e+00> : vector<2x16xf32>
    %82 = vector.multi_reduction <add>, %81, %cst_29 [1] : vector<2x64x16xf32> to vector<2x16xf32>
    %83 = vector.shape_cast %82 : vector<2x16xf32> to vector<2x1x16xf32>
    %cst_30 = arith.constant 6.400000e+01 : f32
    %84 = vector.broadcast %cst_30 : f32 to vector<2x1x16xf32>
    %85 = arith.divf %83, %84 : vector<2x1x16xf32>
    %cst_31 = arith.constant 9.99999974E-6 : f32
    %86 = vector.broadcast %cst_31 : f32 to vector<2x1x16xf32>
    %87 = arith.addf %85, %86 : vector<2x1x16xf32>
    %88 = math.rsqrt %87 : vector<2x1x16xf32>
    %89 = vector.broadcast %88 : vector<2x1x16xf32> to vector<2x64x16xf32>
    %90 = arith.mulf %80, %89 : vector<2x64x16xf32>
    %cst_32 = arith.constant 2.000000e-01 : f32
    %91 = vector.broadcast %cst_32 : f32 to vector<2x64x16xf32>
    %92 = arith.mulf %91, %90 : vector<2x64x16xf32>
    %93 = arith.maximumf %90, %92 : vector<2x64x16xf32>
    %94 = vector.shape_cast %93 : vector<2x64x16xf32> to vector<2x8x8x16xf32>
    %cst_33 = arith.constant 0.000000e+00 : f32
    %95 = vector.broadcast %cst_33 : f32 to vector<2x1x8x16xf32>
    %96 = tpu.concatenate %95, %94, %95 in 1 : vector<2x1x8x16xf32>, vector<2x8x8x16xf32>, vector<2x1x8x16xf32> -> vector<2x10x8x16xf32>
    %cst_34 = arith.constant 0.000000e+00 : f32
    %97 = vector.broadcast %cst_34 : f32 to vector<2x10x1x16xf32>
    %98 = tpu.concatenate %97, %96, %97 in 2 : vector<2x10x1x16xf32>, vector<2x10x8x16xf32>, vector<2x10x1x16xf32> -> vector<2x10x10x16xf32>
    %99 = vector.extract_strided_slice %98 {offsets = [0, 0, 0, 0], sizes = [2, 8, 8, 16], strides = [1, 1, 1, 1]} : vector<2x10x10x16xf32> to vector<2x8x8x16xf32>
    %100 = vector.extract_strided_slice %98 {offsets = [0, 0, 1, 0], sizes = [2, 8, 8, 16], strides = [1, 1, 1, 1]} : vector<2x10x10x16xf32> to vector<2x8x8x16xf32>
    %101 = vector.extract_strided_slice %98 {offsets = [0, 0, 2, 0], sizes = [2, 8, 8, 16], strides = [1, 1, 1, 1]} : vector<2x10x10x16xf32> to vector<2x8x8x16xf32>
    %102 = vector.extract_strided_slice %98 {offsets = [0, 1, 0, 0], sizes = [2, 8, 8, 16], strides = [1, 1, 1, 1]} : vector<2x10x10x16xf32> to vector<2x8x8x16xf32>
    %103 = vector.extract_strided_slice %98 {offsets = [0, 1, 1, 0], sizes = [2, 8, 8, 16], strides = [1, 1, 1, 1]} : vector<2x10x10x16xf32> to vector<2x8x8x16xf32>
    %104 = vector.extract_strided_slice %98 {offsets = [0, 1, 2, 0], sizes = [2, 8, 8, 16], strides = [1, 1, 1, 1]} : vector<2x10x10x16xf32> to vector<2x8x8x16xf32>
    %105 = vector.extract_strided_slice %98 {offsets = [0, 2, 0, 0], sizes = [2, 8, 8, 16], strides = [1, 1, 1, 1]} : vector<2x10x10x16xf32> to vector<2x8x8x16xf32>
    %106 = vector.extract_strided_slice %98 {offsets = [0, 2, 1, 0], sizes = [2, 8, 8, 16], strides = [1, 1, 1, 1]} : vector<2x10x10x16xf32> to vector<2x8x8x16xf32>
    %107 = vector.extract_strided_slice %98 {offsets = [0, 2, 2, 0], sizes = [2, 8, 8, 16], strides = [1, 1, 1, 1]} : vector<2x10x10x16xf32> to vector<2x8x8x16xf32>
    %108 = tpu.concatenate %99, %100, %101, %102, %103, %104, %105, %106, %107 in 3 : vector<2x8x8x16xf32>, vector<2x8x8x16xf32>, vector<2x8x8x16xf32>, vector<2x8x8x16xf32>, vector<2x8x8x16xf32>, vector<2x8x8x16xf32>, vector<2x8x8x16xf32>, vector<2x8x8x16xf32>, vector<2x8x8x16xf32> -> vector<2x8x8x144xf32>
    %109 = vector.shape_cast %108 : vector<2x8x8x144xf32> to vector<128x144xf32>
    %110 = arith.truncf %109 : vector<128x144xf32> to vector<128x144xbf16>
    %c0_35 = arith.constant 0 : index
    %c0_36 = arith.constant 0 : index
    %111 = vector.load %arg8[%c0_35, %c0_36] : memref<144x16xbf16, #tpu.memory_space<vmem>>, vector<144x16xbf16>
    %cst_37 = arith.constant dense<0.000000e+00> : vector<128x16xf32>
    %112 = tpu.matmul %110, %111, %cst_37 {dimension_numbers = #tpu.dot_dimension_numbers<[1], [0], [0], [1], [0, 0, 1, 1], [], []>} : vector<128x144xbf16>, vector<144x16xbf16>, vector<128x16xf32> -> vector<128x16xf32>
    %c0_38 = arith.constant 0 : index
    %c0_39 = arith.constant 0 : index
    %113 = vector.load %arg9[%c0_38, %c0_39] : memref<1x16xf32, #tpu.memory_space<vmem>>, vector<1x16xf32>
    %114 = vector.broadcast %113 : vector<1x16xf32> to vector<128x16xf32>
    %115 = arith.addf %112, %114 : vector<128x16xf32>
    %116 = vector.shape_cast %115 : vector<128x16xf32> to vector<2x64x16xf32>
    %cst_40 = arith.constant dense<0.000000e+00> : vector<2x16xf32>
    %117 = vector.multi_reduction <add>, %116, %cst_40 [1] : vector<2x64x16xf32> to vector<2x16xf32>
    %118 = vector.shape_cast %117 : vector<2x16xf32> to vector<2x1x16xf32>
    %cst_41 = arith.constant 6.400000e+01 : f32
    %119 = vector.broadcast %cst_41 : f32 to vector<2x1x16xf32>
    %120 = arith.divf %118, %119 : vector<2x1x16xf32>
    %121 = vector.broadcast %120 : vector<2x1x16xf32> to vector<2x64x16xf32>
    %122 = arith.subf %116, %121 : vector<2x64x16xf32>
    %123 = arith.mulf %122, %122 : vector<2x64x16xf32>
    %cst_42 = arith.constant dense<0.000000e+00> : vector<2x16xf32>
    %124 = vector.multi_reduction <add>, %123, %cst_42 [1] : vector<2x64x16xf32> to vector<2x16xf32>
    %125 = vector.shape_cast %124 : vector<2x16xf32> to vector<2x1x16xf32>
    %cst_43 = arith.constant 6.400000e+01 : f32
    %126 = vector.broadcast %cst_43 : f32 to vector<2x1x16xf32>
    %127 = arith.divf %125, %126 : vector<2x1x16xf32>
    %cst_44 = arith.constant 9.99999974E-6 : f32
    %128 = vector.broadcast %cst_44 : f32 to vector<2x1x16xf32>
    %129 = arith.addf %127, %128 : vector<2x1x16xf32>
    %130 = math.rsqrt %129 : vector<2x1x16xf32>
    %131 = vector.broadcast %130 : vector<2x1x16xf32> to vector<2x64x16xf32>
    %132 = arith.mulf %122, %131 : vector<2x64x16xf32>
    %cst_45 = arith.constant 2.000000e-01 : f32
    %133 = vector.broadcast %cst_45 : f32 to vector<2x64x16xf32>
    %134 = arith.mulf %133, %132 : vector<2x64x16xf32>
    %135 = arith.maximumf %132, %134 : vector<2x64x16xf32>
    %cst_46 = arith.constant dense<0.000000e+00> : vector<2x16xf32>
    %136 = vector.multi_reduction <add>, %135, %cst_46 [1] : vector<2x64x16xf32> to vector<2x16xf32>
    %cst_47 = arith.constant 6.400000e+01 : f32
    %137 = vector.broadcast %cst_47 : f32 to vector<2x16xf32>
    %138 = arith.divf %136, %137 : vector<2x16xf32>
    %c0_48 = arith.constant 0 : index
    %c0_49 = arith.constant 0 : index
    %139 = vector.load %arg10[%c0_48, %c0_49] : memref<1x16xf32, #tpu.memory_space<vmem>>, vector<1x16xf32>
    %140 = vector.broadcast %139 : vector<1x16xf32> to vector<2x16xf32>
    %141 = arith.mulf %138, %140 : vector<2x16xf32>
    %cst_50 = arith.constant dense<0.000000e+00> : vector<2xf32>
    %142 = vector.multi_reduction <add>, %141, %cst_50 [1] : vector<2x16xf32> to vector<2xf32>
    %143 = vector.shape_cast %142 : vector<2xf32> to vector<2x1xf32>
    %c0_51 = arith.constant 0 : index
    %c0_52 = arith.constant 0 : index
    %144 = vector.load %arg11[%c0_51, %c0_52] : memref<1x1xf32, #tpu.memory_space<vmem>>, vector<1x1xf32>
    %145 = vector.broadcast %144 : vector<1x1xf32> to vector<2x1xf32>
    %146 = arith.addf %143, %145 : vector<2x1xf32>
    %147 = vector.shape_cast %146 : vector<2x1xf32> to vector<1x2x1xf32>
    %c0_53 = arith.constant 0 : index
    %c0_54 = arith.constant 0 : index
    %c0_55 = arith.constant 0 : index
    %148 = vector.load %arg12[%c0_53, %c0_54, %c0_55] : memref<1x2x1xf32, #tpu.memory_space<vmem>>, vector<1x2x1xf32>
    tpu.vector_store %arg12[%c0_53, %c0_54, %c0_55], %147 {strides = array<i32>} : memref<1x2x1xf32, #tpu.memory_space<vmem>>, vector<1x2x1xf32>,
    return
  }
  func.func @transform_0(%arg0: i32) -> (i32, i32, i32) {
    %c0_i32 = arith.constant 0 : i32
    %c0_i32_0 = arith.constant 0 : i32
    %c0_i32_1 = arith.constant 0 : i32
    return %arg0, %c0_i32, %c0_i32_0 : i32, i32, i32
  }
  func.func @transform_1(%arg0: i32) -> (i32, i32) {
    %c0_i32 = arith.constant 0 : i32
    %c0_i32_0 = arith.constant 0 : i32
    %c0_i32_1 = arith.constant 0 : i32
    return %c0_i32, %c0_i32_0 : i32, i32
  }
  func.func @transform_2(%arg0: i32) -> (i32, i32) {
    %c0_i32 = arith.constant 0 : i32
    %c0_i32_0 = arith.constant 0 : i32
    %c0_i32_1 = arith.constant 0 : i32
    return %c0_i32, %c0_i32_0 : i32, i32
  }
  func.func @transform_3(%arg0: i32) -> (i32, i32) {
    %c0_i32 = arith.constant 0 : i32
    %c0_i32_0 = arith.constant 0 : i32
    %c0_i32_1 = arith.constant 0 : i32
    return %c0_i32, %c0_i32_0 : i32, i32
  }
  func.func @transform_4(%arg0: i32) -> (i32, i32) {
    %c0_i32 = arith.constant 0 : i32
    %c0_i32_0 = arith.constant 0 : i32
    %c0_i32_1 = arith.constant 0 : i32
    return %c0_i32, %c0_i32_0 : i32, i32
  }
  func.func @transform_5(%arg0: i32) -> (i32, i32) {
    %c0_i32 = arith.constant 0 : i32
    %c0_i32_0 = arith.constant 0 : i32
    %c0_i32_1 = arith.constant 0 : i32
    return %c0_i32, %c0_i32_0 : i32, i32
  }
  func.func @transform_6(%arg0: i32) -> (i32, i32) {
    %c0_i32 = arith.constant 0 : i32
    %c0_i32_0 = arith.constant 0 : i32
    %c0_i32_1 = arith.constant 0 : i32
    return %c0_i32, %c0_i32_0 : i32, i32
  }
  func.func @transform_7(%arg0: i32) -> (i32, i32) {
    %c0_i32 = arith.constant 0 : i32
    %c0_i32_0 = arith.constant 0 : i32
    %c0_i32_1 = arith.constant 0 : i32
    return %c0_i32, %c0_i32_0 : i32, i32
  }
  func.func @transform_8(%arg0: i32) -> (i32, i32) {
    %c0_i32 = arith.constant 0 : i32
    %c0_i32_0 = arith.constant 0 : i32
    %c0_i32_1 = arith.constant 0 : i32
    return %c0_i32, %c0_i32_0 : i32, i32
  }
  func.func @transform_9(%arg0: i32) -> (i32, i32) {
    %c0_i32 = arith.constant 0 : i32
    %c0_i32_0 = arith.constant 0 : i32
    %c0_i32_1 = arith.constant 0 : i32
    return %c0_i32, %c0_i32_0 : i32, i32
  }
  func.func @transform_10(%arg0: i32) -> (i32, i32) {
    %c0_i32 = arith.constant 0 : i32
    %c0_i32_0 = arith.constant 0 : i32
    %c0_i32_1 = arith.constant 0 : i32
    return %c0_i32, %c0_i32_0 : i32, i32
  }
  func.func @transform_11(%arg0: i32) -> (i32, i32, i32) {
    %c0_i32 = arith.constant 0 : i32
    %c0_i32_0 = arith.constant 0 : i32
    %c0_i32_1 = arith.constant 0 : i32
    return %arg0, %c0_i32, %c0_i32_0 : i32, i32, i32
  }
}

</mosaic_0001>

<bundles_post_ra>
// kernel: one_scale_critic_forward.1
= control target key start
LH: loop header
LB: loop body
LE: loop exit
PB: predicated region body
PF: predicated region fallthrough
CT: control target
= control target key end

     0   :  { %vm149_vm0 = vcmask 1041408   ;;  %vm124_vm1 = vcmask 293888   ;;  %v4524_v18 = vmov 0.0   ;;  %vm333_vm2 = vcmask 1040384   ;;  %s4527_s21 = smov 8   ;;  %s4528_s22 = smov 32   ;;  %s6741_s1 = inlined_call_operand.vmem [shape: bf16[36,8], index: 1, kind: input, shape index: {}]   ;;  %s6742_s0 = inlined_call_operand.vmem [shape: bf16[2,64,36], index: 0, kind: input, shape index: {}]   ;;  %s6743_s2 = inlined_call_operand.vmem [shape: f32[1,8], index: 2, kind: input, shape index: {}]   ;;  %s6744_s3 = inlined_call_operand.vmem [shape: bf16[72,16], index: 3, kind: input, shape index: {}]   ;;  %s6745_s4 = inlined_call_operand.vmem [shape: f32[1,16], index: 4, kind: input, shape index: {}]   ;;  %s6746_s5 = inlined_call_operand.vmem [shape: bf16[144,16], index: 5, kind: input, shape index: {}]   ;;  %s6747_s6 = inlined_call_operand.vmem [shape: f32[1,16], index: 6, kind: input, shape index: {}]   ;;  %s6748_s7 = inlined_call_operand.vmem [shape: bf16[144,16], index: 7, kind: input, shape index: {}]   ;;  %s6749_s8 = inlined_call_operand.vmem [shape: f32[1,16], index: 8, kind: input, shape index: {}]   ;;  %s6750_s10 = inlined_call_operand.<no memory space> [shape: f32[1,1], index: 10, kind: input, shape index: {}]   ;;  %s6751_s9 = inlined_call_operand.vmem [shape: f32[1,16], index: 9, kind: input, shape index: {}]   ;;  %s6752_s11 = inlined_call_operand.vmem [shape: f32[1,2,1], index: 11, kind: output, shape index: {}]  }
   0x1   :  { %v4478_v0 = vld [vmem:[%s6741_s1 + $0x10] ss:$0 sps:$4 sm:$0x33]   ;;  %v4479_v1 = vld [vmem:[%s6741_s1 + $0x8] sm:$0xff]   ;;  %v4481_v3 = vld [vmem:[%s6742_s0] sm:$0xff]   ;;  %v299_v19 = vrot.slane %v4524_v18, 7 }
   0x2   :  { %3658 = vmatprep.subr.msk.bf16.mxu0 %vm149_vm0, %v4478_v0  ;;  %v151_v2 = vsel %vm149_vm0, %v4478_v0, 0  ;;  %v4480_v4 = vld [vmem:[%s6741_s1] sm:$0xff]   ;;  %3616 = vmatprep.mubr.msk.bf16.mxu0 %vm124_vm1, %v4481_v3  ;;  %v4482_v5 = vld [vmem:[%s6742_s0 + $0x8] sm:$0xff]   ;;  %v4483_v6 = vld [vmem:[%s6742_s0 + $0x10] sm:$0xff]   ;;  %vm489_vm3 = vcmask 1045504   ;;  %vm398_vm4 = vcmask 1046528  }
   0x3   :  { %3611 = vmatpush3.bf16.msra.mxu0 %v151_v2  ;;  %v4484_v7 = vld [vmem:[%s6742_s0 + $0x18] sm:$0xff]   ;;  %v4485_v8 = vld [vmem:[%s6742_s0 + $0x20] sm:$0xff]   ;;  %v4486_v9 = vld [vmem:[%s6742_s0 + $0x28] sm:$0xff]   ;;  %v351_v28 = vsel %vm333_vm2, %v299_v19, 0.0  ;;  %v4649_v29 = vsel %vm333_vm2, 0.0, %v299_v19  ;;  %s4529_s23 = smov 48  }
   0x4   :  { %3612 = vmatprep.subr.bf16.mxu0 %v4479_v1  ;;  %v4487_v10 = vld [vmem:[%s6742_s0 + $0x30] sm:$0xff]   ;;  %v4488_v11 = vld [vmem:[%s6742_s0 + $0x38] sm:$0xff]   ;;  %v4641_v12 = vld [vmem:[%s6743_s2] ss:$0 sm:$0xff]  ;;  %v491_v35 = vrot.slane %v351_v28, 2  ;;  %v490_v39 = vrot.slane %v4649_v29, 2 }
   0x5   :  { %v399_v44 = vrot.slane %v4649_v29, 1  ;;  %v400_v45 = vrot.slane %v351_v28, 1  ;;  %s4525_s0 = smov 24   ;;  %s4526_s2 = smov 16   ;;  %vm1085_vm5 = vcmask 1043456   ;;  %vm875_vm6 = vcmask 64512  }
   0x6   :  { %v4668_v51 = vsel %vm489_vm3, %v490_v39, %v491_v35  ;;  %s4530_s24 = smov 40   ;;  %s4531_s25 = smov 56   ;;  %vm891_vm7 = vcmask 130048   ;;  %vm907_vm8 = vcmask 195584   ;;  %vm924_vm9 = vcmask 261120  }
   0x7   :  { %3613 = vmatpush3.bf16.msra.mxu0 %v4479_v1  ;;  %v4678_v57 = vsel %vm398_vm4, %v399_v44, %v400_v45  ;;  %s4532_s26 = smov 64   ;;  %vm941_vm10 = vcmask 326656   ;;  %vm958_vm11 = vcmask 392192   ;;  %vm975_vm12 = vcmask 457728   ;;  %s4534_s27 = smov 96  }
   0x8   :  { %3614 = vmatprep.subr.bf16.mxu0 %v4480_v4  ;;  %vm992_vm13 = vcmask 523264   ;;  %vm1060_vm14 = vcmask 588800   ;;  %s4536_s17 = smov 112   ;;  %vm1968_vm15 = vcmask 654336   ;;  %vm1985_vm0 = vcmask 785408  }
   0xb   :  { %3615 = vmatpush3.bf16.msra.mxu0 %v4480_v4 }
   0xe   :  { %3617 = vmatmul.mubr.msk.bf16.vlgmr.msra.gmra.mxu0 %vm124_vm1, %v4482_v5 }
   0xf   :  { %3620 = vmatprep.mubr.msk.bf16.mxu0 %vm124_vm1, %v4483_v6 }
  0x16   :  { %3621 = vmatmul.mubr.msk.bf16.gmra.mxu0 %vm124_vm1, %v4484_v7 }
  0x17   :  { %3624 = vmatprep.mubr.msk.bf16.mxu0 %vm124_vm1, %v4485_v8 }
  0x1e   :  { %3625 = vmatmul.mubr.msk.bf16.gmra.mxu0 %vm124_vm1, %v4486_v9 }
  0x1f   :  { %3628 = vmatprep.mubr.msk.bf16.mxu0 %vm124_vm1, %v4487_v10 }
  0x26   :  { %3629 = vmatmul.mubr.msk.bf16.gmra.mxu0 %vm124_vm1, %v4488_v11  ;;  %vm2002_vm1 = vcmask 916480  }
  0xce   :  { %v3618_v13 = vpop.f32.mrf.mxu0 }
  0xcf   :  { %v196_v14 = vadd.f32 %v3618_v13, %v4641_v12 }
  0xd0   :  { %v187_v15 = vpop.f32.mrf.mxu0 }
  0xd1   :  { %v252_v16 = vmul.f32 0.2, %v196_v14  ;;  %v188_v17 = vadd.f32 %v4641_v12, %v187_v15 }
  0xd2   :  { %v3619_v20 = vpop.f32.mrf.mxu0 }
  0xd3   :  { %v268_v21 = vmax.f32 %v196_v14, %v252_v16  ;;  %v250_v22 = vmul.f32 0.2, %v188_v17  ;;  %v199_v23 = vadd.f32 %v3619_v20, %v4641_v12 }
  0xd4   :  { %v190_v24 = vpop.f32.mrf.mxu0 }
  0xd5   :  { %v266_v25 = vmax.f32 %v188_v17, %v250_v22  ;;  %v253_v26 = vmul.f32 0.2, %v199_v23  ;;  %v191_v27 = vadd.f32 %v4641_v12, %v190_v24  ;;  %v302_v30 = vrot.slane %v268_v21, 7 }
  0xd6   :  { %v3622_v34 = vpop.f32.mrf.mxu0 }
  0xd7   :  { %v300_v31 = vrot.slane %v266_v25, 7  ;;  %v269_v32 = vmax.f32 %v199_v23, %v253_v26  ;;  %v251_v33 = vmul.f32 0.2, %v191_v27  ;;  %v4658_v42 = vsel %vm333_vm2, 0.0, %v302_v30 }
  0xd8   :  { %v203_v48 = vpop.f32.mrf.mxu0  ;;  %v354_v53 = vsel %vm333_vm2, %v302_v30, 0.0  ;;  %v212_v62 = vadd.f32 %v3622_v34, %v4641_v12  ;;  %v408_v5 = vrot.slane %v4658_v42, 1  ;;  %v499_v14 = vrot.slane %v4658_v42, 2 }
  0xd9   :  { %v4652_v36 = vsel %vm333_vm2, 0.0, %v300_v31  ;;  %v352_v37 = vsel %vm333_vm2, %v300_v31, 0.0  ;;  %v303_v38 = vrot.slane %v269_v32, 7  ;;  %v267_v47 = vmax.f32 %v191_v27, %v251_v33 }
  0xda   :  { %v493_v40 = vrot.slane %v4652_v36, 2  ;;  %v494_v41 = vrot.slane %v352_v37, 2  ;;  %v403_v46 = vrot.slane %v352_v37, 1  ;;  %v402_v50 = vrot.slane %v4652_v36, 1  ;;  %v3623_v63 = vpop.f32.mrf.mxu0 }
  0xdb   :  { %v4661_v43 = vsel %vm333_vm2, 0.0, %v303_v38  ;;  %v355_v54 = vsel %vm333_vm2, %v303_v38, 0.0  ;;  %v204_v55 = vadd.f32 %v4641_v12, %v203_v48  ;;  %v301_v56 = vrot.slane %v267_v47, 7 }
  0xdc   :  { %v3673_v49 = vpack.i.bf16 %v4661_v43, %v4658_v42  ;;  %v4672_v52 = vsel %vm489_vm3, %v493_v40, %v494_v41  ;;  %v404_v58 = vsel %vm398_vm4, %v402_v50, %v403_v46  ;;  %v409_v60 = vrot.slane %v354_v53, 1  ;;  %v206_v45 = vpop.f32.mrf.mxu0 }
  0xdd   :  { %v3683_v59 = vpack.i.bf16 %v4672_v52, %v4668_v51  ;;  %v412_v61 = vrot.slane %v355_v54, 1  ;;  %v254_v0 = vmul.f32 0.2, %v204_v55  ;;  %v3678_v1 = vpack.i.bf16 %v404_v58, %v4678_v57 }
  0xde   :  { %3674 = vrot.lane.b32.xlu1 %v3673_v49, %s4525_s0  ;;  %v215_v2 = vadd.f32 %v3623_v63, %v4641_v12  ;;  %v4688_v3 = vsel %vm333_vm2, 0.0, %v301_v56  ;;  %v353_v4 = vsel %vm333_vm2, %v301_v56, 0.0  ;;  %v411_v6 = vrot.slane %v4661_v43, 1 }
  0xdf   :  { %v500_v7 = vrot.slane %v354_v53, 2  ;;  %v503_v8 = vrot.slane %v355_v54, 2  ;;  %3679 = vrot.lane.b32.xlu0 %v3678_v1, %s4527_s21  ;;  %v502_v9 = vrot.slane %v4661_v43, 2  ;;  %v256_v10 = vmul.f32 0.2, %v212_v62 }
  0xe0   :  { %v410_v11 = vsel %vm398_vm4, %v408_v5, %v409_v60  ;;  %v413_v13 = vsel %vm398_vm4, %v411_v6, %v412_v61  ;;  %v406_v15 = vrot.slane %v353_v4, 1  ;;  %v270_v16 = vmax.f32 %v204_v55, %v254_v0 }
  0xe1   :  { %v3688_v17 = vpack.i.bf16 %v4688_v3, %v4652_v36  ;;  %v3698_v18 = vpack.i.bf16 %v413_v13, %v410_v11  ;;  %v497_v19 = vrot.slane %v353_v4, 2  ;;  %v405_v20 = vrot.slane %v4688_v3, 1  ;;  %v3626_v4 = vpop.f32.mrf.mxu0 }
  0xe2   :  { %3684 = vrot.lane.b32.xlu1 %v3683_v59, %s4526_s2  ;;  %v257_v21 = vmul.f32 0.2, %v215_v2  ;;  %v496_v22 = vrot.slane %v4688_v3, 2  ;;  %v504_v23 = vsel %vm489_vm3, %v502_v9, %v503_v8  ;;  %v501_v24 = vsel %vm489_vm3, %v499_v14, %v500_v7 }
  0xe3   :  { %3689 = vrot.lane.b32.xlu0 %v3688_v17, %s4525_s0  ;;  %v272_v25 = vmax.f32 %v212_v62, %v256_v10  ;;  %v3693_v26 = vpack.i.bf16 %v4658_v42, %v4688_v3  ;;  %v3703_v27 = vpack.i.bf16 %v504_v23, %v501_v24  ;;  %v304_v28 = vrot.slane %v270_v16, 7 }
  0xe4   :  { %v407_v30 = vsel %vm398_vm4, %v405_v20, %v406_v15  ;;  %v273_v31 = vmax.f32 %v215_v2, %v257_v21  ;;  %v498_v32 = vsel %vm489_vm3, %v496_v22, %v497_v19  ;;  %v207_v47 = vadd.f32 %v4641_v12, %v206_v45 }
  0xe5   :  { %v3708_v33 = vpack.i.bf16 %v410_v11, %v407_v30  ;;  %v3713_v34 = vpack.i.bf16 %v501_v24, %v498_v32  ;;  %v306_v35 = vrot.slane %v272_v25, 7  ;;  %v4713_v37 = vsel %vm333_vm2, 0.0, %v304_v28  ;;  %v219_v11 = vpop.f32.mrf.mxu0 }
  0xe6   :  { %3699 = vrot.lane.b32.xlu1 %v3698_v18, %s4528_s22  ;;  %v307_v38 = vrot.slane %v273_v31, 7  ;;  %v3718_v39 = vpack.i.bf16 %v407_v30, %v404_v58  ;;  %v3738_v40 = vpack.i.bf16 %v4713_v37, %v4661_v43  ;;  %v356_v46 = vsel %vm333_vm2, %v304_v28, 0.0 }
  0xe7   :  { %3694 = vrot.lane.b32.xlu0 %v3693_v26, %s4529_s23  ;;  %v4720_v41 = vsel %vm333_vm2, 0.0, %v306_v35  ;;  %v3723_v48 = vpack.i.bf16 %v498_v32, %v4672_v52  ;;  %v415_v50 = vrot.slane %v356_v46, 1  ;;  %v414_v53 = vrot.slane %v4713_v37, 1  ;;  %v3627_v18 = vpop.f32.mrf.mxu0 }
  0xe8   :  { %v342_v44 = vsel %vm333_vm2, 0.0, %v307_v38  ;;  %v255_v54 = vmul.f32 0.2, %v207_v47  ;;  %v358_v56 = vsel %vm333_vm2, %v306_v35, 0.0  ;;  %v506_v58 = vrot.slane %v356_v46, 2 }
  0xe9   :  { %v3743_v49 = vpack.i.bf16 %v342_v44, %v4720_v41  ;;  %v3748_v55 = vpack.i.bf16 %v4649_v29, %v342_v44  ;;  %v4735_v59 = vsel %vm398_vm4, %v414_v53, %v415_v50  ;;  %v505_v52 = vrot.slane %v4713_v37, 2  ;;  %v222_v32 = vpop.f32.mrf.mxu0  ;;  %v4489_v46 = vld [vmem:[%s6744_s3 + $0x20] ss:$0 sps:$4 sm:$0xff]  }
  0xea   :  { %3704 = vrot.lane.b32.xlu1 %v3703_v27, %s4530_s24  ;;  %v359_v60 = vsel %vm333_vm2, %v307_v38, 0.0  ;;  %v421_v61 = vrot.slane %v358_v56, 1  ;;  %v271_v62 = vmax.f32 %v207_v47, %v255_v54  ;;  %v3753_v63 = vpack.i.bf16 %v4735_v59, %v413_v13  ;;  %v4490_v54 = vld [vmem:[%s6744_s3 + $0x18] sm:$0xff]   ;;  %3659 = vmatprep.subr.msk.bf16.mxu1 %vm1085_vm5, %v4489_v46 }
  0xeb   :  { %3709 = vrot.lane.b32.xlu0 %v3708_v33, %s4527_s21  ;;  %v632_v0 = vrot.slane %v342_v44, 1  ;;  %v633_v1 = vrot.slane %v359_v60, 1  ;;  %v4743_v2 = vsel %vm489_vm3, %v505_v52, %v506_v58  ;;  %v420_v5 = vrot.slane %v4720_v41, 1 }
  0xec   :  { %v512_v6 = vrot.slane %v358_v56, 2  ;;  %v686_v7 = vrot.slane %v342_v44, 2  ;;  %v687_v8 = vrot.slane %v359_v60, 2  ;;  %v3763_v9 = vpack.i.bf16 %v4743_v2, %v504_v23 }
  0xed   :  { %v305_v10 = vrot.slane %v271_v62, 7  ;;  %v422_v13 = vsel %vm398_vm4, %v420_v5, %v421_v61  ;;  %v634_v14 = vsel %vm398_vm4, %v632_v0, %v633_v1  ;;  %v511_v15 = vrot.slane %v4720_v41, 2 }
  0xee   :  { %3714 = vrot.lane.b32.xlu1 %v3713_v34, %s4526_s2  ;;  %v3783_v16 = vpack.i.bf16 %v634_v14, %v422_v13  ;;  %v688_v20 = vsel %vm489_vm3, %v686_v7, %v687_v8  ;;  %v228_v22 = vadd.f32 %v3626_v4, %v4641_v12  ;;  %v231_v23 = vadd.f32 %v3627_v18, %v4641_v12 }
  0xef   :  { %3719 = vrot.lane.b32.xlu0 %v3718_v39, %s4528_s22  ;;  %v4755_v17 = vsel %vm333_vm2, 0.0, %v305_v10  ;;  %v513_v19 = vsel %vm489_vm3, %v511_v15, %v512_v6  ;;  %v357_v21 = vsel %vm333_vm2, %v305_v10, 0.0  ;;  %v220_v31 = vadd.f32 %v4641_v12, %v219_v11 }
  0xf0   :  { %v3773_v24 = vpack.i.bf16 %v4755_v17, %v4713_v37  ;;  %v3788_v25 = vpack.i.bf16 %v688_v20, %v513_v19  ;;  %v418_v26 = vrot.slane %v357_v21, 1  ;;  %v417_v27 = vrot.slane %v4755_v17, 1 }
  0xf1   :  { %v260_v28 = vmul.f32 0.2, %v228_v22  ;;  %v261_v30 = vmul.f32 0.2, %v231_v23  ;;  %v3793_v35 = vpack.i.bf16 %v4678_v57, %v634_v14  ;;  %v509_v38 = vrot.slane %v357_v21, 2  ;;  %v4492_v14 = vld [vmem:[%s6744_s3 + $0x8] sm:$0xff]  }
  0xf2   :  { %3739 = vrot.lane.b32.xlu1 %v3738_v40, %s4529_s23  ;;  %v419_v39 = vsel %vm398_vm4, %v417_v27, %v418_v26  ;;  %v508_v40 = vrot.slane %v4755_v17, 2  ;;  %v258_v47 = vmul.f32 0.2, %v220_v31  ;;  %v3798_v50 = vpack.i.bf16 %v4668_v51, %v688_v20  ;;  %v4493_v27 = vld [vmem:[%s6744_s3] sm:$0xff]  }
  0xf3   :  { %3724 = vrot.lane.b32.xlu0 %v3723_v48, %s4530_s24  ;;  %v276_v44 = vmax.f32 %v228_v22, %v260_v28  ;;  %v277_v45 = vmax.f32 %v231_v23, %v261_v30  ;;  %v1087_v58 = vsel %vm1085_vm5, %v4489_v46, 0  ;;  %v3803_v62 = vpack.i.bf16 %v422_v13, %v419_v39 }
  0xf4   :  { %v510_v53 = vsel %vm489_vm3, %v508_v40, %v509_v38  ;;  %v274_v52 = vmax.f32 %v220_v31, %v258_v47  ;;  %3633 = vmatpush3.bf16.msra.mxu1 %v1087_v58 }
  0xf5   :  { %v311_v56 = vrot.slane %v277_v45, 7  ;;  %v3818_v61 = vpack.i.bf16 %v510_v53, %v4743_v2  ;;  %3634 = vmatprep.subr.bf16.mxu1 %v4490_v54  ;;  %v3808_v8 = vpack.i.bf16 %v513_v19, %v510_v53 }
  0xf6   :  { %3744 = vrot.lane.b32.xlu1 %v3743_v49, %s4525_s0  ;;  %v3813_v49 = vpack.i.bf16 %v419_v39, %v4735_v59  ;;  %v3630_v59 = vpop.f32.mrf.mxu0  ;;  %v308_v2 = vrot.slane %v274_v52, 7 }
  0xf7   :  { %3729 = vrot.lane.b32.xlu0 %v3708_v33, %s4531_s25  ;;  %v223_v33 = vadd.f32 %v4641_v12, %v222_v32  ;;  %v4798_v4 = vsel %vm333_vm2, 0.0, %v311_v56  ;;  %v363_v5 = vsel %vm333_vm2, %v311_v56, 0.0  ;;  %v244_v30 = vadd.f32 %v3630_v59, %v4641_v12 }
  0xf8   :  { %v235_v7 = vpop.f32.mrf.mxu0  ;;  %3635 = vmatpush3.bf16.msra.mxu1 %v4490_v54  ;;  %v433_v10 = vrot.slane %v363_v5, 1  ;;  %v432_v13 = vrot.slane %v4798_v4, 1  ;;  %v360_v18 = vsel %vm333_vm2, %v308_v2, 0.0  ;;  %v524_v20 = vrot.slane %v363_v5, 2 }
  0xf9   :  { %v259_v48 = vmul.f32 0.2, %v223_v33  ;;  %v236_v19 = vadd.f32 %v4641_v12, %v235_v7  ;;  %v523_v26 = vrot.slane %v4798_v4, 2  ;;  %v424_v32 = vrot.slane %v360_v18, 1 }
  0xfa   :  { %3749 = vrot.lane.b32.xlu1 %v3748_v55, %s4529_s23  ;;  %v310_v55 = vrot.slane %v276_v44, 7  ;;  %v264_v45 = vmul.f32 0.2, %v244_v30  ;;  %v515_v47 = vrot.slane %v360_v18, 2  ;;  %v3631_v52 = vpop.f32.mrf.mxu0 }
  0xfb   :  { %3734 = vrot.lane.b32.xlu0 %v3713_v34, %s4532_s26  ;;  %v3778_v34 = vpack.i.bf16 %v4720_v41, %v4755_v17  ;;  %v275_v60 = vmax.f32 %v223_v33, %v259_v48  ;;  %v262_v33 = vmul.f32 0.2, %v236_v19  ;;  %v4844_v40 = vsel %vm489_vm3, %v523_v26, %v524_v20 }
  0xfc   :  { %v4794_v0 = vsel %vm333_vm2, 0.0, %v310_v55  ;;  %v362_v1 = vsel %vm333_vm2, %v310_v55, 0.0  ;;  %v280_v58 = vmax.f32 %v244_v30, %v264_v45 }
  0xfd   :  { %v309_v6 = vrot.slane %v275_v60, 7  ;;  %v429_v11 = vrot.slane %v4794_v0, 1  ;;  %v521_v15 = vrot.slane %v362_v1, 2  ;;  %v3833_v22 = vpack.i.bf16 %v4798_v4, %v4794_v0 }
  0xfe   :  { %3754 = vrot.lane.b32.xlu1 %v3753_v63, %s4531_s25  ;;  %v278_v53 = vmax.f32 %v236_v19, %v262_v33 }
  0xff   :  { %3764 = vrot.lane.b32.xlu0 %v3763_v9, %s4532_s26  ;;  %v4816_v21 = vsel %vm333_vm2, 0.0, %v309_v6  ;;  %v361_v28 = vsel %vm333_vm2, %v309_v6, 0.0 }
 0x100   :  { %v427_v38 = vrot.slane %v361_v28, 1  ;;  %v426_v44 = vrot.slane %v4816_v21, 1  ;;  %v518_v48 = vrot.slane %v361_v28, 2  ;;  %v517_v56 = vrot.slane %v4816_v21, 2 }
 0x101   :  { %v312_v59 = vrot.slane %v278_v53, 7 }
 0x102   :  { %3759 = vrot.lane.b32.xlu1 %v3753_v63, %s4527_s21  ;;  %v4491_v63 = vld [vmem:[%s6744_s3 + $0x10] sm:$0xff]   ;;  %v428_v55 = vsel %vm398_vm4, %v426_v44, %v427_v38 }
 0x103   :  { %3769 = vrot.lane.b32.xlu0 %v3763_v9, %s4526_s2  ;;  %v430_v9 = vrot.slane %v362_v1, 1  ;;  %3636 = vmatprep.subr.bf16.mxu1 %v4491_v63  ;;  %v314_v1 = vrot.slane %v280_v58, 7  ;;  %v364_v19 = vsel %vm333_vm2, %v312_v59, 0.0 }
 0x104   :  { %3637 = vmatpush3.bf16.msra.mxu1 %v4491_v63  ;;  %v519_v63 = vsel %vm489_vm3, %v517_v56, %v518_v48 }
 0x105   :  { %v4821_v23 = vsel %vm398_vm4, %v429_v11, %v430_v9  ;;  %3638 = vmatprep.subr.bf16.mxu1 %v4492_v14  ;;  %v4868_v7 = vsel %vm333_vm2, 0.0, %v314_v1  ;;  %v238_v9 = vpop.f32.mrf.mxu0 }
 0x106   :  { %3784 = vrot.lane.b32.xlu1 %v3783_v16, %s4528_s22  ;;  %v4811_v16 = vsel %vm333_vm2, 0.0, %v308_v2  ;;  %v4865_v2 = vsel %vm333_vm2, 0.0, %v312_v59  ;;  %v532_v26 = vrot.slane %v4868_v7, 2 }
 0x107   :  { %3774 = vrot.lane.b32.xlu0 %v3773_v24, %s4525_s0  ;;  %v4824_v24 = vsel %vm398_vm4, %v432_v13, %v433_v10  ;;  %v423_v31 = vrot.slane %v4811_v16, 1  ;;  %v514_v46 = vrot.slane %v4811_v16, 2  ;;  %v3898_v10 = vpack.i.bf16 %v4865_v2, %v4798_v4 }
 0x108   :  { %3639 = vmatpush3.bf16.msra.mxu1 %v4492_v14  ;;  %v239_v14 = vadd.f32 %v4641_v12, %v238_v9 }
 0x109   :  { %3640 = vmatprep.subr.bf16.mxu1 %v4493_v27  ;;  %v425_v54 = vsel %vm398_vm4, %v423_v31, %v424_v32  ;;  %v526_v32 = vrot.slane %v4865_v2, 2 }
 0x10a   :  { %3789 = vrot.lane.b32.xlu1 %v3788_v25, %s4530_s24  ;;  %v520_v25 = vrot.slane %v4794_v0, 2  ;;  %v3868_v60 = vpack.i.bf16 %v428_v55, %v425_v54 }
 0x10b   :  { %3779 = vrot.lane.b32.xlu0 %v3778_v34, %s4529_s23  ;;  %v3838_v34 = vpack.i.bf16 %v4816_v21, %v4811_v16 }
 0x10c   :  { %v4841_v39 = vsel %vm489_vm3, %v520_v25, %v521_v15  ;;  %3641 = vmatpush3.bf16.msra.mxu1 %v4493_v27  ;;  %v441_v15 = vrot.slane %v4868_v7, 1  ;;  %v3888_v27 = vpack.i.bf16 %v4821_v23, %v428_v55 }
 0x10d   :  { %v3893_v33 = vpack.i.bf16 %v4841_v39, %v519_v63 }
 0x10e   :  { %3794 = vrot.lane.b32.xlu1 %v3793_v35, %s4531_s25  ;;  %v3848_v35 = vpack.i.bf16 %v4824_v24, %v4821_v23  ;;  %v435_v23 = vrot.slane %v4865_v2, 1 }
 0x10f   :  { %3814 = vrot.lane.b32.xlu0 %v3813_v49, %s4528_s22  ;;  %v3843_v49 = vpack.i.bf16 %v4794_v0, %v4816_v21 }
 0x112   :  { %3799 = vrot.lane.b32.xlu1 %v3798_v50, %s4532_s26  ;;  %v3853_v50 = vpack.i.bf16 %v4844_v40, %v4841_v39 }
 0x113   :  { %3819 = vrot.lane.b32.xlu0 %v3818_v61, %s4530_s24  ;;  %v247_v61 = vadd.f32 %v3631_v52, %v4641_v12  ;;  %v527_v12 = vrot.slane %v364_v19, 2 }
 0x115   :  { %v265_v6 = vmul.f32 0.2, %v247_v61  ;;  %v528_v44 = vsel %vm489_vm3, %v526_v32, %v527_v12 }
 0x116   :  { %3804 = vrot.lane.b32.xlu1 %v3803_v62, %s4527_s21 }
 0x117   :  { %3824 = vrot.lane.b32.xlu0 %v3803_v62, %s4531_s25  ;;  %v516_v62 = vsel %vm489_vm3, %v514_v46, %v515_v47  ;;  %v281_v13 = vmax.f32 %v247_v61, %v265_v6  ;;  %v3913_v46 = vpack.i.bf16 %v528_v44, %v4844_v40 }
 0x118   :  { %v3873_v5 = vpack.i.bf16 %v519_v63, %v516_v62 }
 0x119   :  { %v315_v20 = vrot.slane %v281_v13, 7 }
 0x11a   :  { %3809 = vrot.lane.b32.xlu1 %v3808_v8, %s4526_s2 }
 0x11b   :  { %3829 = vrot.lane.b32.xlu0 %v3808_v8, %s4532_s26  ;;  %v366_v8 = vsel %vm333_vm2, %v314_v1, 0.0  ;;  %v350_v28 = vsel %vm333_vm2, 0.0, %v315_v20  ;;  %v367_v45 = vsel %vm333_vm2, %v315_v20, 0.0 }
 0x11c   :  { %v442_v11 = vrot.slane %v366_v8, 1  ;;  %v533_v18 = vrot.slane %v366_v8, 2  ;;  %v635_v47 = vrot.slane %v350_v28, 1  ;;  %v636_v48 = vrot.slane %v367_v45, 1 }
 0x11d   :  { %v689_v53 = vrot.slane %v350_v28, 2  ;;  %v690_v40 = vrot.slane %v367_v45, 2 }
 0x11e   :  { %3834 = vrot.lane.b32.xlu1 %v3833_v22, %s4525_s0  ;;  %v263_v22 = vmul.f32 0.2, %v239_v14  ;;  %v443_v25 = vsel %vm398_vm4, %v441_v15, %v442_v11  ;;  %v534_v31 = vsel %vm489_vm3, %v532_v26, %v533_v18  ;;  %v637_v58 = vsel %vm398_vm4, %v635_v47, %v636_v48 }
 0x11f   :  { %3839 = vrot.lane.b32.xlu0 %v3838_v34, %s4525_s0  ;;  %v3903_v34 = vpack.i.bf16 %v350_v28, %v4868_v7  ;;  %v3928_v59 = vpack.i.bf16 %v637_v58, %v443_v25  ;;  %v691_v63 = vsel %vm489_vm3, %v689_v53, %v690_v40 }
 0x120   :  { %v279_v30 = vmax.f32 %v239_v14, %v263_v22 }
 0x122   :  { %3849 = vrot.lane.b32.xlu1 %v3848_v35, %s4527_s21  ;;  %v313_v38 = vrot.slane %v279_v30, 7 }
 0x123   :  { %3844 = vrot.lane.b32.xlu0 %v3843_v49, %s4529_s23 }
 0x124   :  { %v4899_v39 = vsel %vm333_vm2, 0.0, %v313_v38 }
 0x125   :  { %v3918_v54 = vpack.i.bf16 %v4899_v39, %v4865_v2  ;;  %v529_v52 = vrot.slane %v4899_v39, 2 }
 0x126   :  { %3854 = vrot.lane.b32.xlu1 %v3853_v50, %s4526_s2 }
 0x127   :  { %3869 = vrot.lane.b32.xlu0 %v3868_v60, %s4527_s21 }
 0x12a   :  { %3859 = vrot.lane.b32.xlu1 %v3848_v35, %s4528_s22  ;;  %v436_v35 = vrot.slane %v364_v19, 1 }
 0x12b   :  { %3874 = vrot.lane.b32.xlu0 %v3873_v5, %s4526_s2 }
 0x12c   :  { %v437_v49 = vsel %vm398_vm4, %v435_v23, %v436_v35 }
 0x12d   :  { %v3908_v55 = vpack.i.bf16 %v437_v49, %v4824_v24  ;;  %v438_v24 = vrot.slane %v4899_v39, 1 }
 0x12e   :  { %3864 = vrot.lane.b32.xlu1 %v3853_v50, %s4530_s24  ;;  %v365_v50 = vsel %vm333_vm2, %v313_v38, 0.0 }
 0x12f   :  { %3879 = vrot.lane.b32.xlu0 %v3868_v60, %s4528_s22  ;;  %v530_v56 = vrot.slane %v365_v50, 2  ;;  %v3923_v60 = vpack.i.bf16 %v4868_v7, %v4899_v39  ;;  %v439_v61 = vrot.slane %v365_v50, 1 }
 0x131   :  { %v531_v62 = vsel %vm489_vm3, %v529_v52, %v530_v56  ;;  %v440_v6 = vsel %vm398_vm4, %v438_v24, %v439_v61 }
 0x132   :  { %3899 = vrot.lane.b32.xlu1 %v3898_v10, %s4529_s23  ;;  %v3943_v1 = vpack.i.bf16 %v531_v62, %v528_v44  ;;  %v3948_v9 = vpack.i.bf16 %v440_v6, %v437_v49  ;;  %v3958_v14 = vpack.i.bf16 %v443_v25, %v440_v6  ;;  %v3963_v19 = vpack.i.bf16 %v534_v31, %v531_v62 }
 0x133   :  { %3884 = vrot.lane.b32.xlu0 %v3873_v5, %s4530_s24  ;;  %v3933_v5 = vpack.i.bf16 %v691_v63, %v534_v31 }
 0x136   :  { %472 = vrot.lane.b32.xlu1 %v443_v25, %s4527_s21 }
 0x137   :  { %3889 = vrot.lane.b32.xlu0 %v3888_v27, %s4531_s25 }
 0x13a   :  { %563 = vrot.lane.b32.xlu1 %v534_v31, %s4526_s2 }
 0x13b   :  { %3894 = vrot.lane.b32.xlu0 %v3893_v33, %s4532_s26 }
 0x13e   :  { %3904 = vrot.lane.b32.xlu1 %v3903_v34, %s4525_s0 }
 0x13f   :  { %3914 = vrot.lane.b32.xlu0 %v3913_v46, %s4532_s26 }
 0x142   :  { %768 = vrot.lane.b32.xlu1 %v350_v28, %s4529_s23 }
 0x143   :  { %3919 = vrot.lane.b32.xlu0 %v3918_v54, %s4525_s0 }
 0x146   :  { %3909 = vrot.lane.b32.xlu1 %v3908_v55, %s4531_s25 }
 0x147   :  { %3924 = vrot.lane.b32.xlu0 %v3923_v60, %s4529_s23 }
 0x14a   :  { %3929 = vrot.lane.b32.xlu1 %v3928_v59, %s4528_s22 }
 0x14b   :  { %3944 = vrot.lane.b32.xlu0 %v3943_v1, %s4526_s2 }
 0x14e   :  { %3934 = vrot.lane.b32.xlu1 %v3933_v5, %s4530_s24 }
 0x14f   :  { %3949 = vrot.lane.b32.xlu0 %v3948_v9, %s4528_s22 }
 0x150   :  { %v3675_v8 = vpop.permute.xlu1 %3674 }
 0x151   :  { %v3680_v11 = vpop.permute.xlu0 %3679  ;;  %v3677_v44 = vunpack.i.h.bf16 %v3675_v8  ;;  %v3676_v31 = vunpack.i.l.bf16 %v3675_v8 }
 0x152   :  { %3939 = vrot.lane.b32.xlu1 %v3948_v9, %s4527_s21  ;;  %v3682_v12 = vunpack.i.h.bf16 %v3680_v11  ;;  %v3681_v27 = vunpack.i.l.bf16 %v3680_v11 }
 0x153   :  { %3954 = vrot.lane.b32.xlu0 %v3943_v1, %s4530_s24 }
 0x154   :  { %v3685_v10 = vpop.permute.xlu1 %3684  ;;  %v877_v23 = vsel %vm875_vm6, %v4652_v36, %v3682_v12  ;;  %v876_v45 = vsel %vm875_vm6, %v4649_v29, %v3681_v27 }
 0x155   :  { %v3690_v13 = vpop.permute.xlu0 %3689  ;;  %v3687_v33 = vunpack.i.h.bf16 %v3685_v10  ;;  %v3686_v34 = vunpack.i.l.bf16 %v3685_v10 }
 0x156   :  { %813 = vrot.lane.b32.xlu1 %v637_v58, %s4531_s25  ;;  %v3692_v48 = vunpack.i.h.bf16 %v3690_v13  ;;  %v3691_v49 = vunpack.i.l.bf16 %v3690_v13 }
 0x157   :  { %3959 = vrot.lane.b32.xlu0 %v3958_v14, %s4531_s25  ;;  %v4946_v54 = vsel %vm891_vm7, %v876_v45, %v3686_v34  ;;  %v893_v36 = vsel %vm891_vm7, %v877_v23, %v3687_v33 }
 0x158   :  { %v3700_v15 = vpop.permute.xlu1 %3699  ;;  %v908_v59 = vsel %vm907_vm8, %v4946_v54, %v3691_v49  ;;  %v909_v61 = vsel %vm907_vm8, %v893_v36, %v3692_v48 }
 0x159   :  { %v4928_v18 = vpop.permute.xlu0 %3694  ;;  %v3702_v62 = vunpack.i.h.bf16 %v3700_v15 }
 0x15a   :  { %858 = vrot.lane.b32.xlu1 %v691_v63, %s4532_s26  ;;  %v3701_v63 = vunpack.i.l.bf16 %v3700_v15  ;;  %v3697_v24 = vunpack.i.h.bf16 %v4928_v18  ;;  %v3696_v1 = vunpack.i.l.bf16 %v4928_v18 }
 0x15b   :  { %3964 = vrot.lane.b32.xlu0 %v3963_v19, %s4532_s26 }
 0x15c   :  { %v4930_v20 = vpop.permute.xlu1 %3704 }
 0x15d   :  { %v3710_v22 = vpop.permute.xlu0 %3709  ;;  %v3707_v15 = vunpack.i.h.bf16 %v4930_v20  ;;  %v3706_v19 = vunpack.i.l.bf16 %v4930_v20 }
 0x15e   :  { %v3712_v28 = vunpack.i.h.bf16 %v3710_v22  ;;  %v3711_v30 = vunpack.i.l.bf16 %v3710_v22 }
 0x160   :  { %v3715_v26 = vpop.permute.xlu1 %3714  ;;  %v879_v46 = vsel %vm875_vm6, %v4658_v42, %v3712_v28  ;;  %v878_v47 = vsel %vm875_vm6, %v4688_v3, %v3711_v30 }
 0x161   :  { %v3717_v25 = vunpack.i.h.bf16 %v3715_v26  ;;  %v3716_v32 = vunpack.i.l.bf16 %v3715_v26  ;;  %v3720_v35 = vpop.permute.xlu0 %3719 }
 0x162   :  { %v3722_v55 = vunpack.i.h.bf16 %v3720_v35  ;;  %v3721_v40 = vunpack.i.l.bf16 %v3720_v35 }
 0x163   :  { %v894_v50 = vsel %vm891_vm7, %v878_v47, %v3716_v32  ;;  %v895_v53 = vsel %vm891_vm7, %v879_v46, %v3717_v25 }
 0x164   :  { %v4933_v38 = vpop.permute.xlu1 %3739  ;;  %v910_v3 = vsel %vm907_vm8, %v894_v50, %v3676_v31  ;;  %v911_v60 = vsel %vm907_vm8, %v895_v53, %v3677_v44  ;;  %v925_v5 = vsel %vm924_vm9, %v908_v59, %v3721_v40  ;;  %v926_v6 = vsel %vm924_vm9, %v909_v61, %v3722_v55 }
 0x165   :  { %v3725_v56 = vpop.permute.xlu0 %3724  ;;  %v927_v10 = vsel %vm924_vm9, %v910_v3, %v3701_v63  ;;  %v928_v11 = vsel %vm924_vm9, %v911_v60, %v3702_v62  ;;  %v3742_v26 = vunpack.i.h.bf16 %v4933_v38  ;;  %v3741_v12 = vunpack.i.l.bf16 %v4933_v38 }
 0x166   :  { %v3727_v42 = vunpack.i.h.bf16 %v3725_v56  ;;  %v3726_v52 = vunpack.i.l.bf16 %v3725_v56  ;;  %v944_v27 = vsel %vm941_vm10, %v927_v10, %v3706_v19  ;;  %v945_v28 = vsel %vm941_vm10, %v928_v11, %v3707_v15 }
 0x167   :  { %v961_v23 = vsel %vm958_vm11, %v944_v27, %v3741_v12  ;;  %v962_v45 = vsel %vm958_vm11, %v945_v28, %v3742_v26 }
 0x168   :  { %v4949_v58 = vpop.permute.xlu1 %3744  ;;  %v942_v13 = vsel %vm941_vm10, %v925_v5, %v3726_v52  ;;  %v943_v14 = vsel %vm941_vm10, %v926_v6, %v3727_v42 }
 0x169   :  { %v3730_v8 = vpop.permute.xlu0 %3729  ;;  %v959_v32 = vsel %vm958_vm11, %v942_v13, %v3696_v1  ;;  %v960_v33 = vsel %vm958_vm11, %v943_v14, %v3697_v24  ;;  %v3747_v10 = vunpack.i.h.bf16 %v4949_v58  ;;  %v3746_v11 = vunpack.i.l.bf16 %v4949_v58 }
 0x16a   :  { %v3732_v18 = vunpack.i.h.bf16 %v3730_v8  ;;  %v3731_v22 = vunpack.i.l.bf16 %v3730_v8 }
 0x16c   :  { %v4960_v9 = vpop.permute.xlu1 %3749  ;;  %v976_v31 = vsel %vm975_vm12, %v959_v32, %v3731_v22  ;;  %v977_v38 = vsel %vm975_vm12, %v960_v33, %v3732_v18 }
 0x16d   :  { %v3735_v30 = vpop.permute.xlu0 %3734  ;;  %v3752_v15 = vunpack.i.h.bf16 %v4960_v9  ;;  %v3751_v26 = vunpack.i.l.bf16 %v4960_v9 }
 0x16e   :  { %v3737_v34 = vunpack.i.h.bf16 %v3735_v30  ;;  %v3736_v20 = vunpack.i.l.bf16 %v3735_v30 }
 0x170   :  { %v3755_v25 = vpop.permute.xlu1 %3754  ;;  %v993_v46 = vsel %vm992_vm13, %v976_v31, %v3736_v20  ;;  %v994_v47 = vsel %vm992_vm13, %v977_v38, %v3737_v34 }
 0x171   :  { %v3757_v35 = vunpack.i.h.bf16 %v3755_v25  ;;  %v3756_v44 = vunpack.i.l.bf16 %v3755_v25  ;;  %v3765_v50 = vpop.permute.xlu0 %3764  ;;  %v1009_v53 = vpack.c.bf16 %v994_v47, %v993_v46 }
 0x172   :  { %v3767_v55 = vunpack.i.h.bf16 %v3765_v50  ;;  %v3766_v40 = vunpack.i.l.bf16 %v3765_v50 }
 0x173   :  { %v978_v48 = vsel %vm975_vm12, %v961_v23, %v3756_v44  ;;  %v979_v49 = vsel %vm975_vm12, %v962_v45, %v3757_v35  ;;  %3642 = vmatprep.mubr.msk.bf16.mxu1 %vm1060_vm14, %v1009_v53 }
 0x174   :  { %v3760_v36 = vpop.permute.xlu1 %3759  ;;  %v995_v56 = vsel %vm992_vm13, %v978_v48, %v3766_v40  ;;  %v996_v42 = vsel %vm992_vm13, %v979_v49, %v3767_v55 }
 0x175   :  { %v3770_v52 = vpop.permute.xlu0 %3769  ;;  %v1010_v3 = vpack.c.bf16 %v996_v42, %v995_v56  ;;  %v3762_v24 = vunpack.i.h.bf16 %v3760_v36  ;;  %v3761_v1 = vunpack.i.l.bf16 %v3760_v36 }
 0x176   :  { %v3772_v8 = vunpack.i.h.bf16 %v3770_v52  ;;  %v3771_v14 = vunpack.i.l.bf16 %v3770_v52 }
 0x177   :  { %3643 = vmatmul.mubr.msk.bf16.vlgmr.msra.gmra.mxu1 %vm1060_vm14, %v1010_v3  ;;  %v881_v13 = vsel %vm875_vm6, %v4713_v37, %v3762_v24  ;;  %v880_v19 = vsel %vm875_vm6, %v4661_v43, %v3761_v1 }
 0x178   :  { %v4985_v60 = vpop.permute.xlu1 %3784  ;;  %v897_v58 = vsel %vm891_vm7, %v881_v13, %v3772_v8  ;;  %v896_v34 = vsel %vm891_vm7, %v880_v19, %v3771_v14 }
 0x179   :  { %v3775_v59 = vpop.permute.xlu0 %3774  ;;  %v3787_v12 = vunpack.i.h.bf16 %v4985_v60  ;;  %v3786_v37 = vunpack.i.l.bf16 %v4985_v60 }
 0x17a   :  { %v3777_v18 = vunpack.i.h.bf16 %v3775_v59  ;;  %v3776_v22 = vunpack.i.l.bf16 %v3775_v59 }
 0x17c   :  { %v4988_v61 = vpop.permute.xlu1 %3789  ;;  %v912_v44 = vsel %vm907_vm8, %v896_v34, %v3776_v22  ;;  %v913_v31 = vsel %vm907_vm8, %v897_v58, %v3777_v18 }
 0x17d   :  { %v3780_v62 = vpop.permute.xlu0 %3779  ;;  %v3792_v43 = vunpack.i.h.bf16 %v4988_v61  ;;  %v3791_v38 = vunpack.i.l.bf16 %v4988_v61 }
 0x17e   :  { %v3782_v23 = vunpack.i.h.bf16 %v3780_v62  ;;  %v3781_v45 = vunpack.i.l.bf16 %v3780_v62 }
 0x180   :  { %v4990_v63 = vpop.permute.xlu1 %3794 }
 0x181   :  { %v3815_v5 = vpop.permute.xlu0 %3814  ;;  %v3797_v46 = vunpack.i.h.bf16 %v4990_v63  ;;  %v3796_v60 = vunpack.i.l.bf16 %v4990_v63 }
 0x182   :  { %v3817_v27 = vunpack.i.h.bf16 %v3815_v5  ;;  %v3816_v28 = vunpack.i.l.bf16 %v3815_v5 }
 0x184   :  { %v4992_v6 = vpop.permute.xlu1 %3799  ;;  %v929_v47 = vsel %vm924_vm9, %v912_v44, %v3816_v28  ;;  %v930_v48 = vsel %vm924_vm9, %v913_v31, %v3817_v27 }
 0x185   :  { %v3820_v30 = vpop.permute.xlu0 %3819  ;;  %v3802_v59 = vunpack.i.h.bf16 %v4992_v6  ;;  %v3801_v58 = vunpack.i.l.bf16 %v4992_v6 }
 0x186   :  { %v3822_v32 = vunpack.i.h.bf16 %v3820_v30  ;;  %v3821_v33 = vunpack.i.l.bf16 %v3820_v30 }
 0x188   :  { %v3805_v25 = vpop.permute.xlu1 %3804  ;;  %v946_v53 = vsel %vm941_vm10, %v929_v47, %v3821_v33  ;;  %v947_v36 = vsel %vm941_vm10, %v930_v48, %v3822_v32 }
 0x189   :  { %v3807_v20 = vunpack.i.h.bf16 %v3805_v25  ;;  %v3806_v35 = vunpack.i.l.bf16 %v3805_v25  ;;  %v3825_v49 = vpop.permute.xlu0 %3824  ;;  %v963_v24 = vsel %vm958_vm11, %v946_v53, %v3781_v45  ;;  %v964_v1 = vsel %vm958_vm11, %v947_v36, %v3782_v23 }
 0x18a   :  { %v3827_v52 = vunpack.i.h.bf16 %v3825_v49  ;;  %v3826_v3 = vunpack.i.l.bf16 %v3825_v49 }
 0x18b   :  { %v883_v56 = vsel %vm875_vm6, %v4720_v41, %v3807_v20  ;;  %v882_v42 = vsel %vm875_vm6, %v4755_v17, %v3806_v35 }
 0x18c   :  { %v3810_v50 = vpop.permute.xlu1 %3809  ;;  %v980_v22 = vsel %vm975_vm12, %v963_v24, %v3826_v3  ;;  %v981_v27 = vsel %vm975_vm12, %v964_v1, %v3827_v52 }
 0x18d   :  { %v3812_v55 = vunpack.i.h.bf16 %v3810_v50  ;;  %v3811_v40 = vunpack.i.l.bf16 %v3810_v50  ;;  %v3830_v8 = vpop.permute.xlu0 %3829 }
 0x18e   :  { %v3832_v19 = vunpack.i.h.bf16 %v3830_v8  ;;  %v3831_v18 = vunpack.i.l.bf16 %v3830_v8 }
 0x18f   :  { %v898_v61 = vsel %vm891_vm7, %v882_v42, %v3811_v40  ;;  %v899_v62 = vsel %vm891_vm7, %v883_v56, %v3812_v55 }
 0x190   :  { %v914_v5 = vsel %vm907_vm8, %v898_v61, %v3746_v11  ;;  %v915_v41 = vsel %vm907_vm8, %v899_v62, %v3747_v10  ;;  %v5027_v17 = vpop.permute.xlu1 %3834  ;;  %v997_v11 = vsel %vm992_vm13, %v980_v22, %v3831_v18  ;;  %v998_v10 = vsel %vm992_vm13, %v981_v27, %v3832_v19 }
 0x191   :  { %v931_v13 = vsel %vm924_vm9, %v914_v5, %v3786_v37  ;;  %v932_v14 = vsel %vm924_vm9, %v915_v41, %v3787_v12  ;;  %v3840_v37 = vpop.permute.xlu0 %3839  ;;  %v1011_v32 = vpack.c.bf16 %v998_v10, %v997_v11  ;;  %v3836_v10 = vunpack.i.l.bf16 %v5027_v17 }
 0x192   :  { %v948_v28 = vsel %vm941_vm10, %v931_v13, %v3791_v38  ;;  %v949_v30 = vsel %vm941_vm10, %v932_v14, %v3792_v43  ;;  %v3841_v36 = vunpack.i.l.bf16 %v3840_v37 }
 0x193   :  { %v965_v25 = vsel %vm958_vm11, %v948_v28, %v3751_v26  ;;  %v966_v12 = vsel %vm958_vm11, %v949_v30, %v3752_v15  ;;  %3646 = vmatprep.mubr.msk.bf16.mxu1 %vm1060_vm14, %v1011_v32 }
 0x194   :  { %v5042_v33 = vpop.permute.xlu1 %3849  ;;  %v982_v34 = vsel %vm975_vm12, %v965_v25, %v3796_v60  ;;  %v983_v43 = vsel %vm975_vm12, %v966_v12, %v3797_v46  ;;  %v3842_v60 = vunpack.i.h.bf16 %v3840_v37  ;;  %v916_v1 = vsel %vm907_vm8, %v4946_v54, %v3841_v36 }
 0x195   :  { %v999_v26 = vsel %vm992_vm13, %v982_v34, %v3801_v58  ;;  %v1000_v20 = vsel %vm992_vm13, %v983_v43, %v3802_v59  ;;  %v3845_v44 = vpop.permute.xlu0 %3844  ;;  %v3851_v28 = vunpack.i.l.bf16 %v5042_v33 }
 0x196   :  { %v1012_v35 = vpack.c.bf16 %v1000_v20, %v999_v26  ;;  %v3847_v30 = vunpack.i.h.bf16 %v3845_v44  ;;  %v3846_v54 = vunpack.i.l.bf16 %v3845_v44 }
 0x198   :  { %v5053_v31 = vpop.permute.xlu1 %3854  ;;  %3647 = vmatmul.mubr.msk.bf16.gmra.mxu1 %vm1060_vm14, %v1012_v35 }
 0x199   :  { %v3870_v38 = vpop.permute.xlu0 %3869  ;;  %v3856_v25 = vunpack.i.l.bf16 %v5053_v31 }
 0x19a   :  { %v3871_v48 = vunpack.i.l.bf16 %v3870_v38  ;;  %v3872_v24 = vunpack.i.h.bf16 %v3870_v38 }
 0x19c   :  { %v5056_v23 = vpop.permute.xlu1 %3859  ;;  %v884_v55 = vsel %vm875_vm6, %v4811_v16, %v3871_v48  ;;  %v885_v11 = vsel %vm875_vm6, %v4816_v21, %v3872_v24  ;;  %v886_v21 = vsel %vm875_vm6, %v4794_v0, %v3851_v28 }
 0x19d   :  { %v3875_v45 = vpop.permute.xlu0 %3874  ;;  %v902_v48 = vsel %vm891_vm7, %v886_v21, %v3856_v25 }
 0x19e   :  { %v3876_v53 = vunpack.i.l.bf16 %v3875_v45  ;;  %v3877_v5 = vunpack.i.h.bf16 %v3875_v45 }
 0x1a0   :  { %v5058_v47 = vpop.permute.xlu1 %3864  ;;  %v900_v42 = vsel %vm891_vm7, %v884_v55, %v3876_v53  ;;  %v901_v12 = vsel %vm891_vm7, %v885_v11, %v3877_v5  ;;  %v3861_v53 = vunpack.i.l.bf16 %v5056_v23  ;;  %v3852_v11 = vunpack.i.h.bf16 %v5042_v33 }
 0x1a1   :  { %v3880_v49 = vpop.permute.xlu0 %3879  ;;  %v917_v41 = vsel %vm907_vm8, %v900_v42, %v3842_v60  ;;  %v918_v44 = vsel %vm907_vm8, %v901_v12, %v3836_v10  ;;  %v3837_v42 = vunpack.i.h.bf16 %v5027_v17  ;;  %v3867_v0 = vunpack.i.h.bf16 %v5058_v47 }
 0x1a2   :  { %v3882_v52 = vunpack.i.h.bf16 %v3880_v49  ;;  %v3881_v3 = vunpack.i.l.bf16 %v3880_v49  ;;  %v3862_v49 = vunpack.i.h.bf16 %v5056_v23 }
 0x1a3   :  { %v919_v23 = vsel %vm907_vm8, %v902_v48, %v3837_v42 }
 0x1a4   :  { %v5060_v50 = vpop.permute.xlu1 %3899  ;;  %v933_v16 = vsel %vm924_vm9, %v916_v1, %v3881_v3  ;;  %v934_v14 = vsel %vm924_vm9, %v917_v41, %v3882_v52  ;;  %v3866_v52 = vunpack.i.l.bf16 %v5058_v47  ;;  %v935_v3 = vsel %vm924_vm9, %v918_v44, %v3861_v53 }
 0x1a5   :  { %v3885_v40 = vpop.permute.xlu0 %3884  ;;  %v3902_v60 = vunpack.i.h.bf16 %v5060_v50 }
 0x1a6   :  { %v3887_v61 = vunpack.i.h.bf16 %v3885_v40  ;;  %v3886_v62 = vunpack.i.l.bf16 %v3885_v40  ;;  %v952_v17 = vsel %vm941_vm10, %v935_v3, %v3866_v52 }
 0x1a8   :  { %v5064_v56 = vpop.permute.xlu1 %472  ;;  %v950_v19 = vsel %vm941_vm10, %v933_v16, %v3886_v62  ;;  %v951_v18 = vsel %vm941_vm10, %v934_v14, %v3887_v61  ;;  %v3901_v61 = vunpack.i.l.bf16 %v5060_v50  ;;  %v936_v62 = vsel %vm924_vm9, %v919_v23, %v3862_v49 }
 0x1a9   :  { %v3890_v8 = vpop.permute.xlu0 %3889  ;;  %v967_v32 = vsel %vm958_vm11, %v950_v19, %v3846_v54  ;;  %v968_v34 = vsel %vm958_vm11, %v951_v18, %v3847_v30  ;;  %v953_v5 = vsel %vm941_vm10, %v936_v62, %v3867_v0 }
 0x1aa   :  { %v3892_v22 = vunpack.i.h.bf16 %v3890_v8  ;;  %v3891_v27 = vunpack.i.l.bf16 %v3890_v8  ;;  %v969_v8 = vsel %vm958_vm11, %v952_v17, %v3901_v61  ;;  %v970_v16 = vsel %vm958_vm11, %v953_v5, %v3902_v60 }
 0x1ac   :  { %v5070_v13 = vpop.permute.xlu1 %563  ;;  %v984_v20 = vsel %vm975_vm12, %v967_v32, %v3891_v27  ;;  %v985_v35 = vsel %vm975_vm12, %v968_v34, %v3892_v22  ;;  %v887_v32 = vsel %vm875_vm6, %v4798_v4, %v3852_v11  ;;  %v3857_v34 = vunpack.i.h.bf16 %v5053_v31 }
 0x1ad   :  { %v3895_v58 = vpop.permute.xlu0 %3894 }
 0x1ae   :  { %v3897_v43 = vunpack.i.h.bf16 %v3895_v58  ;;  %v3896_v26 = vunpack.i.l.bf16 %v3895_v58  ;;  %v890_v58 = vsel %vm875_vm6, %v4868_v7, %v5064_v56 }
 0x1b0   :  { %v5082_v37 = vpop.permute.xlu1 %3904  ;;  %v1001_v38 = vsel %vm992_vm13, %v984_v20, %v3896_v26  ;;  %v1002_v45 = vsel %vm992_vm13, %v985_v35, %v3897_v43  ;;  %v906_v43 = vsel %vm891_vm7, %v890_v58, %v5070_v13 }
 0x1b1   :  { %v3915_v36 = vpop.permute.xlu0 %3914  ;;  %v1013_v55 = vpack.c.bf16 %v1002_v45, %v1001_v38  ;;  %v3907_v12 = vunpack.i.h.bf16 %v5082_v37  ;;  %v3906_v21 = vunpack.i.l.bf16 %v5082_v37 }
 0x1b2   :  { %v3917_v14 = vunpack.i.h.bf16 %v3915_v36  ;;  %v3916_v50 = vunpack.i.l.bf16 %v3915_v36 }
 0x1b3   :  { %3650 = vmatprep.mubr.msk.bf16.mxu1 %vm1060_vm14, %v1013_v55  ;;  %v923_v35 = vsel %vm907_vm8, %v906_v43, %v3907_v12 }
 0x1b4   :  { %v5096_v40 = vpop.permute.xlu1 %768 }
 0x1b5   :  { %v3920_v24 = vpop.permute.xlu0 %3919 }
 0x1b6   :  { %v3922_v45 = vunpack.i.h.bf16 %v3920_v24  ;;  %v3921_v48 = vunpack.i.l.bf16 %v3920_v24  ;;  %v903_v24 = vsel %vm891_vm7, %v887_v32, %v3857_v34 }
 0x1b8   :  { %v3910_v1 = vpop.permute.xlu1 %3909  ;;  %v920_v5 = vsel %vm907_vm8, %v903_v24, %v3921_v48 }
 0x1b9   :  { %v3912_v41 = vunpack.i.h.bf16 %v3910_v1  ;;  %v3911_v47 = vunpack.i.l.bf16 %v3910_v1  ;;  %v5113_v22 = vpop.permute.xlu0 %3924 }
 0x1bb   :  { %v986_v19 = vsel %vm975_vm12, %v969_v8, %v3911_v47  ;;  %v987_v18 = vsel %vm975_vm12, %v970_v16, %v3912_v41  ;;  %v3927_v16 = vunpack.i.h.bf16 %v5113_v22 }
 0x1bc   :  { %v3930_v27 = vpop.permute.xlu1 %3929  ;;  %v1003_v28 = vsel %vm992_vm13, %v986_v19, %v3916_v50  ;;  %v1004_v30 = vsel %vm992_vm13, %v987_v18, %v3917_v14 }
 0x1bd   :  { %v1014_v54 = vpack.c.bf16 %v1004_v30, %v1003_v28  ;;  %v3945_v10 = vpop.permute.xlu0 %3944  ;;  %v3932_v26 = vunpack.i.h.bf16 %v3930_v27  ;;  %v3931_v49 = vunpack.i.l.bf16 %v3930_v27  ;;  %v3926_v28 = vunpack.i.l.bf16 %v5113_v22 }
 0x1be   :  { %v3947_v7 = vunpack.i.h.bf16 %v3945_v10  ;;  %v3946_v56 = vunpack.i.l.bf16 %v3945_v10 }
 0x1bf   :  { %3651 = vmatmul.mubr.msk.bf16.gmra.mxu1 %vm1060_vm14, %v1014_v54  ;;  %v940_v53 = vsel %vm924_vm9, %v923_v35, %v3932_v26 }
 0x1c0   :  { %v3935_v25 = vpop.permute.xlu1 %3934 }
 0x1c1   :  { %v3950_v33 = vpop.permute.xlu0 %3949  ;;  %v3937_v4 = vunpack.i.h.bf16 %v3935_v25  ;;  %v3936_v0 = vunpack.i.l.bf16 %v3935_v25 }
 0x1c2   :  { %v3952_v36 = vunpack.i.h.bf16 %v3950_v33  ;;  %v3951_v52 = vunpack.i.l.bf16 %v3950_v33 }
 0x1c3   :  { %v957_v1 = vsel %vm941_vm10, %v940_v53, %v3937_v4 }
 0x1c4   :  { %v3940_v20 = vpop.permute.xlu1 %3939  ;;  %v937_v14 = vsel %vm924_vm9, %v920_v5, %v3951_v52  ;;  %v974_v27 = vsel %vm958_vm11, %v957_v1, %v3752_v15 }
 0x1c5   :  { %v3942_v44 = vunpack.i.h.bf16 %v3940_v20  ;;  %v3941_v38 = vunpack.i.l.bf16 %v3940_v20  ;;  %v3955_v42 = vpop.permute.xlu0 %3954  ;;  %v991_v25 = vsel %vm975_vm12, %v974_v27, %v3797_v46 }
 0x1c6   :  { %v3957_v23 = vunpack.i.h.bf16 %v3955_v42  ;;  %v1008_v43 = vsel %vm992_vm13, %v991_v25, %v3802_v59 }
 0x1c7   :  { %v889_v31 = vsel %vm875_vm6, %v4899_v39, %v3942_v44  ;;  %v888_v13 = vsel %vm875_vm6, %v4865_v2, %v3941_v38  ;;  %v3956_v39 = vunpack.i.l.bf16 %v3955_v42 }
 0x1c8   :  { %v904_v55 = vsel %vm891_vm7, %v888_v13, %v3946_v56  ;;  %v905_v37 = vsel %vm891_vm7, %v889_v31, %v3947_v7  ;;  %v814_v60 = vpop.permute.xlu1 %813 }
 0x1c9   :  { %v921_v3 = vsel %vm907_vm8, %v904_v55, %v3922_v45  ;;  %v922_v61 = vsel %vm907_vm8, %v905_v37, %v3906_v21  ;;  %v3960_v8 = vpop.permute.xlu0 %3959  ;;  %v954_v50 = vsel %vm941_vm10, %v937_v14, %v3956_v39  ;;  %v5174_v21 = vld [vmem:[%s6745_s4] ss:$0 sm:$0xff] }
 0x1ca   :  { %v938_v62 = vsel %vm924_vm9, %v921_v3, %v3952_v36  ;;  %v939_v2 = vsel %vm924_vm9, %v922_v61, %v3931_v49  ;;  %v3962_v19 = vunpack.i.h.bf16 %v3960_v8  ;;  %v3961_v18 = vunpack.i.l.bf16 %v3960_v8 }
 0x1cb   :  { %v956_v17 = vsel %vm941_vm10, %v939_v2, %v3936_v0  ;;  %v955_v41 = vsel %vm941_vm10, %v938_v62, %v3957_v23  ;;  %v971_v10 = vsel %vm958_vm11, %v954_v50, %v3926_v28 }
 0x1cc   :  { %v973_v47 = vsel %vm958_vm11, %v956_v17, %v5096_v40  ;;  %v972_v54 = vsel %vm958_vm11, %v955_v41, %v3927_v16  ;;  %v859_v40 = vpop.permute.xlu1 %858  ;;  %v988_v9 = vsel %vm975_vm12, %v971_v10, %v3961_v18 }
 0x1cd   :  { %v990_v30 = vsel %vm975_vm12, %v973_v47, %v814_v60  ;;  %v3965_v11 = vpop.permute.xlu0 %3964  ;;  %v989_v15 = vsel %vm975_vm12, %v972_v54, %v3962_v19 }
 0x1ce   :  { %v3967_v12 = vunpack.i.h.bf16 %v3965_v11  ;;  %v3966_v58 = vunpack.i.l.bf16 %v3965_v11  ;;  %v1007_v22 = vsel %vm992_vm13, %v990_v30, %v859_v40 }
 0x1cf   :  { %v1016_v63 = vpack.c.bf16 %v1008_v43, %v1007_v22 }
 0x1d0   :  { %v1005_v32 = vsel %vm992_vm13, %v988_v9, %v3966_v58  ;;  %v1006_v34 = vsel %vm992_vm13, %v989_v15, %v3967_v12 }
 0x1d1   :  { %v1015_v26 = vpack.c.bf16 %v1006_v34, %v1005_v32 }
 0x1d3   :  { %3654 = vmatprep.mubr.msk.bf16.mxu1 %vm1060_vm14, %v1015_v26 }
 0x1d4   :  { %3655 = vmatmul.mubr.msk.bf16.gmra.mxu1 %vm1060_vm14, %v1016_v63 }
 0x237   :  { %v3644_v46 = vpop.f32.mrf.mxu1 }
 0x238   :  { %v1132_v38 = vadd.f32 %v3644_v46, %v5174_v21 }
 0x239   :  { %v1123_v33 = vpop.f32.mrf.mxu1 }
 0x23a   :  { %v1124_v6 = vadd.f32 %v5174_v21, %v1123_v33  ;;  %v1189_v56 = vsel %vm891_vm7, %v1132_v38, 0.0 }
 0x23b   :  { %v3645_v20 = vpop.f32.mrf.mxu1 }
 0x23c   :  { %v1186_v45 = vsel %vm891_vm7, %v1124_v6, 0.0  ;;  %v1135_v49 = vadd.f32 %v3645_v20, %v5174_v21 }
 0x23d   :  { %v1126_v35 = vpop.f32.mrf.mxu1 }
 0x23e   :  { %v1127_v44 = vadd.f32 %v5174_v21, %v1126_v35  ;;  %v1191_v36 = vsel %vm891_vm7, %v1135_v49, 0.0 }
 0x240   :  { %v1187_v59 = vsel %vm891_vm7, %v1127_v44, 0.0 }
 0x241   :  { %v1188_v48 = vadd.f32 %v1187_v59, %v1186_v45 }
 0x243   :  { %v1190_v4 = vadd.f32 %v1189_v56, %v1188_v48 }
 0x245   :  { %v1192_v37 = vadd.f32 %v1191_v36, %v1190_v4 }
 0x258   :  { %v3648_v7 = vpop.f32.mrf.mxu1 }
 0x259   :  { %v1148_v0 = vadd.f32 %v3648_v7, %v5174_v21 }
 0x25a   :  { %v1139_v31 = vpop.f32.mrf.mxu1 }
 0x25b   :  { %v1140_v13 = vadd.f32 %v5174_v21, %v1139_v31  ;;  %v1197_v39 = vsel %vm891_vm7, %v1148_v0, 0.0 }
 0x25c   :  { %v3649_v53 = vpop.f32.mrf.mxu1 }
 0x25d   :  { %v1193_v55 = vsel %vm891_vm7, %v1140_v13, 0.0  ;;  %v1151_v60 = vadd.f32 %v3649_v53, %v5174_v21 }
 0x25e   :  { %v1142_v42 = vpop.f32.mrf.mxu1  ;;  %v1194_v3 = vadd.f32 %v1193_v55, %v1192_v37 }
 0x25f   :  { %v1143_v52 = vadd.f32 %v5174_v21, %v1142_v42  ;;  %v1199_v2 = vsel %vm891_vm7, %v1151_v60, 0.0 }
 0x261   :  { %v1195_v61 = vsel %vm891_vm7, %v1143_v52, 0.0 }
 0x262   :  { %v1196_v23 = vadd.f32 %v1195_v61, %v1194_v3 }
 0x264   :  { %v1198_v62 = vadd.f32 %v1197_v39, %v1196_v23 }
 0x266   :  { %v1200_v24 = vadd.f32 %v1199_v2, %v1198_v62 }
 0x268   :  { %v1201_v1 = vrot.slane %v1200_v24, 4 }
 0x26a   :  { %v1202_v17 = vadd.f32 %v1201_v1, %v1200_v24 }
 0x26c   :  { %v1203_v5 = vrot.slane %v1202_v17, 2 }
 0x26e   :  { %v1204_v41 = vadd.f32 %v1203_v5, %v1202_v17 }
 0x270   :  { %v1205_v47 = vrot.slane %v1204_v41, 1 }
 0x272   :  { %v1206_v8 = vadd.f32 %v1205_v47, %v1204_v41 }
 0x274   :  { %v1229_v16 = vmul.f32 0.015625, %v1206_v8 }
 0x276   :  { %v5192_v14 = vsub.f32 %v1124_v6, %v1229_v16  ;;  %v5194_v50 = vsub.f32 %v1127_v44, %v1229_v16  ;;  %v5196_v19 = vsub.f32 %v1132_v38, %v1229_v16  ;;  %v5198_v18 = vsub.f32 %v1135_v49, %v1229_v16 }
 0x277   :  { %v5200_v27 = vsub.f32 %v1140_v13, %v1229_v16  ;;  %v5208_v40 = vsub.f32 %v1143_v52, %v1229_v16  ;;  %v5214_v58 = vsub.f32 %v1148_v0, %v1229_v16  ;;  %v5219_v32 = vsub.f32 %v1151_v60, %v1229_v16 }
 0x278   :  { %v1247_v28 = vmul.f32 %v5192_v14, %v5192_v14  ;;  %v1248_v30 = vmul.f32 %v5194_v50, %v5194_v50  ;;  %v1249_v54 = vmul.f32 %v5196_v19, %v5196_v19  ;;  %v1250_v11 = vmul.f32 %v5198_v18, %v5198_v18 }
 0x279   :  { %v1251_v9 = vmul.f32 %v5200_v27, %v5200_v27  ;;  %v1252_v34 = vmul.f32 %v5208_v40, %v5208_v40  ;;  %v1253_v46 = vmul.f32 %v5214_v58, %v5214_v58  ;;  %v1254_v35 = vmul.f32 %v5219_v32, %v5219_v32 }
 0x27a   :  { %v1263_v10 = vsel %vm891_vm7, %v1247_v28, 0.0  ;;  %v1264_v25 = vsel %vm891_vm7, %v1248_v30, 0.0  ;;  %v1266_v15 = vsel %vm891_vm7, %v1249_v54, 0.0  ;;  %v1268_v43 = vsel %vm891_vm7, %v1250_v11, 0.0 }
 0x27b   :  { %v1265_v12 = vadd.f32 %v1264_v25, %v1263_v10  ;;  %v1270_v33 = vsel %vm891_vm7, %v1251_v9, 0.0  ;;  %v1272_v44 = vsel %vm891_vm7, %v1252_v34, 0.0  ;;  %v1274_v38 = vsel %vm891_vm7, %v1253_v46, 0.0 }
 0x27c   :  { %v1276_v48 = vsel %vm891_vm7, %v1254_v35, 0.0  ;;  %v4533_v25 = vmov 0  }
 0x27d   :  { %v1267_v22 = vadd.f32 %v1266_v15, %v1265_v12  ;;  %2138 = vmatprep.subr.bf16.mxu0 %v4533_v25  ;;  %3168 = vmatprep.subr.bf16.mxu1 %v4533_v25 }
 0x27f   :  { %v1269_v26 = vadd.f32 %v1268_v43, %v1267_v22  ;;  %v3652_v63 = vpop.f32.mrf.mxu1 }
 0x280   :  { %v5241_v52 = vadd.f32 %v3652_v63, %v5174_v21  ;;  %v4495_v63 = vld [vmem:[%s6746_s5 + $0x30] sm:$0xff]  }
 0x281   :  { %v1271_v20 = vadd.f32 %v1270_v33, %v1269_v26  ;;  %v1155_v6 = vpop.f32.mrf.mxu1 }
 0x282   :  { %v5236_v55 = vadd.f32 %v5174_v21, %v1155_v6  ;;  %v1210_v62 = vsel %vm891_vm7, %v5241_v52, 0.0 }
 0x283   :  { %v1273_v59 = vadd.f32 %v1272_v44, %v1271_v20  ;;  %v3653_v7 = vpop.f32.mrf.mxu1  ;;  %v4496_v44 = vld [vmem:[%s6746_s5 + $0x28] sm:$0xff]  }
 0x284   :  { %v1207_v3 = vsel %vm891_vm7, %v5236_v55, 0.0  ;;  %v5248_v2 = vadd.f32 %v3653_v7, %v5174_v21 }
 0x285   :  { %v1275_v45 = vadd.f32 %v1274_v38, %v1273_v59  ;;  %v1158_v4 = vpop.f32.mrf.mxu1 }
 0x286   :  { %v5233_v53 = vadd.f32 %v5174_v21, %v1158_v4  ;;  %v1212_v41 = vsel %vm891_vm7, %v5248_v2, 0.0 }
 0x287   :  { %v1277_v56 = vadd.f32 %v1276_v48, %v1275_v45 }
 0x288   :  { %v1208_v42 = vsel %vm891_vm7, %v5233_v53, 0.0 }
 0x289   :  { %v1278_v49 = vrot.slane %v1277_v56, 4  ;;  %v1209_v60 = vadd.f32 %v1208_v42, %v1207_v3 }
 0x28b   :  { %v1279_v31 = vadd.f32 %v1278_v49, %v1277_v56  ;;  %v1211_v24 = vadd.f32 %v1210_v62, %v1209_v60 }
 0x28d   :  { %v1280_v13 = vrot.slane %v1279_v31, 2  ;;  %v1213_v8 = vadd.f32 %v1212_v41, %v1211_v24 }
 0x28f   :  { %v1281_v36 = vadd.f32 %v1280_v13, %v1279_v31 }
 0x291   :  { %v1282_v37 = vrot.slane %v1281_v36, 1 }
 0x293   :  { %v1283_v0 = vadd.f32 %v1282_v37, %v1281_v36 }
 0x294   :  { %v3656_v23 = vpop.f32.mrf.mxu1 }
 0x295   :  { %v1305_v61 = vmul.f32 0.015625, %v1283_v0  ;;  %v5258_v28 = vadd.f32 %v3656_v23, %v5174_v21 }
 0x296   :  { %v1171_v1 = vpop.f32.mrf.mxu1 }
 0x297   :  { %v1307_v39 = vadd.f32 1e-05, %v1305_v61  ;;  %v5251_v17 = vadd.f32 %v5174_v21, %v1171_v1  ;;  %v1218_v9 = vsel %vm891_vm7, %v5258_v28, 0.0  ;;  %v4497_v1 = vld [vmem:[%s6746_s5 + $0x20] sm:$0xff]  }
 0x298   :  { %v3657_v5 = vpop.f32.mrf.mxu1 }
 0x299   :  { %4512 = vrsqrt.f32 %v1307_v39  ;;  %v1214_v47 = vsel %vm891_vm7, %v5251_v17, 0.0  ;;  %v5264_v11 = vadd.f32 %v3657_v5, %v5174_v21 }
 0x29a   :  { %v1174_v16 = vpop.f32.mrf.mxu1  ;;  %v1215_v54 = vadd.f32 %v1214_v47, %v1213_v8 }
 0x29b   :  { %v5261_v30 = vadd.f32 %v5174_v21, %v1174_v16  ;;  %v1220_v22 = vsel %vm891_vm7, %v5264_v11, 0.0  ;;  %v4494_v21 = vld [vmem:[%s6746_s5 + $0x38] sm:$0xff]  }
 0x29c   :  { %2139 = vmatpush1.bf16.msra.mxu0 %v4494_v21 }
 0x29d   :  { %v1216_v10 = vsel %vm891_vm7, %v5261_v30, 0.0  ;;  %2140 = vmatprep.subr.bf16.mxu0 %v4533_v25 }
 0x29e   :  { %v1217_v12 = vadd.f32 %v1216_v10, %v1215_v54 }
 0x2a0   :  { %v1219_v15 = vadd.f32 %v1218_v9, %v1217_v12  ;;  %2141 = vmatpush1.bf16.msra.mxu0 %v4495_v63 }
 0x2a1   :  { %2142 = vmatprep.subr.bf16.mxu0 %v4533_v25 }
 0x2a2   :  { %v1221_v34 = vadd.f32 %v1220_v22, %v1219_v15 }
 0x2a4   :  { %v1222_v26 = vrot.slane %v1221_v34, 4  ;;  %2143 = vmatpush1.bf16.msra.mxu0 %v4496_v44 }
 0x2a5   :  { %2144 = vmatprep.subr.bf16.mxu0 %v4533_v25 }
 0x2a6   :  { %v4513_v43 = vpop.eup %4512  ;;  %v1223_v6 = vadd.f32 %v1222_v26, %v1221_v34 }
 0x2a7   :  { %v1316_v46 = vmul.f32 %v4513_v43, %v5208_v40  ;;  %v1312_v33 = vmul.f32 %v4513_v43, %v5194_v50  ;;  %v1313_v20 = vmul.f32 %v4513_v43, %v5196_v19  ;;  %v1311_v35 = vmul.f32 %v4513_v43, %v5192_v14 }
 0x2a8   :  { %v1314_v59 = vmul.f32 %v4513_v43, %v5198_v18  ;;  %v1224_v7 = vrot.slane %v1223_v6, 2  ;;  %v1315_v40 = vmul.f32 %v4513_v43, %v5200_v27  ;;  %v1317_v49 = vmul.f32 %v4513_v43, %v5214_v58  ;;  %2145 = vmatpush1.bf16.msra.mxu0 %v4497_v1 }
 0x2a9   :  { %v1332_v38 = vmul.f32 0.2, %v1316_v46  ;;  %v1328_v45 = vmul.f32 0.2, %v1312_v33  ;;  %v1329_v48 = vmul.f32 0.2, %v1313_v20  ;;  %v5310_v24 = vmul.f32 %v4513_v43, %v5219_v32  ;;  %2146 = vmatprep.subr.bf16.mxu0 %v4533_v25 }
 0x2aa   :  { %v1327_v56 = vmul.f32 0.2, %v1311_v35  ;;  %v1330_v14 = vmul.f32 0.2, %v1314_v59  ;;  %v1225_v4 = vadd.f32 %v1224_v7, %v1223_v6  ;;  %v1331_v0 = vmul.f32 0.2, %v1315_v40 }
 0x2ab   :  { %v1344_v50 = vmax.f32 %v1312_v33, %v1328_v45  ;;  %v1345_v19 = vmax.f32 %v1313_v20, %v1329_v48  ;;  %v1348_v13 = vmax.f32 %v1316_v46, %v1332_v38  ;;  %v1333_v58 = vmul.f32 0.2, %v1317_v49  ;;  %v4499_v48 = vld [vmem:[%s6746_s5 + $0x10] sm:$0xff]  }
 0x2ac   :  { %v1343_v31 = vmax.f32 %v1311_v35, %v1327_v56  ;;  %v1226_v37 = vrot.slane %v1225_v4, 1  ;;  %v1346_v60 = vmax.f32 %v1314_v59, %v1330_v14  ;;  %v1347_v8 = vmax.f32 %v1315_v40, %v1331_v0 }
 0x2ad   :  { %v1376_v36 = vrot.slane %v1344_v50, 7  ;;  %v1377_v18 = vrot.slane %v1345_v19, 7  ;;  %v5301_v23 = vrot.slane %v1348_v13, 7  ;;  %v1349_v10 = vmax.f32 %v1317_v49, %v1333_v58 }
 0x2ae   :  { %v5292_v42 = vrot.slane %v1343_v31, 7  ;;  %v1227_v61 = vadd.f32 %v1226_v37, %v1225_v4  ;;  %v5325_v54 = vrot.slane %v1346_v60, 7  ;;  %v5367_v46 = vrot.slane %v1347_v8, 7 }
 0x2af   :  { %v5296_v27 = vsel %vm333_vm2, 0.0, %v1376_v36  ;;  %v5299_v3 = vsel %vm333_vm2, 0.0, %v1377_v18  ;;  %v5316_v41 = vsel %vm333_vm2, %v1376_v36, 0.0  ;;  %v5321_v16 = vsel %vm333_vm2, %v1377_v18, 0.0 }
 0x2b0   :  { %v3973_v39 = vpack.i.bf16 %v5299_v3, %v5296_v27  ;;  %v5307_v62 = vsel %vm333_vm2, 0.0, %v5292_v42  ;;  %v1230_v5 = vmul.f32 0.015625, %v1227_v61  ;;  %v1557_v32 = vrot.slane %v5296_v27, 2 }
 0x2b1   :  { %v3968_v47 = vpack.i.bf16 %v5296_v27, %v5307_v62  ;;  %v1560_v43 = vrot.slane %v5299_v3, 2  ;;  %v5361_v26 = vsel %vm333_vm2, 0.0, %v5301_v23  ;;  %v5365_v63 = vsel %vm333_vm2, 0.0, %v5325_v54 }
 0x2b2   :  { %3974 = vrot.lane.b32.xlu1 %v3973_v39, %s4534_s27  ;;  %v5328_v12 = vsub.f32 %v5236_v55, %v1230_v5  ;;  %v5331_v9 = vsub.f32 %v5233_v53, %v1230_v5  ;;  %v5334_v15 = vsub.f32 %v5241_v52, %v1230_v5  ;;  %v5337_v22 = vsub.f32 %v5248_v2, %v1230_v5  ;;  %v4498_v53 = vld [vmem:[%s6746_s5 + $0x18] sm:$0xff]  }
 0x2b3   :  { %3969 = vrot.lane.b32.xlu0 %v3968_v47, %s4529_s23  ;;  %v5341_v21 = vsub.f32 %v5251_v17, %v1230_v5  ;;  %v5344_v34 = vsub.f32 %v5261_v30, %v1230_v5  ;;  %v1558_v55 = vrot.slane %v5316_v41, 2  ;;  %v1561_v30 = vrot.slane %v5321_v16, 2  ;;  %2147 = vmatpush1.bf16.msra.mxu0 %v4498_v53 }
 0x2b4   :  { %v1255_v52 = vmul.f32 %v5328_v12, %v5328_v12  ;;  %v1256_v2 = vmul.f32 %v5331_v9, %v5331_v9  ;;  %v1257_v17 = vmul.f32 %v5334_v15, %v5334_v15  ;;  %v5369_v33 = vrot.slane %v1349_v10, 7  ;;  %2148 = vmatprep.subr.bf16.mxu0 %v4533_v25 }
 0x2b5   :  { %v5372_v20 = vsub.f32 %v5258_v28, %v1230_v5  ;;  %v1258_v35 = vmul.f32 %v5337_v22, %v5337_v22  ;;  %v5380_v59 = vsub.f32 %v5264_v11, %v1230_v5  ;;  %v1259_v38 = vmul.f32 %v5341_v21, %v5341_v21 }
 0x2b6   :  { %v1284_v44 = vsel %vm891_vm7, %v1255_v52, 0.0  ;;  %v1285_v6 = vsel %vm891_vm7, %v1256_v2, 0.0  ;;  %v1260_v45 = vmul.f32 %v5344_v34, %v5344_v34  ;;  %v1287_v7 = vsel %vm891_vm7, %v1257_v17, 0.0 }
 0x2b7   :  { %v1286_v28 = vadd.f32 %v1285_v6, %v1284_v44  ;;  %v5391_v56 = vsel %vm489_vm3, %v1557_v32, %v1558_v55  ;;  %v5394_v40 = vsel %vm489_vm3, %v1560_v43, %v1561_v30  ;;  %v3978_v11 = vpack.i.bf16 %v5365_v63, %v5299_v3  ;;  %2149 = vmatpush1.bf16.msra.mxu0 %v4499_v48 }
 0x2b8   :  { %v2020_v19 = vpack.c.bf16 %v5394_v40, %v5391_v56  ;;  %v5402_v14 = vsel %vm333_vm2, 0.0, %v5367_v46  ;;  %v5406_v49 = vsel %vm333_vm2, 0.0, %v5369_v33  ;;  %v1289_v4 = vsel %vm891_vm7, %v1258_v35, 0.0  ;;  %2150 = vmatprep.subr.bf16.mxu0 %v4533_v25  ;;  %v4501_v35 = vld [vmem:[%s6746_s5] sm:$0xff]  }
 0x2b9   :  { %v1288_v50 = vadd.f32 %v1287_v7, %v1286_v28  ;;  %3979 = vrot.lane.b32.xlu1 %v3978_v11, %s4529_s23  ;;  %v3983_v31 = vpack.i.bf16 %v5402_v14, %v5365_v63  ;;  %v1334_v13 = vmul.f32 0.2, %v5310_v24  ;;  %v1423_v18 = vsel %vm333_vm2, %v5292_v42, 0.0 }
 0x2ba   :  { %3558 = vmatprep.mubr.msk.bf16.mxu0 %vm891_vm7, %v2020_v19  ;;  %v1261_v37 = vmul.f32 %v5372_v20, %v5372_v20  ;;  %v1291_v0 = vsel %vm891_vm7, %v1259_v38, 0.0  ;;  %v3993_v60 = vpack.i.bf16 %v5406_v49, %v5361_v26  ;;  %v1262_v61 = vmul.f32 %v5380_v59, %v5380_v59 }
 0x2bb   :  { %v1290_v36 = vadd.f32 %v1289_v4, %v1288_v50  ;;  %3984 = vrot.lane.b32.xlu0 %v3983_v31, %s4534_s27  ;;  %v1350_v58 = vmax.f32 %v5310_v24, %v1334_v13  ;;  %v1293_v1 = vsel %vm891_vm7, %v1260_v45, 0.0  ;;  %v3988_v42 = vpack.i.bf16 %v5361_v26, %v5402_v14  ;;  %v4500_v24 = vld [vmem:[%s6746_s5 + $0x8] sm:$0xff]   ;;  %v4502_v13 = vld [vmem:[%s6746_s5 + $0x40] sm:$0xff]   ;;  %s4535_s5 = smov 80  }
 0x2bc   :  { %v1554_v47 = vrot.slane %v5307_v62, 2  ;;  %v1555_v8 = vrot.slane %v1423_v18, 2  ;;  %v1467_v10 = vrot.slane %v5307_v62, 1  ;;  %v1468_v55 = vrot.slane %v1423_v18, 1  ;;  %2151 = vmatpush1.bf16.msra.mxu0 %v4500_v24 }
 0x2bd   :  { %v1292_v39 = vadd.f32 %v1291_v0, %v1290_v36  ;;  %3994 = vrot.lane.b32.xlu1 %v3993_v60, %s4534_s27  ;;  %v5430_v5 = vrot.slane %v1350_v58, 7  ;;  %v1295_v43 = vsel %vm891_vm7, %v1261_v37, 0.0  ;;  %v1470_v52 = vrot.slane %v5296_v27, 1  ;;  %2152 = vmatprep.subr.bf16.mxu0 %v4533_v25 }
 0x2be   :  { %v1471_v2 = vrot.slane %v5316_v41, 1  ;;  %v1297_v44 = vsel %vm891_vm7, %v1262_v61, 0.0  ;;  %v1556_v38 = vsel %vm489_vm3, %v1554_v47, %v1555_v8  ;;  %v1469_v41 = vsel %vm398_vm4, %v1467_v10, %v1468_v55 }
 0x2bf   :  { %v1294_v32 = vadd.f32 %v1293_v1, %v1292_v39  ;;  %3989 = vrot.lane.b32.xlu0 %v3988_v42, %s4529_s23  ;;  %v5441_v53 = vsel %vm333_vm2, 0.0, %v5430_v5  ;;  %v5459_v28 = vsel %vm333_vm2, %v5301_v23, 0.0  ;;  %v1473_v7 = vrot.slane %v5299_v3, 1 }
 0x2c0   :  { %v3998_v30 = vpack.i.bf16 %v5441_v53, %v5406_v49  ;;  %v4003_v6 = vpack.i.bf16 %v4649_v29, %v5441_v53  ;;  %v1472_v48 = vsel %vm398_vm4, %v1470_v52, %v1471_v2  ;;  %v1474_v11 = vrot.slane %v5321_v16, 1  ;;  %2153 = vmatpush1.bf16.msra.mxu0 %v4501_v35 }
 0x2c1   :  { %v1296_v17 = vadd.f32 %v1295_v43, %v1294_v32  ;;  %v4013_v19 = vpack.i.bf16 %v1556_v38, %v4668_v51  ;;  %v1426_v4 = vsel %vm333_vm2, %v5325_v54, 0.0  ;;  %2168 = vmatprep.subr.bf16.mxu0 %v4533_v25  ;;  %v4008_v23 = vpack.i.bf16 %v1469_v41, %v4678_v57 }
 0x2c2   :  { %3999 = vrot.lane.b32.xlu1 %v3998_v30, %s4529_s23  ;;  %v1427_v31 = vsel %vm333_vm2, %v5367_v46, 0.0  ;;  %v1570_v16 = vrot.slane %v5459_v28, 2  ;;  %v4018_v18 = vpack.i.bf16 %v1472_v48, %v1469_v41  ;;  %v1475_v54 = vsel %vm398_vm4, %v1473_v7, %v1474_v11 }
 0x2c3   :  { %v1298_v45 = vadd.f32 %v1297_v44, %v1296_v17  ;;  %4004 = vrot.lane.b32.xlu0 %v4003_v6, %s4534_s27  ;;  %v1563_v37 = vrot.slane %v5365_v63, 2  ;;  %v1564_v0 = vrot.slane %v1426_v4, 2  ;;  %v1429_v46 = vsel %vm333_vm2, %v5369_v33, 0.0 }
 0x2c4   :  { %2169 = vmatpush2.bf16.msra.mxu0 %v4502_v13  ;;  %v1566_v58 = vrot.slane %v5402_v14, 2  ;;  %v1567_v61 = vrot.slane %v1427_v31, 2  ;;  %v1569_v39 = vrot.slane %v5361_v26, 2  ;;  %v4023_v1 = vpack.i.bf16 %v5391_v56, %v1556_v38 }
 0x2c5   :  { %v1299_v50 = vrot.slane %v1298_v45, 4  ;;  %v1572_v42 = vrot.slane %v5406_v49, 2  ;;  %v1573_v47 = vrot.slane %v1429_v46, 2  ;;  %v4033_v24 = vpack.i.bf16 %v1475_v54, %v1472_v48 }
 0x2c6   :  { %4014 = vrot.lane.b32.xlu1 %v4013_v19, %s4528_s22  ;;  %v5489_v33 = vsel %vm489_vm3, %v1563_v37, %v1564_v0  ;;  %v5492_v10 = vsel %vm489_vm3, %v1566_v58, %v1567_v61  ;;  %v5495_v55 = vsel %vm489_vm3, %v1569_v39, %v1570_v16  ;;  %v1476_v52 = vrot.slane %v5365_v63, 1 }
 0x2c7   :  { %v1300_v36 = vadd.f32 %v1299_v50, %v1298_v45  ;;  %4009 = vrot.lane.b32.xlu0 %v4008_v23, %s4526_s2  ;;  %v5498_v43 = vsel %vm489_vm3, %v1572_v42, %v1573_v47  ;;  %v1477_v2 = vrot.slane %v1426_v4, 1  ;;  %v1479_v17 = vrot.slane %v5402_v14, 1 }
 0x2c8   :  { %v1480_v30 = vrot.slane %v1427_v31, 1  ;;  %v2022_v44 = vpack.c.bf16 %v5492_v10, %v5489_v33  ;;  %v2024_v6 = vpack.c.bf16 %v5498_v43, %v5495_v55  ;;  %v4048_v45 = vpack.i.bf16 %v5489_v33, %v5394_v40 }
 0x2c9   :  { %v1301_v60 = vrot.slane %v1300_v36, 2  ;;  %v4038_v41 = vpack.i.bf16 %v5394_v40, %v5391_v56  ;;  %v1478_v48 = vsel %vm398_vm4, %v1476_v52, %v1477_v2  ;;  %v1483_v19 = vrot.slane %v5459_v28, 1 }
 0x2ca   :  { %4019 = vrot.lane.b32.xlu1 %v4018_v18, %s4532_s26  ;;  %v1481_v7 = vsel %vm398_vm4, %v1479_v17, %v1480_v30  ;;  %v4043_v4 = vpack.i.bf16 %v1478_v48, %v1475_v54  ;;  %v1482_v23 = vrot.slane %v5361_v26, 1  ;;  %v1430_v56 = vsel %vm333_vm2, %v5430_v5, 0.0 }
 0x2cb   :  { %v1302_v8 = vadd.f32 %v1301_v60, %v1300_v36  ;;  %4024 = vrot.lane.b32.xlu0 %v4023_v1, %s4535_s5  ;;  %v4053_v50 = vpack.i.bf16 %v1481_v7, %v1478_v48  ;;  %v4063_v40 = vpack.i.bf16 %v5492_v10, %v5489_v33  ;;  %v1485_v13 = vrot.slane %v5406_v49, 1 }
 0x2cc   :  { %v1484_v31 = vsel %vm398_vm4, %v1482_v23, %v1483_v19  ;;  %v1486_v16 = vrot.slane %v1429_v46, 1  ;;  %v1747_v28 = vrot.slane %v5441_v53, 2  ;;  %v1748_v36 = vrot.slane %v1430_v56, 2 }
 0x2cd   :  { %v1303_v32 = vrot.slane %v1302_v8, 1  ;;  %v4068_v18 = vpack.i.bf16 %v1484_v31, %v1481_v7  ;;  %v4073_v54 = vpack.i.bf16 %v5495_v55, %v5492_v10  ;;  %v1693_v58 = vrot.slane %v5441_v53, 1 }
 0x2ce   :  { %4034 = vrot.lane.b32.xlu1 %v4033_v24, %s4526_s2  ;;  %v1487_v5 = vsel %vm398_vm4, %v1485_v13, %v1486_v16  ;;  %v5534_v37 = vsel %vm489_vm3, %v1747_v28, %v1748_v36  ;;  %v1694_v61 = vrot.slane %v1430_v56, 1 }
 0x2cf   :  { %v1304_v35 = vadd.f32 %v1303_v32, %v1302_v8  ;;  %4029 = vrot.lane.b32.xlu0 %v4033_v24, %s4536_s17  ;;  %v4083_v0 = vpack.i.bf16 %v1487_v5, %v1484_v31  ;;  %v4098_v60 = vpack.i.bf16 %v5534_v37, %v5498_v43  ;;  %v4088_v8 = vpack.i.bf16 %v5498_v43, %v5495_v55 }
 0x2d1   :  { %v1306_v38 = vmul.f32 0.015625, %v1304_v35 }
 0x2d2   :  { %4049 = vrot.lane.b32.xlu1 %v4048_v45, %s4535_s5 }
 0x2d3   :  { %v1308_v11 = vadd.f32 1e-05, %v1306_v38  ;;  %4039 = vrot.lane.b32.xlu0 %v4038_v41, %s4528_s22 }
 0x2d5   :  { %4514 = vrsqrt.f32 %v1308_v11 }
 0x2d6   :  { %4054 = vrot.lane.b32.xlu1 %v4053_v50, %s4536_s17 }
 0x2d7   :  { %4044 = vrot.lane.b32.xlu0 %v4043_v4, %s4532_s26 }
 0x2da   :  { %4064 = vrot.lane.b32.xlu1 %v4063_v40, %s4528_s22 }
 0x2db   :  { %4059 = vrot.lane.b32.xlu0 %v4053_v50, %s4526_s2 }
 0x2de   :  { %4069 = vrot.lane.b32.xlu1 %v4068_v18, %s4532_s26 }
 0x2df   :  { %4074 = vrot.lane.b32.xlu0 %v4073_v54, %s4535_s5 }
 0x2e2   :  { %v4515_v46 = vpop.eup %4514  ;;  %4084 = vrot.lane.b32.xlu1 %v4083_v0, %s4526_s2 }
 0x2e3   :  { %v1324_v39 = vmul.f32 %v4515_v46, %v5344_v34  ;;  %v1320_v1 = vmul.f32 %v4515_v46, %v5331_v9  ;;  %v1321_v42 = vmul.f32 %v4515_v46, %v5334_v15  ;;  %v1319_v47 = vmul.f32 %v4515_v46, %v5328_v12  ;;  %4079 = vrot.lane.b32.xlu0 %v4083_v0, %s4536_s17 }
 0x2e4   :  { %v1322_v24 = vmul.f32 %v4515_v46, %v5337_v22  ;;  %v1323_v53 = vmul.f32 %v4515_v46, %v5341_v21  ;;  %v1325_v32 = vmul.f32 %v4515_v46, %v5372_v20  ;;  %v1326_v9 = vmul.f32 %v4515_v46, %v5380_v59 }
 0x2e5   :  { %v1340_v34 = vmul.f32 0.2, %v1324_v39  ;;  %v1336_v52 = vmul.f32 0.2, %v1320_v1  ;;  %v1337_v2 = vmul.f32 0.2, %v1321_v42  ;;  %v1695_v15 = vsel %vm398_vm4, %v1693_v58, %v1694_v61 }
 0x2e6   :  { %v1335_v17 = vmul.f32 0.2, %v1319_v47  ;;  %v1338_v12 = vmul.f32 0.2, %v1322_v24  ;;  %v1339_v30 = vmul.f32 0.2, %v1323_v53  ;;  %4099 = vrot.lane.b32.xlu1 %v4098_v60, %s4535_s5  ;;  %v4103_v41 = vpack.i.bf16 %v4678_v57, %v1695_v15 }
 0x2e7   :  { %v1352_v35 = vmax.f32 %v1320_v1, %v1336_v52  ;;  %v1353_v38 = vmax.f32 %v1321_v42, %v1337_v2  ;;  %v1341_v45 = vmul.f32 0.2, %v1325_v32  ;;  %4089 = vrot.lane.b32.xlu0 %v4088_v8, %s4528_s22  ;;  %v1342_v59 = vmul.f32 0.2, %v1326_v9 }
 0x2e8   :  { %v1351_v22 = vmax.f32 %v1319_v47, %v1335_v17  ;;  %v1354_v21 = vmax.f32 %v1322_v24, %v1338_v12  ;;  %v1355_v20 = vmax.f32 %v1323_v53, %v1339_v30  ;;  %v1356_v11 = vmax.f32 %v1324_v39, %v1340_v34 }
 0x2e9   :  { %v1384_v48 = vrot.slane %v1352_v35, 7  ;;  %v1385_v7 = vrot.slane %v1353_v38, 7  ;;  %v4093_v50 = vpack.i.bf16 %v1695_v15, %v1487_v5  ;;  %v1357_v31 = vmax.f32 %v1325_v32, %v1341_v45 }
 0x2ea   :  { %v1383_v19 = vrot.slane %v1351_v22, 7  ;;  %v1386_v4 = vrot.slane %v1354_v21, 7  ;;  %4104 = vrot.lane.b32.xlu1 %v4103_v41, %s4536_s17  ;;  %v1387_v40 = vrot.slane %v1355_v20, 7  ;;  %v1358_v16 = vmax.f32 %v1326_v9, %v1342_v59 }
 0x2eb   :  { %v5558_v23 = vsel %vm333_vm2, 0.0, %v1384_v48  ;;  %v5561_v56 = vsel %vm333_vm2, 0.0, %v1385_v7  ;;  %4094 = vrot.lane.b32.xlu0 %v4093_v50, %s4532_s26  ;;  %v1388_v28 = vrot.slane %v1356_v11, 7  ;;  %v1389_v5 = vrot.slane %v1357_v31, 7 }
 0x2ec   :  { %v4113_v57 = vpack.i.bf16 %v5561_v56, %v5558_v23  ;;  %v5567_v13 = vsel %vm333_vm2, 0.0, %v1383_v19  ;;  %v5572_v18 = vsel %vm333_vm2, 0.0, %v1386_v4  ;;  %v5576_v54 = vsel %vm333_vm2, 0.0, %v1387_v40 }
 0x2ed   :  { %v4108_v36 = vpack.i.bf16 %v5558_v23, %v5567_v13  ;;  %v1432_v0 = vsel %vm333_vm2, %v1384_v48, 0.0  ;;  %v1431_v46 = vsel %vm333_vm2, %v1383_v19, 0.0  ;;  %v4118_v60 = vpack.i.bf16 %v5572_v18, %v5561_v56 }
 0x2ee   :  { %4114 = vrot.lane.b32.xlu1 %v4113_v57, %s4534_s27  ;;  %v5583_v58 = vrot.slane %v1358_v16, 7  ;;  %v5586_v61 = vsel %vm333_vm2, 0.0, %v1388_v28  ;;  %v4123_v39 = vpack.i.bf16 %v5576_v54, %v5572_v18  ;;  %v5591_v1 = vsel %vm333_vm2, 0.0, %v1389_v5 }
 0x2ef   :  { %4109 = vrot.lane.b32.xlu0 %v4108_v36, %s4529_s23  ;;  %v1488_v42 = vrot.slane %v5567_v13, 1  ;;  %v1489_v47 = vrot.slane %v1431_v46, 1  ;;  %v1491_v8 = vrot.slane %v5558_v23, 1  ;;  %v1492_v24 = vrot.slane %v1432_v0, 1 }
 0x2f0   :  { %v1575_v53 = vrot.slane %v5567_v13, 2  ;;  %v1576_v32 = vrot.slane %v1431_v46, 2  ;;  %v1578_v34 = vrot.slane %v5558_v23, 2  ;;  %v1579_v52 = vrot.slane %v1432_v0, 2 }
 0x2f1   :  { %v4133_v2 = vpack.i.bf16 %v5591_v1, %v5586_v61  ;;  %v5603_v9 = vsel %vm333_vm2, 0.0, %v5583_v58  ;;  %v1433_v15 = vsel %vm333_vm2, %v1385_v7, 0.0  ;;  %v1434_v17 = vsel %vm333_vm2, %v1386_v4, 0.0 }
 0x2f2   :  { %4119 = vrot.lane.b32.xlu1 %v4118_v60, %s4529_s23  ;;  %v4128_v12 = vpack.i.bf16 %v5586_v61, %v5576_v54  ;;  %v1436_v30 = vsel %vm333_vm2, %v1388_v28, 0.0  ;;  %v1435_v35 = vsel %vm333_vm2, %v1387_v40, 0.0  ;;  %v1490_v38 = vsel %vm398_vm4, %v1488_v42, %v1489_v47 }
 0x2f3   :  { %4124 = vrot.lane.b32.xlu0 %v4123_v39, %s4534_s27  ;;  %v1493_v45 = vsel %vm398_vm4, %v1491_v8, %v1492_v24  ;;  %v4138_v22 = vpack.i.bf16 %v5603_v9, %v5591_v1  ;;  %v1577_v21 = vsel %vm489_vm3, %v1575_v53, %v1576_v32  ;;  %v5619_v20 = vsel %vm489_vm3, %v1578_v34, %v1579_v52 }
 0x2f4   :  { %v1581_v41 = vrot.slane %v5561_v56, 2  ;;  %v1582_v48 = vrot.slane %v1433_v15, 2  ;;  %v1584_v7 = vrot.slane %v5572_v18, 2  ;;  %v1585_v59 = vrot.slane %v1434_v17, 2 }
 0x2f5   :  { %v1591_v11 = vrot.slane %v1436_v30, 2  ;;  %v4143_v50 = vpack.i.bf16 %v1493_v45, %v1490_v38  ;;  %v1587_v19 = vrot.slane %v5576_v54, 2  ;;  %v1588_v4 = vrot.slane %v1435_v35, 2 }
 0x2f6   :  { %4134 = vrot.lane.b32.xlu1 %v4133_v2, %s4534_s27  ;;  %v1437_v40 = vsel %vm333_vm2, %v1389_v5, 0.0  ;;  %v1494_v31 = vrot.slane %v5561_v56, 1  ;;  %v1495_v57 = vrot.slane %v1433_v15, 1  ;;  %v1590_v16 = vrot.slane %v5586_v61, 2 }
 0x2f7   :  { %4129 = vrot.lane.b32.xlu0 %v4128_v12, %s4529_s23  ;;  %v4148_v28 = vpack.i.bf16 %v5619_v20, %v1577_v21  ;;  %v1497_v36 = vrot.slane %v5572_v18, 1  ;;  %v5632_v0 = vsel %vm489_vm3, %v1581_v41, %v1582_v48  ;;  %v5635_v46 = vsel %vm489_vm3, %v1584_v7, %v1585_v59 }
 0x2f8   :  { %v5638_v5 = vsel %vm489_vm3, %v1587_v19, %v1588_v4  ;;  %v1593_v60 = vrot.slane %v5591_v1, 2  ;;  %v1498_v39 = vrot.slane %v1434_v17, 1  ;;  %v5642_v42 = vsel %vm489_vm3, %v1590_v16, %v1591_v11 }
 0x2f9   :  { %v1594_v47 = vrot.slane %v1437_v40, 2  ;;  %v1496_v8 = vsel %vm398_vm4, %v1494_v31, %v1495_v57  ;;  %v2028_v53 = vpack.c.bf16 %v5632_v0, %v5619_v20  ;;  %v2030_v32 = vpack.c.bf16 %v5638_v5, %v5635_v46 }
 0x2fa   :  { %4139 = vrot.lane.b32.xlu1 %v4138_v22, %s4529_s23  ;;  %v4163_v52 = vpack.i.bf16 %v1496_v8, %v1493_v45  ;;  %v1499_v2 = vsel %vm398_vm4, %v1497_v36, %v1498_v39  ;;  %v4173_v17 = vpack.i.bf16 %v5635_v46, %v5632_v0  ;;  %v1500_v12 = vrot.slane %v5576_v54, 1 }
 0x2fb   :  { %4144 = vrot.lane.b32.xlu0 %v4143_v50, %s4526_s2  ;;  %v5648_v24 = vsel %vm489_vm3, %v1593_v60, %v1594_v47  ;;  %v4168_v15 = vpack.i.bf16 %v1499_v2, %v1496_v8  ;;  %v1501_v38 = vrot.slane %v1435_v35, 1  ;;  %v1504_v22 = vrot.slane %v1436_v30, 1 }
 0x2fc   :  { %v2032_v34 = vpack.c.bf16 %v5648_v24, %v5642_v42  ;;  %v1503_v21 = vrot.slane %v5586_v61, 1  ;;  %v1506_v30 = vrot.slane %v5591_v1, 1  ;;  %v1507_v35 = vrot.slane %v1437_v40, 1 }
 0x2fd   :  { %v1502_v45 = vsel %vm398_vm4, %v1500_v12, %v1501_v38  ;;  %v4198_v59 = vpack.i.bf16 %v5642_v42, %v5638_v5  ;;  %v1750_v4 = vrot.slane %v5603_v9, 2  ;;  %v1696_v40 = vrot.slane %v5603_v9, 1 }
 0x2fe   :  { %4149 = vrot.lane.b32.xlu1 %v4148_v28, %s4528_s22  ;;  %v1505_v41 = vsel %vm398_vm4, %v1503_v21, %v1504_v22  ;;  %v4188_v48 = vpack.i.bf16 %v1502_v45, %v1499_v2  ;;  %v1508_v11 = vsel %vm398_vm4, %v1506_v30, %v1507_v35 }
 0x2ff   :  { %4159 = vrot.lane.b32.xlu0 %v4148_v28, %s4535_s5  ;;  %v4193_v7 = vpack.i.bf16 %v1505_v41, %v1502_v45  ;;  %v4213_v19 = vpack.i.bf16 %v1508_v11, %v1505_v41 }
 0x302   :  { %4154 = vrot.lane.b32.xlu1 %v4143_v50, %s4532_s26  ;;  %v1438_v50 = vsel %vm333_vm2, %v5583_v58, 0.0 }
 0x303   :  { %4164 = vrot.lane.b32.xlu0 %v4163_v52, %s4536_s17  ;;  %v1751_v31 = vrot.slane %v1438_v50, 2  ;;  %v1697_v57 = vrot.slane %v1438_v50, 1 }
 0x305   :  { %v5684_v16 = vsel %vm489_vm3, %v1750_v4, %v1751_v31  ;;  %v1698_v58 = vsel %vm398_vm4, %v1696_v40, %v1697_v57 }
 0x306   :  { %4169 = vrot.lane.b32.xlu1 %v4168_v15, %s4526_s2  ;;  %v4223_v28 = vpack.i.bf16 %v5684_v16, %v5648_v24  ;;  %v4218_v36 = vpack.i.bf16 %v1698_v58, %v1508_v11 }
 0x307   :  { %4174 = vrot.lane.b32.xlu0 %v4173_v17, %s4528_s22 }
 0x30a   :  { %4184 = vrot.lane.b32.xlu1 %v4173_v17, %s4535_s5 }
 0x30b   :  { %4179 = vrot.lane.b32.xlu0 %v4168_v15, %s4532_s26 }
 0x30e   :  { %4189 = vrot.lane.b32.xlu1 %v4188_v48, %s4536_s17 }
 0x30f   :  { %4194 = vrot.lane.b32.xlu0 %v4193_v7, %s4526_s2 }
 0x312   :  { %4199 = vrot.lane.b32.xlu1 %v4198_v59, %s4528_s22 }
 0x313   :  { %4209 = vrot.lane.b32.xlu0 %v4198_v59, %s4535_s5 }
 0x316   :  { %4204 = vrot.lane.b32.xlu1 %v4193_v7, %s4532_s26 }
 0x317   :  { %4214 = vrot.lane.b32.xlu0 %v4213_v19, %s4536_s17 }
 0x31a   :  { %1537 = vrot.lane.b32.xlu1 %v1508_v11, %s4526_s2 }
 0x31b   :  { %1624 = vrot.lane.b32.xlu0 %v5648_v24, %s4528_s22 }
 0x31e   :  { %4224 = vrot.lane.b32.xlu1 %v4223_v28, %s4535_s5 }
 0x31f   :  { %4219 = vrot.lane.b32.xlu0 %v4218_v36, %s4532_s26 }
 0x322   :  { %1874 = vrot.lane.b32.xlu1 %v1698_v58, %s4536_s17 }
 0x323   :  { %1829 = vrot.lane.b32.xlu0 %v5603_v9, %s4534_s27 }
 0x324   :  { %v3975_v60 = vpop.permute.xlu1 %3974 }
 0x325   :  { %v3970_v39 = vpop.permute.xlu0 %3969  ;;  %v3976_v28 = vunpack.i.l.bf16 %v3975_v60 }
 0x326   :  { %v3972_v41 = vunpack.i.h.bf16 %v3970_v39  ;;  %v3971_v48 = vunpack.i.l.bf16 %v3970_v39 }
 0x32b   :  { %v5697_v47 = vpop.permute.xlu1 %3979 }
 0x32d   :  { %v5699_v8 = vpop.permute.xlu0 %3984 }
 0x32f   :  { %v5701_v52 = vpop.permute.xlu1 %3994 }
 0x331   :  { %v5703_v2 = vpop.permute.xlu0 %3989 }
 0x334   :  { %v5705_v15 = vpop.permute.xlu1 %3999 }
 0x335   :  { %v5707_v17 = vpop.permute.xlu0 %4004 }
 0x338   :  { %v4015_v12 = vpop.permute.xlu1 %4014 }
 0x339   :  { %v4017_v38 = vunpack.i.h.bf16 %v4015_v12  ;;  %v4016_v22 = vunpack.i.l.bf16 %v4015_v12  ;;  %v4010_v21 = vpop.permute.xlu0 %4009 }
 0x33a   :  { %v4012_v45 = vunpack.i.h.bf16 %v4010_v21  ;;  %v4011_v9 = vunpack.i.l.bf16 %v4010_v21 }
 0x33c   :  { %v1907_v7 = vsel %vm891_vm7, %v5307_v62, %v4012_v45  ;;  %v1906_v30 = vsel %vm891_vm7, %v4649_v29, %v4011_v9  ;;  %v4020_v35 = vpop.permute.xlu1 %4019  ;;  %v3977_v62 = vunpack.i.h.bf16 %v3975_v60 }
 0x33d   :  { %v1922_v59 = vsel %vm924_vm9, %v1907_v7, %v4017_v38  ;;  %v5715_v11 = vsel %vm924_vm9, %v1906_v30, %v4016_v22  ;;  %v4022_v50 = vunpack.i.h.bf16 %v4020_v35  ;;  %v4021_v19 = vunpack.i.l.bf16 %v4020_v35  ;;  %v4025_v4 = vpop.permute.xlu0 %4024 }
 0x33e   :  { %v1936_v31 = vsel %vm958_vm11, %v5715_v11, %v3971_v48  ;;  %v1937_v40 = vsel %vm958_vm11, %v1922_v59, %v3972_v41  ;;  %v4027_v57 = vunpack.i.h.bf16 %v4025_v4  ;;  %v4026_v58 = vunpack.i.l.bf16 %v4025_v4 }
 0x33f   :  { %v1952_v29 = vsel %vm992_vm13, %v1936_v31, %v4021_v19  ;;  %v1953_v36 = vsel %vm992_vm13, %v1937_v40, %v4022_v50 }
 0x340   :  { %v1969_v39 = vsel %vm1968_vm15, %v1952_v29, %v4026_v58  ;;  %v1970_v12 = vsel %vm1968_vm15, %v1953_v36, %v4027_v57  ;;  %v4035_v38 = vpop.permute.xlu1 %4034  ;;  %v3981_v29 = vunpack.i.l.bf16 %v5697_v47 }
 0x341   :  { %v4030_v22 = vpop.permute.xlu0 %4029  ;;  %v1986_v21 = vsel %vm1985_vm0, %v1969_v39, %v3976_v28  ;;  %v1987_v45 = vsel %vm1985_vm0, %v1970_v12, %v3977_v62  ;;  %v4037_v48 = vunpack.i.h.bf16 %v4035_v38  ;;  %v4036_v7 = vunpack.i.l.bf16 %v4035_v38 }
 0x342   :  { %v4032_v9 = vunpack.i.h.bf16 %v4030_v22  ;;  %v4031_v41 = vunpack.i.l.bf16 %v4030_v22  ;;  %v3982_v28 = vunpack.i.h.bf16 %v5697_v47 }
 0x343   :  { %v1909_v31 = vsel %vm891_vm7, %v5299_v3, %v4037_v48  ;;  %v1908_v40 = vsel %vm891_vm7, %v5296_v27, %v4036_v7  ;;  %v3987_v3 = vunpack.i.h.bf16 %v5699_v8  ;;  %v3986_v27 = vunpack.i.l.bf16 %v5699_v8 }
 0x344   :  { %v2003_v60 = vsel %vm2002_vm1, %v1986_v21, %v4031_v41  ;;  %v2004_v30 = vsel %vm2002_vm1, %v1987_v45, %v4032_v9  ;;  %v4050_v35 = vpop.permute.xlu1 %4049 }
 0x345   :  { %v2019_v59 = vpack.c.bf16 %v2004_v30, %v2003_v60  ;;  %v4040_v50 = vpop.permute.xlu0 %4039  ;;  %v4052_v38 = vunpack.i.h.bf16 %v4050_v35  ;;  %v4051_v22 = vunpack.i.l.bf16 %v4050_v35 }
 0x346   :  { %v4042_v19 = vunpack.i.h.bf16 %v4040_v50  ;;  %v4041_v4 = vunpack.i.l.bf16 %v4040_v50 }
 0x347   :  { %2171 = vmatmul.mubr.bf16.vlgmr.msra.gmra.mxu0 %v2019_v59 }
 0x348   :  { %v1924_v57 = vsel %vm924_vm9, %v1909_v31, %v4042_v19  ;;  %v1923_v58 = vsel %vm924_vm9, %v1908_v40, %v4041_v4  ;;  %3559 = vmatprep.mubr.msk.bf16.mxu0 %vm891_vm7, %v2022_v44  ;;  %v4055_v62 = vpop.permute.xlu1 %4054  ;;  %v3992_v19 = vunpack.i.h.bf16 %v5703_v2  ;;  %v3991_v40 = vunpack.i.l.bf16 %v5703_v2 }
 0x349   :  { %v4045_v36 = vpop.permute.xlu0 %4044  ;;  %v1938_v21 = vsel %vm958_vm11, %v1923_v58, %v3981_v29  ;;  %v1939_v33 = vsel %vm958_vm11, %v1924_v57, %v3982_v28  ;;  %v4057_v10 = vunpack.i.h.bf16 %v4055_v62  ;;  %v4056_v44 = vunpack.i.l.bf16 %v4055_v62 }
 0x34a   :  { %v4047_v39 = vunpack.i.h.bf16 %v4045_v36  ;;  %v4046_v12 = vunpack.i.l.bf16 %v4045_v36 }
 0x34c   :  { %v1954_v45 = vsel %vm992_vm13, %v1938_v21, %v4046_v12  ;;  %v1955_v9 = vsel %vm992_vm13, %v1939_v33, %v4047_v39  ;;  %v4065_v47 = vpop.permute.xlu1 %4064 }
 0x34d   :  { %v1971_v41 = vsel %vm1968_vm15, %v1954_v45, %v4051_v22  ;;  %v1972_v48 = vsel %vm1968_vm15, %v1955_v9, %v4052_v38  ;;  %v4067_v8 = vunpack.i.h.bf16 %v4065_v47  ;;  %v4066_v7 = vunpack.i.l.bf16 %v4065_v47  ;;  %v4060_v60 = vpop.permute.xlu0 %4059 }
 0x34e   :  { %v4062_v30 = vunpack.i.h.bf16 %v4060_v60  ;;  %v4061_v35 = vunpack.i.l.bf16 %v4060_v60  ;;  %v1988_v59 = vsel %vm1985_vm0, %v1971_v41, %v3986_v27  ;;  %v1989_v50 = vsel %vm1985_vm0, %v1972_v48, %v3987_v3 }
 0x34f   :  { %v2005_v4 = vsel %vm2002_vm1, %v1988_v59, %v4056_v44  ;;  %v2006_v31 = vsel %vm2002_vm1, %v1989_v50, %v4057_v10 }
 0x350   :  { %v1911_v57 = vsel %vm891_vm7, %v5402_v14, %v4062_v30  ;;  %v1910_v58 = vsel %vm891_vm7, %v5365_v63, %v4061_v35  ;;  %v4070_v62 = vpop.permute.xlu1 %4069  ;;  %v2021_v28 = vpack.c.bf16 %v2006_v31, %v2005_v4  ;;  %v3997_v14 = vunpack.i.h.bf16 %v5701_v52 }
 0x351   :  { %v1926_v29 = vsel %vm924_vm9, %v1911_v57, %v4067_v8  ;;  %v1925_v36 = vsel %vm924_vm9, %v1910_v58, %v4066_v7  ;;  %v4072_v3 = vunpack.i.h.bf16 %v4070_v62  ;;  %v4071_v27 = vunpack.i.l.bf16 %v4070_v62  ;;  %v4075_v39 = vpop.permute.xlu0 %4074 }
 0x352   :  { %v1940_v12 = vsel %vm958_vm11, %v1925_v36, %v3991_v40  ;;  %v1941_v38 = vsel %vm958_vm11, %v1926_v29, %v3992_v19  ;;  %v4077_v2 = vunpack.i.h.bf16 %v4075_v39  ;;  %v4076_v22 = vunpack.i.l.bf16 %v4075_v39  ;;  %2179 = vmatmul.mubr.bf16.gmra.mxu0 %v2021_v28 }
 0x353   :  { %v3996_v63 = vunpack.i.l.bf16 %v5701_v52  ;;  %v1956_v21 = vsel %vm992_vm13, %v1940_v12, %v4071_v27  ;;  %v1957_v33 = vsel %vm992_vm13, %v1941_v38, %v4072_v3  ;;  %3560 = vmatprep.mubr.msk.bf16.mxu0 %vm891_vm7, %v2024_v6  ;;  %v2026_v35 = vpack.c.bf16 %v4668_v51, %v5534_v37 }
 0x354   :  { %v1973_v10 = vsel %vm1968_vm15, %v1956_v21, %v4076_v22  ;;  %v1974_v44 = vsel %vm1968_vm15, %v1957_v33, %v4077_v2  ;;  %v4085_v45 = vpop.permute.xlu1 %4084  ;;  %v4002_v58 = vunpack.i.h.bf16 %v5705_v15  ;;  %v4001_v37 = vunpack.i.l.bf16 %v5705_v15 }
 0x355   :  { %v4080_v9 = vpop.permute.xlu0 %4079  ;;  %v1990_v47 = vsel %vm1985_vm0, %v1973_v10, %v3996_v63  ;;  %v1991_v41 = vsel %vm1985_vm0, %v1974_v44, %v3997_v14  ;;  %v4087_v8 = vunpack.i.h.bf16 %v4085_v45  ;;  %v4086_v7 = vunpack.i.l.bf16 %v4085_v45 }
 0x356   :  { %v4082_v52 = vunpack.i.h.bf16 %v4080_v9  ;;  %v4081_v48 = vunpack.i.l.bf16 %v4080_v9  ;;  %v5790_v27 = vunpack.i.h.bf16 %v5707_v17  ;;  %v4006_v39 = vunpack.i.l.bf16 %v5707_v17 }
 0x357   :  { %v1913_v19 = vsel %vm891_vm7, %v5406_v49, %v4087_v8  ;;  %v1912_v4 = vsel %vm891_vm7, %v5361_v26, %v4086_v7 }
 0x358   :  { %v4100_v60 = vpop.permute.xlu1 %4099  ;;  %v2007_v30 = vsel %vm2002_vm1, %v1990_v47, %v4081_v48  ;;  %v2008_v55 = vsel %vm2002_vm1, %v1991_v41, %v4082_v52 }
 0x359   :  { %v4090_v43 = vpop.permute.xlu0 %4089  ;;  %v2023_v6 = vpack.c.bf16 %v2008_v55, %v2007_v30  ;;  %v4102_v36 = vunpack.i.h.bf16 %v4100_v60  ;;  %v4101_v49 = vunpack.i.l.bf16 %v4100_v60 }
 0x35a   :  { %v4092_v59 = vunpack.i.h.bf16 %v4090_v43  ;;  %v4091_v50 = vunpack.i.l.bf16 %v4090_v43 }
 0x35b   :  { %2187 = vmatmul.mubr.bf16.gmra.mxu0 %v2023_v6 }
 0x35c   :  { %v1928_v31 = vsel %vm924_vm9, %v1913_v19, %v4092_v59  ;;  %v1927_v40 = vsel %vm924_vm9, %v1912_v4, %v4091_v50  ;;  %3561 = vmatprep.mubr.msk.bf16.mxu0 %vm891_vm7, %v2026_v35  ;;  %v4105_v57 = vpop.permute.xlu1 %4104 }
 0x35d   :  { %v4095_v62 = vpop.permute.xlu0 %4094  ;;  %v1942_v3 = vsel %vm958_vm11, %v1927_v40, %v4001_v37  ;;  %v1943_v26 = vsel %vm958_vm11, %v1928_v31, %v4002_v58  ;;  %v5795_v15 = vunpack.i.h.bf16 %v4105_v57  ;;  %v4106_v22 = vunpack.i.l.bf16 %v4105_v57 }
 0x35e   :  { %v4097_v28 = vunpack.i.h.bf16 %v4095_v62  ;;  %v4096_v29 = vunpack.i.l.bf16 %v4095_v62 }
 0x360   :  { %v1958_v12 = vsel %vm992_vm13, %v1942_v3, %v4096_v29  ;;  %v1959_v38 = vsel %vm992_vm13, %v1943_v26, %v4097_v28  ;;  %v4115_v2 = vpop.permute.xlu1 %4114 }
 0x361   :  { %v1975_v14 = vsel %vm1968_vm15, %v1958_v12, %v4101_v49  ;;  %v1976_v63 = vsel %vm1968_vm15, %v1959_v38, %v4102_v36  ;;  %v4110_v21 = vpop.permute.xlu0 %4109  ;;  %v4116_v59 = vunpack.i.l.bf16 %v4115_v2 }
 0x362   :  { %v1992_v33 = vsel %vm1985_vm0, %v1975_v14, %v4006_v39  ;;  %v1993_v10 = vsel %vm1985_vm0, %v1976_v63, %v5790_v27  ;;  %v4111_v43 = vunpack.i.l.bf16 %v4110_v21  ;;  %v4112_v20 = vunpack.i.h.bf16 %v4110_v21 }
 0x363   :  { %v2009_v17 = vsel %vm2002_vm1, %v1992_v33, %v4106_v22  ;;  %v2010_v44 = vsel %vm2002_vm1, %v1993_v10, %v5795_v15 }
 0x364   :  { %v2025_v45 = vpack.c.bf16 %v2010_v44, %v2009_v17  ;;  %v4120_v9 = vpop.permute.xlu1 %4119  ;;  %v1944_v31 = vsel %vm958_vm11, %v5715_v11, %v4111_v43 }
 0x365   :  { %v5805_v47 = vpop.permute.xlu0 %4124  ;;  %v4122_v21 = vunpack.i.h.bf16 %v4120_v9 }
 0x366   :  { %2195 = vmatmul.mubr.bf16.gmra.mxu0 %v2025_v45 }
 0x367   :  { %3562 = vmatprep.mubr.msk.bf16.mxu0 %vm891_vm7, %v2028_v53  ;;  %v4117_v53 = vunpack.i.h.bf16 %v4115_v2 }
 0x368   :  { %v5811_v41 = vpop.permute.xlu1 %4134 }
 0x369   :  { %v5813_v52 = vpop.permute.xlu0 %4129 }
 0x36c   :  { %v5815_v48 = vpop.permute.xlu1 %4139 }
 0x36d   :  { %v4145_v8 = vpop.permute.xlu0 %4144 }
 0x36e   :  { %v4146_v7 = vunpack.i.l.bf16 %v4145_v8  ;;  %v4147_v37 = vunpack.i.h.bf16 %v4145_v8 }
 0x370   :  { %v4150_v60 = vpop.permute.xlu1 %4149  ;;  %v1914_v6 = vsel %vm891_vm7, %v5567_v13, %v4146_v7  ;;  %v1915_v33 = vsel %vm891_vm7, %v5558_v23, %v4147_v37  ;;  %v4121_v7 = vunpack.i.l.bf16 %v4120_v9  ;;  %v4127_v23 = vunpack.i.h.bf16 %v5805_v47 }
 0x371   :  { %v4151_v30 = vunpack.i.l.bf16 %v4150_v60  ;;  %v4160_v55 = vpop.permute.xlu0 %4159  ;;  %v4152_v62 = vunpack.i.h.bf16 %v4150_v60 }
 0x372   :  { %v4162_v40 = vunpack.i.h.bf16 %v4160_v55  ;;  %v4161_v57 = vunpack.i.l.bf16 %v4160_v55 }
 0x373   :  { %v1929_v35 = vsel %vm924_vm9, %v1914_v6, %v4151_v30  ;;  %v1930_v44 = vsel %vm924_vm9, %v1915_v33, %v4152_v62 }
 0x374   :  { %v4155_v0 = vpop.permute.xlu1 %4154  ;;  %v1945_v58 = vsel %vm958_vm11, %v1929_v35, %v4112_v20  ;;  %v4126_v20 = vunpack.i.l.bf16 %v5805_v47 }
 0x375   :  { %v4157_v50 = vunpack.i.h.bf16 %v4155_v0  ;;  %v4156_v19 = vunpack.i.l.bf16 %v4155_v0  ;;  %v4165_v4 = vpop.permute.xlu0 %4164 }
 0x376   :  { %v4167_v49 = vunpack.i.h.bf16 %v4165_v4  ;;  %v4166_v3 = vunpack.i.l.bf16 %v4165_v4 }
 0x377   :  { %v1960_v13 = vsel %vm992_vm13, %v1944_v31, %v4156_v19  ;;  %v1961_v28 = vsel %vm992_vm13, %v1945_v58, %v4157_v50 }
 0x378   :  { %v1977_v29 = vsel %vm1968_vm15, %v1960_v13, %v4161_v57  ;;  %v1978_v36 = vsel %vm1968_vm15, %v1961_v28, %v4162_v40  ;;  %v4170_v26 = vpop.permute.xlu1 %4169 }
 0x379   :  { %v4171_v39 = vunpack.i.l.bf16 %v4170_v26  ;;  %v4175_v12 = vpop.permute.xlu0 %4174  ;;  %v1994_v38 = vsel %vm1985_vm0, %v1977_v29, %v4116_v59  ;;  %v1995_v2 = vsel %vm1985_vm0, %v1978_v36, %v4117_v53  ;;  %v4172_v9 = vunpack.i.h.bf16 %v4170_v26 }
 0x37a   :  { %v4176_v22 = vunpack.i.l.bf16 %v4175_v12  ;;  %v2011_v14 = vsel %vm2002_vm1, %v1994_v38, %v4166_v3  ;;  %v2012_v63 = vsel %vm2002_vm1, %v1995_v2, %v4167_v49  ;;  %v4177_v57 = vunpack.i.h.bf16 %v4175_v12 }
 0x37b   :  { %v1916_v10 = vsel %vm891_vm7, %v5561_v56, %v4171_v39  ;;  %v2027_v17 = vpack.c.bf16 %v2012_v63, %v2011_v14  ;;  %v1946_v56 = vsel %vm958_vm11, %v1930_v44, %v4121_v7  ;;  %v1917_v37 = vsel %vm891_vm7, %v5572_v18, %v4172_v9 }
 0x37c   :  { %v1931_v45 = vsel %vm924_vm9, %v1916_v10, %v4176_v22  ;;  %v4185_v8 = vpop.permute.xlu1 %4184  ;;  %v1932_v49 = vsel %vm924_vm9, %v1917_v37, %v4177_v57  ;;  %v4132_v26 = vunpack.i.h.bf16 %v5813_v52  ;;  %v4131_v18 = vunpack.i.l.bf16 %v5813_v52 }
 0x37d   :  { %v4187_v60 = vunpack.i.h.bf16 %v4185_v8  ;;  %v4186_v30 = vunpack.i.l.bf16 %v4185_v8  ;;  %v4180_v55 = vpop.permute.xlu0 %4179  ;;  %v1947_v43 = vsel %vm958_vm11, %v1931_v45, %v4122_v21  ;;  %2203 = vmatmul.mubr.bf16.gmra.mxu0 %v2027_v17  ;;  %v4137_v12 = vunpack.i.h.bf16 %v5811_v41 }
 0x37e   :  { %v4182_v6 = vunpack.i.h.bf16 %v4180_v55  ;;  %v4181_v35 = vunpack.i.l.bf16 %v4180_v55  ;;  %3563 = vmatprep.mubr.msk.bf16.mxu0 %vm891_vm7, %v2030_v32  ;;  %v4136_v38 = vunpack.i.l.bf16 %v5811_v41  ;;  %v1948_v21 = vsel %vm958_vm11, %v1932_v49, %v4131_v18 }
 0x37f   :  { %v4142_v9 = vunpack.i.h.bf16 %v5815_v48 }
 0x380   :  { %v1962_v0 = vsel %vm992_vm13, %v1946_v56, %v4181_v35  ;;  %v1963_v53 = vsel %vm992_vm13, %v1947_v43, %v4182_v6  ;;  %v4190_v59 = vpop.permute.xlu1 %4189 }
 0x381   :  { %v1979_v50 = vsel %vm1968_vm15, %v1962_v0, %v4186_v30  ;;  %v1980_v19 = vsel %vm1968_vm15, %v1963_v53, %v4187_v60  ;;  %v4192_v4 = vunpack.i.h.bf16 %v4190_v59  ;;  %v4191_v46 = vunpack.i.l.bf16 %v4190_v59  ;;  %v4195_v5 = vpop.permute.xlu0 %4194 }
 0x382   :  { %v4196_v32 = vunpack.i.l.bf16 %v4195_v5  ;;  %v1996_v31 = vsel %vm1985_vm0, %v1979_v50, %v4126_v20  ;;  %v1997_v40 = vsel %vm1985_vm0, %v1980_v19, %v4127_v23  ;;  %v4197_v24 = vunpack.i.h.bf16 %v4195_v5 }
 0x383   :  { %v2013_v47 = vsel %vm2002_vm1, %v1996_v31, %v4191_v46  ;;  %v2014_v58 = vsel %vm2002_vm1, %v1997_v40, %v4192_v4  ;;  %v4141_v0 = vunpack.i.l.bf16 %v5815_v48 }
 0x384   :  { %v4200_v62 = vpop.permute.xlu1 %4199  ;;  %v2029_v13 = vpack.c.bf16 %v2014_v58, %v2013_v47  ;;  %v1918_v36 = vsel %vm891_vm7, %v5576_v54, %v4196_v32  ;;  %v1919_v6 = vsel %vm891_vm7, %v5586_v61, %v4197_v24 }
 0x385   :  { %v4201_v28 = vunpack.i.l.bf16 %v4200_v62  ;;  %v4210_v29 = vpop.permute.xlu0 %4209 }
 0x386   :  { %2211 = vmatmul.mubr.bf16.gmra.mxu0 %v2029_v13  ;;  %v4212_v14 = vunpack.i.h.bf16 %v4210_v29  ;;  %v4211_v63 = vunpack.i.l.bf16 %v4210_v29 }
 0x387   :  { %v1933_v3 = vsel %vm924_vm9, %v1918_v36, %v4201_v28  ;;  %3564 = vmatprep.mubr.msk.bf16.mxu0 %vm891_vm7, %v2032_v34  ;;  %v4202_v34 = vunpack.i.h.bf16 %v4200_v62 }
 0x388   :  { %v4205_v39 = vpop.permute.xlu1 %4204  ;;  %v1949_v42 = vsel %vm958_vm11, %v1933_v3, %v4132_v26 }
 0x389   :  { %v4207_v54 = vunpack.i.h.bf16 %v4205_v39  ;;  %v4206_v2 = vunpack.i.l.bf16 %v4205_v39  ;;  %v4215_v22 = vpop.permute.xlu0 %4214  ;;  %v1934_v23 = vsel %vm924_vm9, %v1919_v6, %v4202_v34  ;;  %v5903_v39 = vld [vmem:[%s6747_s6] ss:$0 sm:$0xff] }
 0x38a   :  { %v4217_v41 = vunpack.i.h.bf16 %v4215_v22  ;;  %v4216_v44 = vunpack.i.l.bf16 %v4215_v22  ;;  %v1950_v46 = vsel %vm958_vm11, %v1934_v23, %v4141_v0 }
 0x38b   :  { %v1964_v33 = vsel %vm992_vm13, %v1948_v21, %v4206_v2  ;;  %v1965_v52 = vsel %vm992_vm13, %v1949_v42, %v4207_v54 }
 0x38c   :  { %v1981_v10 = vsel %vm1968_vm15, %v1964_v33, %v4211_v63  ;;  %v1982_v17 = vsel %vm1968_vm15, %v1965_v52, %v4212_v14  ;;  %v1538_v45 = vpop.permute.xlu1 %1537 }
 0x38d   :  { %v1920_v8 = vsel %vm891_vm7, %v5591_v1, %v1538_v45  ;;  %v1625_v7 = vpop.permute.xlu0 %1624  ;;  %v1998_v60 = vsel %vm1985_vm0, %v1981_v10, %v4136_v38  ;;  %v1999_v30 = vsel %vm1985_vm0, %v1982_v17, %v4137_v12  ;;  %v2034_v1 = vpack.c.bf16 %v4668_v51, %v5684_v16 }
 0x38e   :  { %v2015_v55 = vsel %vm2002_vm1, %v1998_v60, %v4216_v44  ;;  %v2016_v43 = vsel %vm2002_vm1, %v1999_v30, %v4217_v41  ;;  %v1935_v56 = vsel %vm924_vm9, %v1920_v8, %v1625_v7 }
 0x38f   :  { %v2031_v35 = vpack.c.bf16 %v2016_v43, %v2015_v55  ;;  %v1951_v61 = vsel %vm958_vm11, %v1935_v56, %v4142_v9 }
 0x390   :  { %v4225_v20 = vpop.permute.xlu1 %4224 }
 0x391   :  { %v4227_v53 = vunpack.i.h.bf16 %v4225_v20  ;;  %v4226_v59 = vunpack.i.l.bf16 %v4225_v20  ;;  %v4220_v50 = vpop.permute.xlu0 %4219  ;;  %2219 = vmatmul.mubr.bf16.gmra.mxu0 %v2031_v35 }
 0x392   :  { %v4222_v19 = vunpack.i.h.bf16 %v4220_v50  ;;  %v4221_v4 = vunpack.i.l.bf16 %v4220_v50  ;;  %3565 = vmatprep.mubr.msk.bf16.mxu0 %vm891_vm7, %v2034_v1 }
 0x394   :  { %v1967_v5 = vsel %vm992_vm13, %v1951_v61, %v4222_v19  ;;  %v1875_v32 = vpop.permute.xlu1 %1874  ;;  %v1966_v16 = vsel %vm992_vm13, %v1950_v46, %v4221_v4 }
 0x395   :  { %v1984_v31 = vsel %vm1968_vm15, %v1967_v5, %v4227_v53  ;;  %v1830_v48 = vpop.permute.xlu0 %1829  ;;  %v1983_v40 = vsel %vm1968_vm15, %v1966_v16, %v4226_v59 }
 0x396   :  { %v2000_v57 = vsel %vm1985_vm0, %v1983_v40, %v1830_v48  ;;  %v2001_v47 = vsel %vm1985_vm0, %v1984_v31, %v5790_v27 }
 0x397   :  { %v2017_v58 = vsel %vm2002_vm1, %v2000_v57, %v1875_v32  ;;  %v2018_v37 = vsel %vm2002_vm1, %v2001_v47, %v5795_v15 }
 0x398   :  { %v2033_v62 = vpack.c.bf16 %v2018_v37, %v2017_v58 }
 0x39a   :  { %2227 = vmatmul.mubr.bf16.gmra.mxu0 %v2033_v62 }
 0x407   :  { %v2172_v13 = vpop.f32.mrf.mxu0 }
 0x408   :  { %v2173_v54 = vadd.f32 %v5903_v39, %v2172_v13 }
 0x409   :  { %v2174_v28 = vpop.f32.mrf.mxu0 }
 0x40a   :  { %v2235_v42 = vsel %vm891_vm7, %v2173_v54, 0.0 }
 0x40b   :  { %v2175_v29 = vpop.f32.mrf.mxu0 }
 0x40c   :  { %v2176_v12 = vadd.f32 %v5903_v39, %v2175_v29 }
 0x40d   :  { %v2177_v36 = vpop.f32.mrf.mxu0 }
 0x40e   :  { %v2236_v14 = vsel %vm891_vm7, %v2176_v12, 0.0 }
 0x40f   :  { %v2237_v52 = vadd.f32 %v2236_v14, %v2235_v42 }
 0x412   :  { %v2180_v49 = vpop.f32.mrf.mxu0 }
 0x413   :  { %v2181_v2 = vadd.f32 %v5903_v39, %v2180_v49 }
 0x414   :  { %v2182_v3 = vpop.f32.mrf.mxu0 }
 0x415   :  { %v2238_v24 = vsel %vm891_vm7, %v2181_v2, 0.0 }
 0x416   :  { %v2183_v26 = vpop.f32.mrf.mxu0  ;;  %v2239_v41 = vadd.f32 %v2238_v24, %v2237_v52 }
 0x417   :  { %v2184_v63 = vadd.f32 %v5903_v39, %v2183_v26 }
 0x418   :  { %v2185_v18 = vpop.f32.mrf.mxu0 }
 0x419   :  { %v2240_v10 = vsel %vm891_vm7, %v2184_v63, 0.0 }
 0x41a   :  { %v2241_v45 = vadd.f32 %v2240_v10, %v2239_v41 }
 0x41b   :  { %v2188_v38 = vpop.f32.mrf.mxu0 }
 0x41c   :  { %v2189_v34 = vadd.f32 %v5903_v39, %v2188_v38 }
 0x41d   :  { %v2190_v22 = vpop.f32.mrf.mxu0 }
 0x41e   :  { %v2242_v44 = vsel %vm891_vm7, %v2189_v34, 0.0 }
 0x41f   :  { %v2191_v21 = vpop.f32.mrf.mxu0  ;;  %v2243_v30 = vadd.f32 %v2242_v44, %v2241_v45 }
 0x420   :  { %v2192_v17 = vadd.f32 %v5903_v39, %v2191_v21 }
 0x421   :  { %v2193_v33 = vpop.f32.mrf.mxu0 }
 0x422   :  { %v2244_v7 = vsel %vm891_vm7, %v2192_v17, 0.0 }
 0x423   :  { %v2245_v6 = vadd.f32 %v2244_v7, %v2243_v30 }
 0x426   :  { %v2196_v8 = vpop.f32.mrf.mxu0 }
 0x427   :  { %v2197_v60 = vadd.f32 %v5903_v39, %v2196_v8 }
 0x428   :  { %v2198_v55 = vpop.f32.mrf.mxu0 }
 0x429   :  { %v2246_v43 = vsel %vm891_vm7, %v2197_v60, 0.0 }
 0x42a   :  { %v2199_v35 = vpop.f32.mrf.mxu0  ;;  %v2247_v56 = vadd.f32 %v2246_v43, %v2245_v6 }
 0x42b   :  { %v2200_v23 = vadd.f32 %v5903_v39, %v2199_v35 }
 0x42c   :  { %v2201_v20 = vpop.f32.mrf.mxu0 }
 0x42d   :  { %v2248_v1 = vsel %vm891_vm7, %v2200_v23, 0.0 }
 0x42e   :  { %v2249_v9 = vadd.f32 %v2248_v1, %v2247_v56 }
 0x430   :  { %v2250_v0 = vrot.slane %v2249_v9, 4 }
 0x432   :  { %v2251_v53 = vadd.f32 %v2250_v0, %v2249_v9 }
 0x434   :  { %v2252_v59 = vrot.slane %v2251_v53, 2 }
 0x436   :  { %v2253_v50 = vadd.f32 %v2252_v59, %v2251_v53 }
 0x438   :  { %v2254_v19 = vrot.slane %v2253_v50, 1 }
 0x43a   :  { %v2255_v4 = vadd.f32 %v2254_v19, %v2253_v50 }
 0x43c   :  { %v2277_v61 = vmul.f32 0.015625, %v2255_v4 }
 0x43d   :  { %v2204_v46 = vpop.f32.mrf.mxu0 }
 0x43e   :  { %v5921_v5 = vsub.f32 %v2173_v54, %v2277_v61  ;;  %v5923_v32 = vsub.f32 %v2176_v12, %v2277_v61  ;;  %v5925_v16 = vsub.f32 %v2181_v2, %v2277_v61  ;;  %v5927_v31 = vsub.f32 %v2184_v63, %v2277_v61 }
 0x43f   :  { %v2206_v48 = vpop.f32.mrf.mxu0  ;;  %v5929_v40 = vsub.f32 %v2189_v34, %v2277_v61  ;;  %v5937_v62 = vsub.f32 %v2192_v17, %v2277_v61  ;;  %v5943_v3 = vsub.f32 %v2197_v60, %v2277_v61  ;;  %v5948_v38 = vsub.f32 %v2200_v23, %v2277_v61 }
 0x440   :  { %v2295_v57 = vmul.f32 %v5921_v5, %v5921_v5  ;;  %v2296_v47 = vmul.f32 %v5923_v32, %v5923_v32  ;;  %v2297_v58 = vmul.f32 %v5925_v16, %v5925_v16  ;;  %v2298_v13 = vmul.f32 %v5927_v31, %v5927_v31 }
 0x441   :  { %v2207_v37 = vpop.f32.mrf.mxu0  ;;  %v2299_v26 = vmul.f32 %v5929_v40, %v5929_v40  ;;  %v2300_v54 = vmul.f32 %v5937_v62, %v5937_v62  ;;  %v2301_v63 = vmul.f32 %v5943_v3, %v5943_v3  ;;  %v2302_v34 = vmul.f32 %v5948_v38, %v5948_v38 }
 0x442   :  { %v2311_v28 = vsel %vm891_vm7, %v2295_v57, 0.0  ;;  %v2312_v29 = vsel %vm891_vm7, %v2296_v47, 0.0  ;;  %v2314_v18 = vsel %vm891_vm7, %v2297_v58, 0.0  ;;  %v2316_v2 = vsel %vm891_vm7, %v2298_v13, 0.0 }
 0x443   :  { %v2313_v36 = vadd.f32 %v2312_v29, %v2311_v28  ;;  %v2209_v49 = vpop.f32.mrf.mxu0  ;;  %v2318_v21 = vsel %vm891_vm7, %v2299_v26, 0.0  ;;  %v2320_v33 = vsel %vm891_vm7, %v2300_v54, 0.0  ;;  %v2322_v17 = vsel %vm891_vm7, %v2301_v63, 0.0 }
 0x444   :  { %v2324_v45 = vsel %vm891_vm7, %v2302_v34, 0.0  ;;  %v2208_v7 = vadd.f32 %v5903_v39, %v2207_v37  ;;  %v2205_v30 = vadd.f32 %v5903_v39, %v2204_v46 }
 0x445   :  { %v2315_v12 = vadd.f32 %v2314_v18, %v2313_v36 }
 0x446   :  { %v2212_v22 = vpop.f32.mrf.mxu0  ;;  %v2257_v35 = vsel %vm891_vm7, %v2208_v7, 0.0  ;;  %v2256_v1 = vsel %vm891_vm7, %v2205_v30, 0.0 }
 0x447   :  { %v2317_v14 = vadd.f32 %v2316_v2, %v2315_v12  ;;  %v2213_v55 = vadd.f32 %v5903_v39, %v2212_v22  ;;  %v2258_v59 = vadd.f32 %v2257_v35, %v2256_v1 }
 0x448   :  { %v2214_v42 = vpop.f32.mrf.mxu0 }
 0x449   :  { %v2319_v24 = vadd.f32 %v2318_v21, %v2317_v14  ;;  %v2259_v9 = vsel %vm891_vm7, %v2213_v55, 0.0 }
 0x44a   :  { %v2215_v52 = vpop.f32.mrf.mxu0  ;;  %v2260_v46 = vadd.f32 %v2259_v9, %v2258_v59 }
 0x44b   :  { %v2321_v10 = vadd.f32 %v2320_v33, %v2319_v24  ;;  %v2216_v23 = vadd.f32 %v5903_v39, %v2215_v52  ;;  %v4503_v24 = vld [vmem:[%s6748_s7 + $0x38] sm:$0xff]   ;;  %v4504_v33 = vld [vmem:[%s6748_s7 + $0x30] sm:$0xff]  }
 0x44c   :  { %v2217_v41 = vpop.f32.mrf.mxu0  ;;  %3169 = vmatpush1.bf16.msra.mxu1 %v4503_v24 }
 0x44d   :  { %v2323_v44 = vadd.f32 %v2322_v17, %v2321_v10  ;;  %v2261_v19 = vsel %vm891_vm7, %v2216_v23, 0.0  ;;  %3170 = vmatprep.subr.bf16.mxu1 %v4533_v25 }
 0x44e   :  { %v2262_v47 = vadd.f32 %v2261_v19, %v2260_v46 }
 0x44f   :  { %v2325_v8 = vadd.f32 %v2324_v45, %v2323_v44 }
 0x450   :  { %3171 = vmatpush1.bf16.msra.mxu1 %v4504_v33 }
 0x451   :  { %v2326_v60 = vrot.slane %v2325_v8, 4  ;;  %v2220_v43 = vpop.f32.mrf.mxu0  ;;  %3172 = vmatprep.subr.bf16.mxu1 %v4533_v25 }
 0x452   :  { %v2221_v0 = vadd.f32 %v5903_v39, %v2220_v43 }
 0x453   :  { %v2327_v6 = vadd.f32 %v2326_v60, %v2325_v8  ;;  %v2222_v56 = vpop.f32.mrf.mxu0 }
 0x454   :  { %v2263_v57 = vsel %vm891_vm7, %v2221_v0, 0.0 }
 0x455   :  { %v2328_v20 = vrot.slane %v2327_v6, 2  ;;  %v2223_v53 = vpop.f32.mrf.mxu0  ;;  %v2264_v29 = vadd.f32 %v2263_v57, %v2262_v47 }
 0x456   :  { %v2224_v4 = vadd.f32 %v5903_v39, %v2223_v53 }
 0x457   :  { %v2329_v50 = vadd.f32 %v2328_v20, %v2327_v6  ;;  %v2225_v61 = vpop.f32.mrf.mxu0 }
 0x458   :  { %v2265_v13 = vsel %vm891_vm7, %v2224_v4, 0.0 }
 0x459   :  { %v2330_v48 = vrot.slane %v2329_v50, 1  ;;  %v2266_v18 = vadd.f32 %v2265_v13, %v2264_v29  ;;  %v4505_v29 = vld [vmem:[%s6748_s7 + $0x28] sm:$0xff]  }
 0x45a   :  { %v2228_v58 = vpop.f32.mrf.mxu0  ;;  %3173 = vmatpush1.bf16.msra.mxu1 %v4505_v29 }
 0x45b   :  { %v2331_v37 = vadd.f32 %v2330_v48, %v2329_v50  ;;  %v2229_v28 = vadd.f32 %v5903_v39, %v2228_v58  ;;  %3174 = vmatprep.subr.bf16.mxu1 %v4533_v25 }
 0x45c   :  { %v2230_v36 = vpop.f32.mrf.mxu0 }
 0x45d   :  { %v2353_v49 = vmul.f32 0.015625, %v2331_v37  ;;  %v2267_v26 = vsel %vm891_vm7, %v2229_v28, 0.0 }
 0x45e   :  { %v2231_v12 = vpop.f32.mrf.mxu0  ;;  %v2268_v22 = vadd.f32 %v2267_v26, %v2266_v18 }
 0x45f   :  { %v2355_v54 = vadd.f32 1e-05, %v2353_v49  ;;  %v2232_v2 = vadd.f32 %v5903_v39, %v2231_v12 }
 0x460   :  { %v2233_v14 = vpop.f32.mrf.mxu0 }
 0x461   :  { %4516 = vrsqrt.f32 %v2355_v54  ;;  %v2269_v63 = vsel %vm891_vm7, %v2232_v2, 0.0  ;;  %v4506_v54 = vld [vmem:[%s6748_s7 + $0x20] sm:$0xff]  }
 0x462   :  { %v2270_v21 = vadd.f32 %v2269_v63, %v2268_v22  ;;  %3175 = vmatpush1.bf16.msra.mxu1 %v4506_v54  ;;  %v4509_v54 = vld [vmem:[%s6748_s7 + $0x8] sm:$0xff]  }
 0x463   :  { %3176 = vmatprep.subr.bf16.mxu1 %v4533_v25 }
 0x464   :  { %v2271_v42 = vrot.slane %v2270_v21, 4 }
 0x466   :  { %v2272_v34 = vadd.f32 %v2271_v42, %v2270_v21 }
 0x468   :  { %v2273_v39 = vrot.slane %v2272_v34, 2 }
 0x46a   :  { %v2274_v52 = vadd.f32 %v2273_v39, %v2272_v34 }
 0x46c   :  { %v2275_v10 = vrot.slane %v2274_v52, 1 }
 0x46e   :  { %v4517_v17 = vpop.eup %4516  ;;  %v2276_v41 = vadd.f32 %v2275_v10, %v2274_v52 }
 0x46f   :  { %v5986_v44 = vmul.f32 %v4517_v17, %v5948_v38  ;;  %v2360_v45 = vmul.f32 %v4517_v17, %v5923_v32  ;;  %v2361_v43 = vmul.f32 %v4517_v17, %v5925_v16  ;;  %v2359_v6 = vmul.f32 %v4517_v17, %v5921_v5 }
 0x470   :  { %v2278_v8 = vmul.f32 0.015625, %v2276_v41  ;;  %v5995_v35 = vmul.f32 %v4517_v17, %v5927_v31  ;;  %v2365_v46 = vmul.f32 %v4517_v17, %v5943_v3  ;;  %v2363_v57 = vmul.f32 %v4517_v17, %v5929_v40 }
 0x471   :  { %v5990_v60 = vmul.f32 0.2, %v5986_v44  ;;  %v2376_v16 = vmul.f32 0.2, %v2360_v45  ;;  %v2364_v47 = vmul.f32 %v4517_v17, %v5937_v62  ;;  %v2375_v18 = vmul.f32 0.2, %v2359_v6 }
 0x472   :  { %v5997_v56 = vsub.f32 %v2205_v30, %v2278_v8  ;;  %v5999_v20 = vsub.f32 %v2208_v7, %v2278_v8  ;;  %v6001_v1 = vsub.f32 %v2213_v55, %v2278_v8  ;;  %v6003_v38 = vsub.f32 %v2216_v23, %v2278_v8 }
 0x473   :  { %v6005_v32 = vsub.f32 %v2221_v0, %v2278_v8  ;;  %v6007_v9 = vsub.f32 %v2224_v4, %v2278_v8  ;;  %v6009_v53 = vsub.f32 %v2229_v28, %v2278_v8  ;;  %v6011_v59 = vsub.f32 %v2232_v2, %v2278_v8  ;;  %v4507_v8 = vld [vmem:[%s6748_s7 + $0x18] sm:$0xff]  }
 0x474   :  { %v2303_v5 = vmul.f32 %v5997_v56, %v5997_v56  ;;  %v2304_v31 = vmul.f32 %v5999_v20, %v5999_v20  ;;  %v2305_v7 = vmul.f32 %v6001_v1, %v6001_v1  ;;  %v2306_v30 = vmul.f32 %v6003_v38, %v6003_v38  ;;  %3177 = vmatpush1.bf16.msra.mxu1 %v4507_v8 }
 0x475   :  { %v2307_v55 = vmul.f32 %v6005_v32, %v6005_v32  ;;  %v2308_v23 = vmul.f32 %v6007_v9, %v6007_v9  ;;  %v2377_v0 = vmul.f32 0.2, %v2361_v43  ;;  %v2309_v50 = vmul.f32 %v6009_v53, %v6009_v53  ;;  %3178 = vmatprep.subr.bf16.mxu1 %v4533_v25 }
 0x476   :  { %v2310_v19 = vmul.f32 %v6011_v59, %v6011_v59  ;;  %v2332_v4 = vsel %vm891_vm7, %v2303_v5, 0.0  ;;  %v2333_v61 = vsel %vm891_vm7, %v2304_v31, 0.0  ;;  %v2398_v58 = vmax.f32 %v5986_v44, %v5990_v60 }
 0x477   :  { %v2334_v48 = vadd.f32 %v2333_v61, %v2332_v4  ;;  %v2335_v37 = vsel %vm891_vm7, %v2305_v7, 0.0  ;;  %v2337_v13 = vsel %vm891_vm7, %v2306_v30, 0.0  ;;  %v2339_v28 = vsel %vm891_vm7, %v2307_v55, 0.0 }
 0x478   :  { %v2341_v3 = vsel %vm891_vm7, %v2308_v23, 0.0  ;;  %v2343_v40 = vsel %vm891_vm7, %v2309_v50, 0.0  ;;  %v2345_v62 = vsel %vm891_vm7, %v2310_v19, 0.0  ;;  %v2392_v49 = vmax.f32 %v2360_v45, %v2376_v16 }
 0x479   :  { %v2336_v36 = vadd.f32 %v2335_v37, %v2334_v48  ;;  %v2393_v26 = vmax.f32 %v2361_v43, %v2377_v0  ;;  %v2378_v12 = vmul.f32 0.2, %v5995_v35  ;;  %v2379_v22 = vmul.f32 0.2, %v2363_v57 }
 0x47a   :  { %v2380_v14 = vmul.f32 0.2, %v2364_v47  ;;  %v2381_v63 = vmul.f32 0.2, %v2365_v46  ;;  %v2424_v21 = vrot.slane %v2392_v49, 7  ;;  %v2391_v24 = vmax.f32 %v2359_v6, %v2375_v18 }
 0x47b   :  { %v2338_v2 = vadd.f32 %v2337_v13, %v2336_v36  ;;  %v2425_v42 = vrot.slane %v2393_v26, 7  ;;  %v2394_v34 = vmax.f32 %v5995_v35, %v2378_v12  ;;  %v2395_v39 = vmax.f32 %v2363_v57, %v2379_v22 }
 0x47c   :  { %v2396_v52 = vmax.f32 %v2364_v47, %v2380_v14  ;;  %v2397_v10 = vmax.f32 %v2365_v46, %v2381_v63  ;;  %v6052_v17 = vsel %vm333_vm2, 0.0, %v2424_v21  ;;  %v2423_v44 = vrot.slane %v2391_v24, 7 }
 0x47d   :  { %v2340_v33 = vadd.f32 %v2339_v28, %v2338_v2  ;;  %v6055_v41 = vsel %vm333_vm2, 0.0, %v2425_v42  ;;  %v2472_v45 = vsel %vm333_vm2, %v2424_v21, 0.0  ;;  %v6064_v6 = vsel %vm333_vm2, %v2425_v42, 0.0  ;;  %v4508_v28 = vld [vmem:[%s6748_s7 + $0x10] sm:$0xff]  }
 0x47e   :  { %v4233_v43 = vpack.i.bf16 %v6055_v41, %v6052_v17  ;;  %v2602_v35 = vrot.slane %v6052_v17, 2  ;;  %v6069_v16 = vsel %vm333_vm2, 0.0, %v2423_v44  ;;  %v2603_v5 = vrot.slane %v2472_v45, 2  ;;  %3179 = vmatpush1.bf16.msra.mxu1 %v4508_v28 }
 0x47f   :  { %v2342_v60 = vadd.f32 %v2341_v3, %v2340_v33  ;;  %v2605_v31 = vrot.slane %v6055_v41, 2  ;;  %v2606_v7 = vrot.slane %v6064_v6, 2  ;;  %v4228_v55 = vpack.i.bf16 %v6052_v17, %v6069_v16  ;;  %3180 = vmatprep.subr.bf16.mxu1 %v4533_v25 }
 0x480   :  { %4234 = vrot.lane.b32.xlu1 %v4233_v43, %s4534_s27  ;;  %v2426_v23 = vrot.slane %v2394_v34, 7  ;;  %v2427_v0 = vrot.slane %v2395_v39, 7  ;;  %v2604_v50 = vsel %vm489_vm3, %v2602_v35, %v2603_v5  ;;  %v2428_v4 = vrot.slane %v2396_v52, 7 }
 0x481   :  { %v2344_v30 = vadd.f32 %v2343_v40, %v2342_v60  ;;  %v6078_v19 = vsel %vm489_vm3, %v2605_v31, %v2606_v7  ;;  %v6080_v61 = vrot.slane %v2397_v10, 7  ;;  %4229 = vrot.lane.b32.xlu0 %v4228_v55, %s4529_s23  ;;  %v6091_v37 = vrot.slane %v2398_v58, 7  ;;  %v4510_v55 = vld [vmem:[%s6748_s7] sm:$0xff]  }
 0x482   :  { %v3050_v48 = vpack.c.bf16 %v6078_v19, %v2604_v50  ;;  %v6085_v57 = vsel %vm333_vm2, 0.0, %v2426_v23  ;;  %v6088_v47 = vsel %vm333_vm2, 0.0, %v2427_v0  ;;  %v6102_v3 = vsel %vm333_vm2, 0.0, %v2428_v4  ;;  %3181 = vmatpush1.bf16.msra.mxu1 %v4509_v54 }
 0x483   :  { %v2346_v46 = vadd.f32 %v2345_v62, %v2344_v30  ;;  %v4238_v13 = vpack.i.bf16 %v6085_v57, %v6055_v41  ;;  %v4243_v36 = vpack.i.bf16 %v6088_v47, %v6085_v57  ;;  %v6106_v58 = vsel %vm333_vm2, 0.0, %v6080_v61  ;;  %3182 = vmatprep.subr.bf16.mxu1 %v4533_v25 }
 0x484   :  { %3576 = vmatprep.mubr.msk.bf16.mxu1 %vm891_vm7, %v3050_v48  ;;  %v2471_v40 = vsel %vm333_vm2, %v2423_v44, 0.0  ;;  %v2515_v62 = vrot.slane %v6069_v16, 1  ;;  %v2518_v49 = vrot.slane %v6052_v17, 1  ;;  %v2519_v26 = vrot.slane %v2472_v45, 1 }
 0x485   :  { %v2347_v29 = vrot.slane %v2346_v46, 4  ;;  %4239 = vrot.lane.b32.xlu1 %v4238_v13, %s4529_s23  ;;  %4244 = vrot.lane.b32.xlu0 %v4243_v36, %s4534_s27  ;;  %v2516_v12 = vrot.slane %v2471_v40, 1  ;;  %v6119_v2 = vsel %vm333_vm2, 0.0, %v6091_v37  ;;  %v4253_v22 = vpack.i.bf16 %v6106_v58, %v6102_v3 }
 0x486   :  { %v2599_v14 = vrot.slane %v6069_v16, 2  ;;  %v2600_v63 = vrot.slane %v2471_v40, 2  ;;  %v4248_v42 = vpack.i.bf16 %v6102_v3, %v6088_v47  ;;  %v2520_v34 = vsel %vm398_vm4, %v2518_v49, %v2519_v26  ;;  %3183 = vmatpush1.bf16.msra.mxu1 %v4510_v55 }
 0x487   :  { %v2348_v18 = vadd.f32 %v2347_v29, %v2346_v46  ;;  %v2517_v24 = vsel %vm398_vm4, %v2515_v62, %v2516_v12  ;;  %v4258_v39 = vpack.i.bf16 %v6119_v2, %v6106_v58  ;;  %v2521_v10 = vrot.slane %v6055_v41, 1  ;;  %3198 = vmatprep.subr.bf16.mxu1 %v4533_v25 }
 0x488   :  { %v2601_v52 = vsel %vm489_vm3, %v2599_v14, %v2600_v63  ;;  %v2522_v44 = vrot.slane %v6064_v6, 1  ;;  %v2474_v45 = vsel %vm333_vm2, %v2426_v23, 0.0  ;;  %v4263_v60 = vpack.i.bf16 %v2520_v34, %v2517_v24 }
 0x489   :  { %v2349_v21 = vrot.slane %v2348_v18, 2  ;;  %4254 = vrot.lane.b32.xlu1 %v4253_v22, %s4534_s27  ;;  %4249 = vrot.lane.b32.xlu0 %v4248_v42, %s4529_s23  ;;  %v2475_v43 = vsel %vm333_vm2, %v2427_v0, 0.0  ;;  %v2524_v35 = vrot.slane %v6085_v57, 1  ;;  %v2476_v5 = vsel %vm333_vm2, %v2428_v4, 0.0 }
 0x48a   :  { %v4268_v7 = vpack.i.bf16 %v2604_v50, %v2601_v52  ;;  %v2608_v6 = vrot.slane %v6085_v57, 2  ;;  %v2609_v30 = vrot.slane %v2474_v45, 2  ;;  %v2523_v23 = vsel %vm398_vm4, %v2521_v10, %v2522_v44  ;;  %v4511_v50 = vld [vmem:[%s6748_s7 + $0x40] sm:$0xff]  }
 0x48b   :  { %v2350_v33 = vadd.f32 %v2349_v21, %v2348_v18  ;;  %v2611_v0 = vrot.slane %v6088_v47, 2  ;;  %v2612_v46 = vrot.slane %v2475_v43, 2  ;;  %v2525_v13 = vrot.slane %v2474_v45, 1  ;;  %3199 = vmatpush2.bf16.msra.mxu1 %v4511_v50 }
 0x48c   :  { %v2614_v4 = vrot.slane %v6102_v3, 2  ;;  %v2615_v28 = vrot.slane %v2476_v5, 2  ;;  %v2477_v29 = vsel %vm333_vm2, %v6080_v61, 0.0  ;;  %v6158_v40 = vsel %vm489_vm3, %v2608_v6, %v2609_v30 }
 0x48d   :  { %v2351_v8 = vrot.slane %v2350_v33, 1  ;;  %4259 = vrot.lane.b32.xlu1 %v4258_v39, %s4529_s23  ;;  %4264 = vrot.lane.b32.xlu0 %v4263_v60, %s4526_s2  ;;  %v6161_v62 = vsel %vm489_vm3, %v2611_v0, %v2612_v46  ;;  %v4283_v49 = vpack.i.bf16 %v2523_v23, %v2520_v34  ;;  %v2617_v26 = vrot.slane %v6106_v58, 2 }
 0x48e   :  { %v2526_v18 = vsel %vm398_vm4, %v2524_v35, %v2525_v13  ;;  %v6166_v12 = vsel %vm489_vm3, %v2614_v4, %v2615_v28  ;;  %v2618_v61 = vrot.slane %v2477_v29, 2  ;;  %v3052_v25 = vpack.c.bf16 %v6161_v62, %v6158_v40 }
 0x48f   :  { %v2352_v31 = vadd.f32 %v2351_v8, %v2350_v33  ;;  %v4288_v22 = vpack.i.bf16 %v2526_v18, %v2523_v23  ;;  %v4293_v63 = vpack.i.bf16 %v6158_v40, %v6078_v19  ;;  %v2527_v21 = vrot.slane %v6088_v47, 1 }
 0x490   :  { %v6173_v54 = vsel %vm489_vm3, %v2617_v26, %v2618_v61  ;;  %v2528_v42 = vrot.slane %v2475_v43, 1  ;;  %v2530_v24 = vrot.slane %v6102_v3, 1  ;;  %v2531_v34 = vrot.slane %v2476_v5, 1 }
 0x491   :  { %v2354_v48 = vmul.f32 0.015625, %v2352_v31  ;;  %4269 = vrot.lane.b32.xlu1 %v4268_v7, %s4528_s22  ;;  %4279 = vrot.lane.b32.xlu0 %v4268_v7, %s4535_s5  ;;  %v3054_v14 = vpack.c.bf16 %v6173_v54, %v6166_v12  ;;  %v2478_v52 = vsel %vm333_vm2, %v6091_v37, 0.0  ;;  %v2533_v44 = vrot.slane %v6106_v58, 1 }
 0x492   :  { %v2529_v33 = vsel %vm398_vm4, %v2527_v21, %v2528_v42  ;;  %v2532_v39 = vsel %vm398_vm4, %v2530_v24, %v2531_v34  ;;  %v2534_v45 = vrot.slane %v2477_v29, 1  ;;  %v2790_v43 = vrot.slane %v2478_v52, 2 }
 0x493   :  { %v2356_v36 = vadd.f32 1e-05, %v2354_v48  ;;  %v4308_v19 = vpack.i.bf16 %v2529_v33, %v2526_v18  ;;  %v4313_v10 = vpack.i.bf16 %v2532_v39, %v2529_v33  ;;  %v4318_v35 = vpack.i.bf16 %v6166_v12, %v6161_v62 }
 0x494   :  { %v2789_v5 = vrot.slane %v6119_v2, 2  ;;  %v6203_v0 = vsel %vm398_vm4, %v2533_v44, %v2534_v45 }
 0x495   :  { %4518 = vrsqrt.f32 %v2356_v36  ;;  %4274 = vrot.lane.b32.xlu1 %v4263_v60, %s4532_s26  ;;  %4284 = vrot.lane.b32.xlu0 %v4283_v49, %s4536_s17  ;;  %v2736_v60 = vrot.slane %v2478_v52, 1  ;;  %v4333_v29 = vpack.i.bf16 %v6203_v0, %v2532_v39 }
 0x499   :  { %4289 = vrot.lane.b32.xlu1 %v4288_v22, %s4526_s2  ;;  %4294 = vrot.lane.b32.xlu0 %v4293_v63, %s4528_s22 }
 0x49d   :  { %4304 = vrot.lane.b32.xlu1 %v4293_v63, %s4535_s5  ;;  %4299 = vrot.lane.b32.xlu0 %v4288_v22, %s4532_s26 }
 0x4a1   :  { %4309 = vrot.lane.b32.xlu1 %v4308_v19, %s4536_s17  ;;  %4314 = vrot.lane.b32.xlu0 %v4313_v10, %s4526_s2 }
 0x4a2   :  { %v4519_v8 = vpop.eup %4518 }
 0x4a3   :  { %v2369_v37 = vmul.f32 %v4519_v8, %v6001_v1  ;;  %v2370_v31 = vmul.f32 %v4519_v8, %v6003_v38  ;;  %v2368_v7 = vmul.f32 %v4519_v8, %v5999_v20  ;;  %v2367_v6 = vmul.f32 %v4519_v8, %v5997_v56 }
 0x4a4   :  { %v2373_v30 = vmul.f32 %v4519_v8, %v6009_v53  ;;  %v2371_v55 = vmul.f32 %v4519_v8, %v6005_v32  ;;  %v2372_v23 = vmul.f32 %v4519_v8, %v6007_v9  ;;  %v2374_v13 = vmul.f32 %v4519_v8, %v6011_v59 }
 0x4a5   :  { %v2385_v46 = vmul.f32 0.2, %v2369_v37  ;;  %v2386_v48 = vmul.f32 0.2, %v2370_v31  ;;  %4319 = vrot.lane.b32.xlu1 %v4318_v35, %s4528_s22  ;;  %v2735_v1 = vrot.slane %v6119_v2, 1  ;;  %4329 = vrot.lane.b32.xlu0 %v4318_v35, %s4535_s5  ;;  %v6210_v56 = vsel %vm489_vm3, %v2789_v5, %v2790_v43 }
 0x4a6   :  { %v2384_v20 = vmul.f32 0.2, %v2368_v7  ;;  %v2383_v38 = vmul.f32 0.2, %v2367_v6  ;;  %v2389_v4 = vmul.f32 0.2, %v2373_v30  ;;  %v4343_v22 = vpack.i.bf16 %v6210_v56, %v6173_v54 }
 0x4a7   :  { %v2401_v32 = vmax.f32 %v2369_v37, %v2385_v46  ;;  %v2402_v9 = vmax.f32 %v2370_v31, %v2386_v48  ;;  %v2387_v28 = vmul.f32 0.2, %v2371_v55  ;;  %v2388_v50 = vmul.f32 0.2, %v2372_v23 }
 0x4a8   :  { %v2400_v53 = vmax.f32 %v2368_v7, %v2384_v20  ;;  %v2390_v49 = vmul.f32 0.2, %v2374_v13  ;;  %v6215_v26 = vsel %vm398_vm4, %v2735_v1, %v2736_v60  ;;  %v2399_v61 = vmax.f32 %v2367_v6, %v2383_v38 }
 0x4a9   :  { %v2433_v59 = vrot.slane %v2401_v32, 7  ;;  %v2434_v36 = vrot.slane %v2402_v9, 7  ;;  %4324 = vrot.lane.b32.xlu1 %v4313_v10, %s4532_s26  ;;  %4334 = vrot.lane.b32.xlu0 %v4333_v29, %s4536_s17  ;;  %v2405_v24 = vmax.f32 %v2373_v30, %v2389_v4  ;;  %v2403_v34 = vmax.f32 %v2371_v55, %v2387_v28 }
 0x4aa   :  { %v2432_v18 = vrot.slane %v2400_v53, 7  ;;  %v2404_v33 = vmax.f32 %v2372_v23, %v2388_v50  ;;  %v4338_v39 = vpack.i.bf16 %v6215_v26, %v6203_v0  ;;  %v2406_v52 = vmax.f32 %v2374_v13, %v2390_v49 }
 0x4ab   :  { %v6221_v63 = vsel %vm333_vm2, 0.0, %v2433_v59  ;;  %v6224_v21 = vsel %vm333_vm2, 0.0, %v2434_v36  ;;  %v2431_v10 = vrot.slane %v2399_v61, 7  ;;  %v2437_v45 = vrot.slane %v2405_v24, 7 }
 0x4ac   :  { %v6227_v42 = vsel %vm333_vm2, 0.0, %v2432_v18  ;;  %v4358_v19 = vpack.i.bf16 %v6224_v21, %v6221_v63  ;;  %v2435_v8 = vrot.slane %v2403_v34, 7  ;;  %v2436_v60 = vrot.slane %v2404_v33, 7 }
 0x4ad   :  { %4344 = vrot.lane.b32.xlu1 %v4343_v22, %s4535_s5  ;;  %4339 = vrot.lane.b32.xlu0 %v4338_v39, %s4532_s26  ;;  %v4348_v44 = vpack.i.bf16 %v6227_v42, %v6119_v2  ;;  %v6237_v43 = vrot.slane %v2406_v52, 7  ;;  %v6241_v35 = vsel %vm333_vm2, 0.0, %v2431_v10  ;;  %v6245_v5 = vsel %vm333_vm2, 0.0, %v2437_v45 }
 0x4ae   :  { %v6248_v37 = vsel %vm333_vm2, 0.0, %v2435_v8  ;;  %v6251_v2 = vsel %vm333_vm2, 0.0, %v2436_v60  ;;  %v2479_v31 = vsel %vm333_vm2, %v2431_v10, 0.0  ;;  %v4353_v7 = vpack.i.bf16 %v6227_v42, %v6241_v35 }
 0x4af   :  { %v2480_v6 = vsel %vm333_vm2, %v2432_v18, 0.0  ;;  %v6259_v30 = vsel %vm333_vm2, 0.0, %v6237_v43  ;;  %v2481_v55 = vsel %vm333_vm2, %v2433_v59, 0.0  ;;  %v2482_v23 = vsel %vm333_vm2, %v2434_v36, 0.0 }
 0x4b0   :  { %v2638_v46 = vrot.slane %v6245_v5, 2  ;;  %v4368_v48 = vpack.i.bf16 %v6251_v2, %v6248_v37  ;;  %v2536_v13 = vrot.slane %v6241_v35, 1  ;;  %v2537_v1 = vrot.slane %v2479_v31, 1 }
 0x4b1   :  { %4359 = vrot.lane.b32.xlu1 %v4358_v19, %s4534_s27  ;;  %4349 = vrot.lane.b32.xlu0 %v4348_v44, %s4534_s27  ;;  %v2623_v20 = vrot.slane %v6227_v42, 2  ;;  %v2624_v38 = vrot.slane %v2480_v6, 2  ;;  %v2626_v32 = vrot.slane %v6221_v63, 2  ;;  %v2483_v9 = vsel %vm333_vm2, %v2435_v8, 0.0 }
 0x4b2   :  { %v2627_v53 = vrot.slane %v2481_v55, 2  ;;  %v2629_v4 = vrot.slane %v6224_v21, 2  ;;  %v2630_v28 = vrot.slane %v2482_v23, 2  ;;  %v2484_v50 = vsel %vm333_vm2, %v2436_v60, 0.0 }
 0x4b3   :  { %v4378_v29 = vpack.i.bf16 %v6259_v30, %v6245_v5  ;;  %v2620_v59 = vrot.slane %v6241_v35, 2  ;;  %v2621_v36 = vrot.slane %v2479_v31, 2  ;;  %v2539_v49 = vrot.slane %v6227_v42, 1 }
 0x4b4   :  { %v2632_v18 = vrot.slane %v6248_v37, 2  ;;  %v2633_v61 = vrot.slane %v2483_v9, 2  ;;  %v2635_v22 = vrot.slane %v6251_v2, 2  ;;  %v2538_v24 = vsel %vm398_vm4, %v2536_v13, %v2537_v1 }
 0x4b5   :  { %4364 = vrot.lane.b32.xlu1 %v4358_v19, %s4529_s23  ;;  %4354 = vrot.lane.b32.xlu0 %v4353_v7, %s4529_s23  ;;  %v2540_v34 = vrot.slane %v2480_v6, 1  ;;  %v2636_v33 = vrot.slane %v2484_v50, 2  ;;  %v2485_v39 = vsel %vm333_vm2, %v2437_v45, 0.0  ;;  %v6286_v52 = vsel %vm489_vm3, %v2623_v20, %v2624_v38 }
 0x4b6   :  { %v6289_v19 = vsel %vm489_vm3, %v2626_v32, %v2627_v53  ;;  %v6292_v10 = vsel %vm489_vm3, %v2629_v4, %v2630_v28  ;;  %v6295_v44 = vsel %vm489_vm3, %v2632_v18, %v2633_v61  ;;  %v2622_v8 = vsel %vm489_vm3, %v2620_v59, %v2621_v36 }
 0x4b7   :  { %v6301_v45 = vsel %vm489_vm3, %v2635_v22, %v2636_v33  ;;  %v2639_v60 = vrot.slane %v2485_v39, 2  ;;  %v4383_v31 = vpack.i.bf16 %v2538_v24, %v6203_v0  ;;  %v3058_v7 = vpack.c.bf16 %v6289_v19, %v6286_v52 }
 0x4b8   :  { %v3060_v6 = vpack.c.bf16 %v6295_v44, %v6292_v10  ;;  %v4388_v13 = vpack.i.bf16 %v2622_v8, %v6173_v54  ;;  %v2541_v1 = vsel %vm398_vm4, %v2539_v49, %v2540_v34  ;;  %v2542_v20 = vrot.slane %v6221_v63, 1 }
 0x4b9   :  { %2867 = vrot.lane.b32.xlu1 %v6245_v5, %s4534_s27  ;;  %4369 = vrot.lane.b32.xlu0 %v4368_v48, %s4534_s27  ;;  %v2543_v38 = vrot.slane %v2481_v55, 1  ;;  %v2545_v0 = vrot.slane %v6224_v21, 1  ;;  %v2546_v32 = vrot.slane %v2482_v23, 1  ;;  %v4393_v4 = vpack.i.bf16 %v2541_v1, %v6215_v26 }
 0x4ba   :  { %v4403_v28 = vpack.i.bf16 %v6286_v52, %v2622_v8  ;;  %v4398_v55 = vpack.i.bf16 %v2541_v1, %v2538_v24  ;;  %v2548_v36 = vrot.slane %v6248_v37, 1  ;;  %v4418_v26 = vpack.i.bf16 %v6289_v19, %v6286_v52 }
 0x4bb   :  { %v2549_v49 = vrot.slane %v2483_v9, 1  ;;  %v2551_v18 = vrot.slane %v6251_v2, 1  ;;  %v2552_v61 = vrot.slane %v2484_v50, 1  ;;  %v4428_v22 = vpack.i.bf16 %v6292_v10, %v6289_v19 }
 0x4bc   :  { %v4443_v50 = vpack.i.bf16 %v6295_v44, %v6292_v10  ;;  %v4453_v8 = vpack.i.bf16 %v6301_v45, %v6295_v44 }
 0x4bd   :  { %4379 = vrot.lane.b32.xlu1 %v4378_v29, %s4529_s23  ;;  %4374 = vrot.lane.b32.xlu0 %v4368_v48, %s4529_s23  ;;  %v6312_v48 = vsel %vm489_vm3, %v2638_v46, %v2639_v60  ;;  %v2544_v46 = vsel %vm398_vm4, %v2542_v20, %v2543_v38  ;;  %v2547_v29 = vsel %vm398_vm4, %v2545_v0, %v2546_v32  ;;  %v2554_v60 = vrot.slane %v6245_v5, 1 }
 0x4be   :  { %v4408_v59 = vpack.i.bf16 %v2547_v29, %v2544_v46  ;;  %v4413_v23 = vpack.i.bf16 %v2544_v46, %v2541_v1  ;;  %v2550_v24 = vsel %vm398_vm4, %v2548_v36, %v2549_v49  ;;  %v2553_v34 = vsel %vm398_vm4, %v2551_v18, %v2552_v61 }
 0x4bf   :  { %v4433_v33 = vpack.i.bf16 %v2553_v34, %v2550_v24  ;;  %v4438_v9 = vpack.i.bf16 %v2550_v24, %v2547_v29  ;;  %v2792_v38 = vrot.slane %v6259_v30, 2  ;;  %v2738_v32 = vrot.slane %v6259_v30, 1 }
 0x4c1   :  { %4384 = vrot.lane.b32.xlu1 %v4383_v31, %s4526_s2  ;;  %4389 = vrot.lane.b32.xlu0 %v4388_v13, %s4528_s22  ;;  %v2555_v31 = vrot.slane %v2485_v39, 1  ;;  %v2486_v13 = vsel %vm333_vm2, %v6237_v43, 0.0  ;;  %v4463_v43 = vpack.i.bf16 %v6312_v48, %v6301_v45  ;;  %vm3493_vm2 = vcmask 1041409  }
 0x4c2   :  { %v2793_v1 = vrot.slane %v2486_v13, 2  ;;  %v2739_v0 = vrot.slane %v2486_v13, 1 }
 0x4c3   :  { %v2556_v20 = vsel %vm398_vm4, %v2554_v60, %v2555_v31 }
 0x4c4   :  { %v4458_v39 = vpack.i.bf16 %v2556_v20, %v2553_v34 }
 0x4c5   :  { %4394 = vrot.lane.b32.xlu1 %v4393_v4, %s4536_s17  ;;  %4404 = vrot.lane.b32.xlu0 %v4403_v28, %s4535_s5  ;;  %v6358_v4 = vsel %vm489_vm3, %v2792_v38, %v2793_v1  ;;  %v2740_v28 = vsel %vm398_vm4, %v2738_v32, %v2739_v0  ;;  %vm3496_vm3 = vcmask 123904   ;;  %vm3508_vm4 = vcmask 1024  }
 0x4c6   :  { %v4473_v46 = vpack.i.bf16 %v6358_v4, %v6312_v48  ;;  %v4468_v29 = vpack.i.bf16 %v2740_v28, %v2556_v20 }
 0x4c9   :  { %4399 = vrot.lane.b32.xlu1 %v4398_v55, %s4532_s26  ;;  %4409 = vrot.lane.b32.xlu0 %v4408_v59, %s4536_s17 }
 0x4cd   :  { %4414 = vrot.lane.b32.xlu1 %v4413_v23, %s4526_s2  ;;  %4419 = vrot.lane.b32.xlu0 %v4418_v26, %s4528_s22 }
 0x4d1   :  { %4429 = vrot.lane.b32.xlu1 %v4428_v22, %s4535_s5  ;;  %4424 = vrot.lane.b32.xlu0 %v4408_v59, %s4532_s26 }
 0x4d5   :  { %4434 = vrot.lane.b32.xlu1 %v4433_v33, %s4536_s17  ;;  %4439 = vrot.lane.b32.xlu0 %v4438_v9, %s4526_s2 }
 0x4d9   :  { %4444 = vrot.lane.b32.xlu1 %v4443_v50, %s4528_s22  ;;  %4454 = vrot.lane.b32.xlu0 %v4453_v8, %s4535_s5 }
 0x4dd   :  { %4449 = vrot.lane.b32.xlu1 %v4433_v33, %s4532_s26  ;;  %2909 = vrot.lane.b32.xlu0 %v2556_v20, %s4536_s17 }
 0x4e1   :  { %4459 = vrot.lane.b32.xlu1 %v4458_v39, %s4526_s2  ;;  %4464 = vrot.lane.b32.xlu0 %v4463_v43, %s4528_s22 }
 0x4e5   :  { %4474 = vrot.lane.b32.xlu1 %v4473_v46, %s4535_s5  ;;  %4469 = vrot.lane.b32.xlu0 %v4468_v29, %s4532_s26 }
 0x4e9   :  { %2911 = vrot.lane.b32.xlu1 %v2740_v28, %s4536_s17  ;;  %2869 = vrot.lane.b32.xlu0 %v6259_v30, %s4534_s27 }
 0x4f2   :  { %v4235_v55 = vpop.permute.xlu1 %4234 }
 0x4f3   :  { %v4230_v59 = vpop.permute.xlu0 %4229  ;;  %v4237_v31 = vunpack.i.h.bf16 %v4235_v55  ;;  %v4236_v13 = vunpack.i.l.bf16 %v4235_v55 }
 0x4f4   :  { %v4231_v9 = vunpack.i.l.bf16 %v4230_v59  ;;  %v4232_v8 = vunpack.i.h.bf16 %v4230_v59 }
 0x4f6   :  { %v2969_v0 = vsel %vm958_vm11, %v5715_v11, %v4231_v9 }
 0x4f7   :  { %v4240_v23 = vpop.permute.xlu1 %4239  ;;  %v6370_v36 = vpop.permute.xlu0 %4244 }
 0x4fb   :  { %v6372_v26 = vpop.permute.xlu1 %4254  ;;  %v6374_v49 = vpop.permute.xlu0 %4249 }
 0x4fc   :  { %v4256_v12 = vunpack.i.l.bf16 %v6372_v26 }
 0x4ff   :  { %v6376_v18 = vpop.permute.xlu1 %4259  ;;  %v4265_v61 = vpop.permute.xlu0 %4264 }
 0x500   :  { %v4266_v22 = vunpack.i.l.bf16 %v4265_v61  ;;  %v4267_v28 = vunpack.i.h.bf16 %v4265_v61 }
 0x502   :  { %v2941_v30 = vsel %vm891_vm7, %v6069_v16, %v4266_v22 }
 0x503   :  { %v4270_v24 = vpop.permute.xlu1 %4269  ;;  %v4280_v33 = vpop.permute.xlu0 %4279 }
 0x504   :  { %v4271_v34 = vunpack.i.l.bf16 %v4270_v24  ;;  %v4282_v32 = vunpack.i.h.bf16 %v4280_v33  ;;  %v4281_v39 = vunpack.i.l.bf16 %v4280_v33  ;;  %v4272_v46 = vunpack.i.h.bf16 %v4270_v24 }
 0x506   :  { %v2955_v50 = vsel %vm924_vm9, %v2941_v30, %v4271_v34 }
 0x507   :  { %v4275_v60 = vpop.permute.xlu1 %4274  ;;  %v4285_v38 = vpop.permute.xlu0 %4284  ;;  %v2970_v43 = vsel %vm958_vm11, %v2955_v50, %v4232_v8  ;;  %v4242_v8 = vunpack.i.h.bf16 %v4240_v23 }
 0x508   :  { %v4277_v1 = vunpack.i.h.bf16 %v4275_v60  ;;  %v4276_v20 = vunpack.i.l.bf16 %v4275_v60  ;;  %v4287_v22 = vunpack.i.h.bf16 %v4285_v38  ;;  %v4286_v34 = vunpack.i.l.bf16 %v4285_v38 }
 0x50a   :  { %v2985_v16 = vsel %vm992_vm13, %v2969_v0, %v4276_v20  ;;  %v2986_v29 = vsel %vm992_vm13, %v2970_v43, %v4277_v1  ;;  %v2942_v1 = vsel %vm891_vm7, %v6052_v17, %v4267_v28  ;;  %v4247_v17 = vunpack.i.h.bf16 %v6370_v36 }
 0x50b   :  { %v3001_v59 = vsel %vm1968_vm15, %v2985_v16, %v4281_v39  ;;  %v3002_v55 = vsel %vm1968_vm15, %v2986_v29, %v4282_v32  ;;  %v4290_v30 = vpop.permute.xlu1 %4289  ;;  %v4295_v53 = vpop.permute.xlu0 %4294  ;;  %v2956_v0 = vsel %vm924_vm9, %v2942_v1, %v4272_v46  ;;  %v4241_v32 = vunpack.i.l.bf16 %v4240_v23 }
 0x50c   :  { %v3017_v60 = vsel %vm1985_vm0, %v3001_v59, %v4236_v13  ;;  %v3018_v9 = vsel %vm1985_vm0, %v3002_v55, %v4237_v31  ;;  %v4291_v33 = vunpack.i.l.bf16 %v4290_v30  ;;  %v4296_v50 = vunpack.i.l.bf16 %v4295_v53 }
 0x50d   :  { %v3033_v61 = vsel %vm2002_vm1, %v3017_v60, %v4286_v34  ;;  %v3034_v24 = vsel %vm2002_vm1, %v3018_v9, %v4287_v22  ;;  %v4246_v28 = vunpack.i.l.bf16 %v6370_v36  ;;  %v4292_v23 = vunpack.i.h.bf16 %v4290_v30 }
 0x50e   :  { %v3049_v20 = vpack.c.bf16 %v3034_v24, %v3033_v61  ;;  %v2943_v38 = vsel %vm891_vm7, %v6055_v41, %v4291_v33  ;;  %v2971_v41 = vsel %vm958_vm11, %v2956_v0, %v4241_v32 }
 0x50f   :  { %v2957_v13 = vsel %vm924_vm9, %v2943_v38, %v4296_v50  ;;  %v4305_v31 = vpop.permute.xlu1 %4304  ;;  %v4300_v16 = vpop.permute.xlu0 %4299  ;;  %v4297_v50 = vunpack.i.h.bf16 %v4295_v53  ;;  %v4252_v53 = vunpack.i.h.bf16 %v6374_v49 }
 0x510   :  { %v4307_v39 = vunpack.i.h.bf16 %v4305_v31  ;;  %v4306_v43 = vunpack.i.l.bf16 %v4305_v31  ;;  %v2972_v29 = vsel %vm958_vm11, %v2957_v13, %v4242_v8  ;;  %3201 = vmatmul.mubr.bf16.vlgmr.msra.gmra.mxu1 %v3049_v20  ;;  %v4302_v59 = vunpack.i.h.bf16 %v4300_v16 }
 0x511   :  { %v4301_v55 = vunpack.i.l.bf16 %v4300_v16  ;;  %3577 = vmatprep.mubr.msk.bf16.mxu1 %vm891_vm7, %v3052_v25  ;;  %v2944_v8 = vsel %vm891_vm7, %v6085_v57, %v4292_v23  ;;  %v4251_v57 = vunpack.i.l.bf16 %v6374_v49 }
 0x512   :  { %v2988_v22 = vsel %vm992_vm13, %v2972_v29, %v4302_v59  ;;  %v2958_v31 = vsel %vm924_vm9, %v2944_v8, %v4297_v50 }
 0x513   :  { %v2987_v46 = vsel %vm992_vm13, %v2971_v41, %v4301_v55  ;;  %v4310_v34 = vpop.permute.xlu1 %4309  ;;  %v3004_v9 = vsel %vm1968_vm15, %v2988_v22, %v4307_v39  ;;  %v4315_v62 = vpop.permute.xlu0 %4314  ;;  %v2973_v55 = vsel %vm958_vm11, %v2958_v31, %v4251_v57  ;;  %v4257_v41 = vunpack.i.h.bf16 %v6372_v26 }
 0x514   :  { %v3003_v60 = vsel %vm1968_vm15, %v2987_v46, %v4306_v43  ;;  %v4312_v33 = vunpack.i.h.bf16 %v4310_v34  ;;  %v4311_v40 = vunpack.i.l.bf16 %v4310_v34  ;;  %v4316_v25 = vunpack.i.l.bf16 %v4315_v62 }
 0x515   :  { %v3019_v61 = vsel %vm1985_vm0, %v3003_v60, %v4246_v28  ;;  %v3020_v24 = vsel %vm1985_vm0, %v3004_v9, %v4247_v17 }
 0x516   :  { %v3035_v36 = vsel %vm2002_vm1, %v3019_v61, %v4311_v40  ;;  %v3036_v30 = vsel %vm2002_vm1, %v3020_v24, %v4312_v33  ;;  %v2945_v13 = vsel %vm891_vm7, %v6088_v47, %v4316_v25  ;;  %v3056_v25 = vpack.c.bf16 %v4668_v51, %v6210_v56 }
 0x517   :  { %v4320_v1 = vpop.permute.xlu1 %4319  ;;  %v3051_v20 = vpack.c.bf16 %v3036_v30, %v3035_v36  ;;  %v4330_v0 = vpop.permute.xlu0 %4329 }
 0x518   :  { %v4321_v38 = vunpack.i.l.bf16 %v4320_v1  ;;  %v4332_v59 = vunpack.i.h.bf16 %v4330_v0  ;;  %v4331_v47 = vunpack.i.l.bf16 %v4330_v0 }
 0x519   :  { %3209 = vmatmul.mubr.bf16.gmra.mxu1 %v3051_v20  ;;  %v4317_v20 = vunpack.i.h.bf16 %v4315_v62 }
 0x51a   :  { %v2959_v32 = vsel %vm924_vm9, %v2945_v13, %v4321_v38  ;;  %3578 = vmatprep.mubr.msk.bf16.mxu1 %vm891_vm7, %v3054_v14  ;;  %v4322_v38 = vunpack.i.h.bf16 %v4320_v1 }
 0x51b   :  { %v4325_v39 = vpop.permute.xlu1 %4324  ;;  %v4335_v29 = vpop.permute.xlu0 %4334  ;;  %v2974_v17 = vsel %vm958_vm11, %v2959_v32, %v4252_v53  ;;  %v2946_v56 = vsel %vm891_vm7, %v6102_v3, %v4317_v20  ;;  %v4261_v53 = vunpack.i.l.bf16 %v6376_v18 }
 0x51c   :  { %v4327_v43 = vunpack.i.h.bf16 %v4325_v39  ;;  %v4326_v16 = vunpack.i.l.bf16 %v4325_v39  ;;  %v4337_v23 = vunpack.i.h.bf16 %v4335_v29  ;;  %v4336_v46 = vunpack.i.l.bf16 %v4335_v29 }
 0x51d   :  { %v2960_v31 = vsel %vm924_vm9, %v2946_v56, %v4322_v38  ;;  %v4262_v29 = vunpack.i.h.bf16 %v6376_v18 }
 0x51e   :  { %v2989_v54 = vsel %vm992_vm13, %v2973_v55, %v4326_v16  ;;  %v2990_v14 = vsel %vm992_vm13, %v2974_v17, %v4327_v43  ;;  %v2975_v1 = vsel %vm958_vm11, %v2960_v31, %v4261_v53 }
 0x51f   :  { %v3005_v49 = vsel %vm1968_vm15, %v2989_v54, %v4331_v47  ;;  %v3006_v28 = vsel %vm1968_vm15, %v2990_v14, %v4332_v59  ;;  %v4345_v22 = vpop.permute.xlu1 %4344  ;;  %v4340_v34 = vpop.permute.xlu0 %4339 }
 0x520   :  { %v3021_v60 = vsel %vm1985_vm0, %v3005_v49, %v4256_v12  ;;  %v3022_v9 = vsel %vm1985_vm0, %v3006_v28, %v4257_v41  ;;  %v4341_v32 = vunpack.i.l.bf16 %v4340_v34  ;;  %v4346_v62 = vunpack.i.l.bf16 %v4345_v22 }
 0x521   :  { %v3037_v33 = vsel %vm2002_vm1, %v3021_v60, %v4336_v46  ;;  %v3038_v26 = vsel %vm2002_vm1, %v3022_v9, %v4337_v23  ;;  %v4342_v47 = vunpack.i.h.bf16 %v4340_v34  ;;  %v4347_v49 = vunpack.i.h.bf16 %v4345_v22 }
 0x522   :  { %v3053_v40 = vpack.c.bf16 %v3038_v26, %v3037_v33  ;;  %v2991_v55 = vsel %vm992_vm13, %v2975_v1, %v4341_v32 }
 0x523   :  { %v6440_v61 = vpop.permute.xlu1 %4359  ;;  %v6442_v24 = vpop.permute.xlu0 %4349  ;;  %v3007_v60 = vsel %vm1968_vm15, %v2991_v55, %v4346_v62 }
 0x524   :  { %3217 = vmatmul.mubr.bf16.gmra.mxu1 %v3053_v40  ;;  %v4351_v41 = vunpack.i.l.bf16 %v6442_v24 }
 0x525   :  { %3579 = vmatprep.mubr.msk.bf16.mxu1 %vm891_vm7, %v3056_v25 }
 0x526   :  { %v3023_v33 = vsel %vm1985_vm0, %v3007_v60, %v4351_v41 }
 0x527   :  { %v6445_v50 = vpop.permute.xlu1 %4364  ;;  %v4355_v36 = vpop.permute.xlu0 %4354 }
 0x528   :  { %v4356_v12 = vunpack.i.l.bf16 %v4355_v36  ;;  %v4357_v26 = vunpack.i.h.bf16 %v4355_v36 }
 0x52b   :  { %v6447_v30 = vpop.permute.xlu1 %2867  ;;  %v6449_v8 = vpop.permute.xlu0 %4369 }
 0x52f   :  { %v6451_v0 = vpop.permute.xlu1 %4379  ;;  %v6453_v13 = vpop.permute.xlu0 %4374 }
 0x533   :  { %v4385_v57 = vpop.permute.xlu1 %4384  ;;  %v4390_v16 = vpop.permute.xlu0 %4389 }
 0x534   :  { %v4387_v39 = vunpack.i.h.bf16 %v4385_v57  ;;  %v4386_v43 = vunpack.i.l.bf16 %v4385_v57  ;;  %v4391_v59 = vunpack.i.l.bf16 %v4390_v16  ;;  %v4392_v17 = vunpack.i.h.bf16 %v4390_v16 }
 0x536   :  { %v2947_v3 = vsel %vm891_vm7, %v6106_v58, %v4386_v43  ;;  %v2948_v54 = vsel %vm891_vm7, %v6241_v35, %v4387_v39  ;;  %v2977_v35 = vsel %vm958_vm11, %v5715_v11, %v4356_v12  ;;  %v4361_v39 = vunpack.i.l.bf16 %v6440_v61 }
 0x537   :  { %v2961_v14 = vsel %vm924_vm9, %v2947_v3, %v4391_v59  ;;  %v4395_v18 = vpop.permute.xlu1 %4394  ;;  %v4405_v46 = vpop.permute.xlu0 %4404  ;;  %v2962_v58 = vsel %vm924_vm9, %v2948_v54, %v4392_v17  ;;  %v4352_v11 = vunpack.i.h.bf16 %v6442_v24  ;;  %v4367_v12 = vunpack.i.h.bf16 %v6445_v50 }
 0x538   :  { %v2976_v28 = vsel %vm958_vm11, %v2961_v14, %v4262_v29  ;;  %v4396_v23 = vunpack.i.l.bf16 %v4395_v18  ;;  %v4407_v32 = vunpack.i.h.bf16 %v4405_v46  ;;  %v4406_v53 = vunpack.i.l.bf16 %v4405_v46 }
 0x539   :  { %v2992_v34 = vsel %vm992_vm13, %v2976_v28, %v4342_v47  ;;  %v2978_v57 = vsel %vm958_vm11, %v2962_v58, %v4357_v26  ;;  %v4397_v29 = vunpack.i.h.bf16 %v4395_v18  ;;  %v4366_v54 = vunpack.i.l.bf16 %v6445_v50 }
 0x53a   :  { %v3008_v9 = vsel %vm1968_vm15, %v2992_v34, %v4347_v49  ;;  %v3039_v56 = vsel %vm2002_vm1, %v3023_v33, %v4396_v23 }
 0x53b   :  { %v4400_v40 = vpop.permute.xlu1 %4399  ;;  %v3024_v22 = vsel %vm1985_vm0, %v3008_v9, %v5790_v27  ;;  %v4410_v38 = vpop.permute.xlu0 %4409 }
 0x53c   :  { %v4402_v25 = vunpack.i.h.bf16 %v4400_v40  ;;  %v4401_v20 = vunpack.i.l.bf16 %v4400_v40  ;;  %v3040_v31 = vsel %vm2002_vm1, %v3024_v22, %v5795_v15  ;;  %v4411_v59 = vunpack.i.l.bf16 %v4410_v38 }
 0x53d   :  { %v3055_v36 = vpack.c.bf16 %v3040_v31, %v3039_v56 }
 0x53e   :  { %v2993_v43 = vsel %vm992_vm13, %v2977_v35, %v4401_v20  ;;  %v2994_v16 = vsel %vm992_vm13, %v2978_v57, %v4402_v25  ;;  %v4371_v35 = vunpack.i.l.bf16 %v6449_v8  ;;  %v4412_v20 = vunpack.i.h.bf16 %v4410_v38 }
 0x53f   :  { %v3009_v62 = vsel %vm1968_vm15, %v2993_v43, %v4406_v53  ;;  %v3010_v1 = vsel %vm1968_vm15, %v2994_v16, %v4407_v32  ;;  %v4415_v47 = vpop.permute.xlu1 %4414  ;;  %3225 = vmatmul.mubr.bf16.gmra.mxu1 %v3055_v36  ;;  %v4420_v17 = vpop.permute.xlu0 %4419 }
 0x540   :  { %v4417_v55 = vunpack.i.h.bf16 %v4415_v47  ;;  %v4416_v3 = vunpack.i.l.bf16 %v4415_v47  ;;  %3580 = vmatprep.mubr.msk.bf16.mxu1 %vm891_vm7, %v3058_v7  ;;  %v3025_v24 = vsel %vm1985_vm0, %v3009_v62, %v4352_v11  ;;  %v3026_v41 = vsel %vm1985_vm0, %v3010_v1, %v4361_v39 }
 0x541   :  { %v4422_v14 = vunpack.i.h.bf16 %v4420_v17  ;;  %v4421_v18 = vunpack.i.l.bf16 %v4420_v17  ;;  %v3041_v52 = vsel %vm2002_vm1, %v3025_v24, %v4397_v29  ;;  %v3042_v19 = vsel %vm2002_vm1, %v3026_v41, %v4411_v59 }
 0x542   :  { %v2950_v49 = vsel %vm891_vm7, %v6221_v63, %v4417_v55  ;;  %v2949_v28 = vsel %vm891_vm7, %v6227_v42, %v4416_v3  ;;  %v3057_v26 = vpack.c.bf16 %v3042_v19, %v3041_v52  ;;  %v4362_v42 = vunpack.i.h.bf16 %v6440_v61 }
 0x543   :  { %v2964_v7 = vsel %vm924_vm9, %v2950_v49, %v4422_v14  ;;  %v2963_v23 = vsel %vm924_vm9, %v2949_v28, %v4421_v18  ;;  %v4430_v46 = vpop.permute.xlu1 %4429  ;;  %v4425_v50 = vpop.permute.xlu0 %4424  ;;  %v4377_v47 = vunpack.i.h.bf16 %v6453_v13  ;;  %v4376_v55 = vunpack.i.l.bf16 %v6453_v13 }
 0x544   :  { %v4432_v34 = vunpack.i.h.bf16 %v4430_v46  ;;  %v4431_v60 = vunpack.i.l.bf16 %v4430_v46  ;;  %v2979_v58 = vsel %vm958_vm11, %v2963_v23, %v4366_v54  ;;  %v2980_v9 = vsel %vm958_vm11, %v2964_v7, %v4367_v12 }
 0x545   :  { %v4427_v63 = vunpack.i.h.bf16 %v4425_v50  ;;  %v4426_v33 = vunpack.i.l.bf16 %v4425_v50  ;;  %v4372_v18 = vunpack.i.h.bf16 %v6449_v8  ;;  %v4382_v28 = vunpack.i.h.bf16 %v6451_v0 }
 0x547   :  { %v2995_v40 = vsel %vm992_vm13, %v2979_v58, %v4426_v33  ;;  %v2996_v22 = vsel %vm992_vm13, %v2980_v9, %v4427_v63  ;;  %v4435_v25 = vpop.permute.xlu1 %4434  ;;  %3233 = vmatmul.mubr.bf16.gmra.mxu1 %v3057_v26  ;;  %v4440_v53 = vpop.permute.xlu0 %4439  ;;  %v4381_v63 = vunpack.i.l.bf16 %v6451_v0 }
 0x548   :  { %v3011_v56 = vsel %vm1968_vm15, %v2995_v40, %v4431_v60  ;;  %v3012_v31 = vsel %vm1968_vm15, %v2996_v22, %v4432_v34  ;;  %v4436_v32 = vunpack.i.l.bf16 %v4435_v25  ;;  %3581 = vmatprep.mubr.msk.bf16.mxu1 %vm891_vm7, %v3060_v6  ;;  %v4442_v61 = vunpack.i.h.bf16 %v4440_v53 }
 0x549   :  { %v4441_v57 = vunpack.i.l.bf16 %v4440_v53  ;;  %v3027_v36 = vsel %vm1985_vm0, %v3011_v56, %v4362_v42  ;;  %v3028_v39 = vsel %vm1985_vm0, %v3012_v31, %v4371_v35  ;;  %v4437_v52 = vunpack.i.h.bf16 %v4435_v25 }
 0x54a   :  { %v3043_v11 = vsel %vm2002_vm1, %v3027_v36, %v4412_v20  ;;  %v3044_v38 = vsel %vm2002_vm1, %v3028_v39, %v4436_v32  ;;  %v2952_v1 = vsel %vm891_vm7, %v6248_v37, %v4442_v61  ;;  %v6753_v37 = vpack.c.bf16 %v6312_v48, %v6301_v45 }
 0x54b   :  { %v4445_v43 = vpop.permute.xlu1 %4444  ;;  %v4455_v62 = vpop.permute.xlu0 %4454  ;;  %v2951_v10 = vsel %vm891_vm7, %v6224_v21, %v4441_v57  ;;  %v3059_v44 = vpack.c.bf16 %v3044_v38, %v3043_v11  ;;  %v3064_v22 = vpack.c.bf16 %v4668_v51, %v6358_v4 }
 0x54c   :  { %v4447_v16 = vunpack.i.h.bf16 %v4445_v43  ;;  %v4446_v29 = vunpack.i.l.bf16 %v4445_v43  ;;  %v4457_v21 = vunpack.i.h.bf16 %v4455_v62  ;;  %v4456_v12 = vunpack.i.l.bf16 %v4455_v62 }
 0x54e   :  { %v2965_v6 = vsel %vm924_vm9, %v2951_v10, %v4446_v29  ;;  %v2966_v59 = vsel %vm924_vm9, %v2952_v1, %v4447_v16  ;;  %v6570_v16 = vld [vmem:[%s6749_s8] ss:$0 sm:$0xff] }
 0x54f   :  { %v4450_v3 = vpop.permute.xlu1 %4449  ;;  %3241 = vmatmul.mubr.bf16.gmra.mxu1 %v3059_v44  ;;  %v2910_v41 = vpop.permute.xlu0 %2909  ;;  %v2981_v54 = vsel %vm958_vm11, %v2965_v6, %v4376_v55  ;;  %v2982_v14 = vsel %vm958_vm11, %v2966_v59, %v4377_v47 }
 0x550   :  { %v4452_v17 = vunpack.i.h.bf16 %v4450_v3  ;;  %v4451_v24 = vunpack.i.l.bf16 %v4450_v3  ;;  %3582 = vmatprep.mubr.msk.bf16.mxu1 %vm891_vm7, %v6753_v37 }
 0x552   :  { %v2997_v13 = vsel %vm992_vm13, %v2981_v54, %v4451_v24  ;;  %v2998_v49 = vsel %vm992_vm13, %v2982_v14, %v4452_v17 }
 0x553   :  { %v3013_v19 = vsel %vm1968_vm15, %v2997_v13, %v4456_v12  ;;  %v3014_v45 = vsel %vm1968_vm15, %v2998_v49, %v4457_v21  ;;  %v4460_v48 = vpop.permute.xlu1 %4459  ;;  %v4465_v8 = vpop.permute.xlu0 %4464 }
 0x554   :  { %v3029_v7 = vsel %vm1985_vm0, %v3013_v19, %v4372_v18  ;;  %v3030_v23 = vsel %vm1985_vm0, %v3014_v45, %v6447_v30  ;;  %v4462_v46 = vunpack.i.h.bf16 %v4460_v48  ;;  %v4461_v34 = vunpack.i.l.bf16 %v4460_v48 }
 0x555   :  { %v3045_v60 = vsel %vm2002_vm1, %v3029_v7, %v4437_v52  ;;  %v3046_v50 = vsel %vm2002_vm1, %v3030_v23, %v2910_v41  ;;  %v4467_v58 = vunpack.i.h.bf16 %v4465_v8  ;;  %v4466_v9 = vunpack.i.l.bf16 %v4465_v8 }
 0x556   :  { %v3061_v33 = vpack.c.bf16 %v3046_v50, %v3045_v60  ;;  %v2954_v26 = vsel %vm891_vm7, %v6245_v5, %v4462_v46  ;;  %v2953_v42 = vsel %vm891_vm7, %v6251_v2, %v4461_v34 }
 0x557   :  { %v2968_v30 = vsel %vm924_vm9, %v2954_v26, %v4467_v58  ;;  %v2967_v35 = vsel %vm924_vm9, %v2953_v42, %v4466_v9  ;;  %v4475_v40 = vpop.permute.xlu1 %4474  ;;  %v4470_v56 = vpop.permute.xlu0 %4469 }
 0x558   :  { %v4477_v25 = vunpack.i.h.bf16 %v4475_v40  ;;  %v4476_v20 = vunpack.i.l.bf16 %v4475_v40  ;;  %v2984_v0 = vsel %vm958_vm11, %v2968_v30, %v4382_v28  ;;  %3249 = vmatmul.mubr.bf16.gmra.mxu1 %v3061_v33  ;;  %v2983_v31 = vsel %vm958_vm11, %v2967_v35, %v4381_v63 }
 0x559   :  { %v4472_v5 = vunpack.i.h.bf16 %v4470_v56  ;;  %v4471_v32 = vunpack.i.l.bf16 %v4470_v56  ;;  %3583 = vmatprep.mubr.msk.bf16.mxu1 %vm891_vm7, %v3064_v22 }
 0x55b   :  { %v3000_v2 = vsel %vm992_vm13, %v2984_v0, %v4472_v5  ;;  %v2912_v53 = vpop.permute.xlu1 %2911  ;;  %v2999_v61 = vsel %vm992_vm13, %v2983_v31, %v4471_v32  ;;  %v2870_v51 = vpop.permute.xlu0 %2869 }
 0x55c   :  { %v3016_v57 = vsel %vm1968_vm15, %v3000_v2, %v4477_v25  ;;  %v3015_v4 = vsel %vm1968_vm15, %v2999_v61, %v4476_v20 }
 0x55d   :  { %v3031_v36 = vsel %vm1985_vm0, %v3015_v4, %v2870_v51  ;;  %v3032_v39 = vsel %vm1985_vm0, %v3016_v57, %v5790_v27 }
 0x55e   :  { %v3047_v11 = vsel %vm2002_vm1, %v3031_v36, %v2912_v53  ;;  %v3048_v38 = vsel %vm2002_vm1, %v3032_v39, %v5795_v15 }
 0x55f   :  { %v3063_v43 = vpack.c.bf16 %v3048_v38, %v3047_v11 }
 0x561   :  { %3257 = vmatmul.mubr.bf16.gmra.mxu1 %v3063_v43 }
 0x5d0   :  { %v3202_v29 = vpop.f32.mrf.mxu1 }
 0x5d1   :  { %v3203_v1 = vadd.f32 %v6570_v16, %v3202_v29 }
 0x5d2   :  { %v3204_v62 = vpop.f32.mrf.mxu1 }
 0x5d3   :  { %v3265_v6 = vsel %vm891_vm7, %v3203_v1, 0.0 }
 0x5d4   :  { %v3205_v10 = vpop.f32.mrf.mxu1 }
 0x5d5   :  { %v3206_v44 = vadd.f32 %v6570_v16, %v3205_v10 }
 0x5d6   :  { %v3207_v27 = vpop.f32.mrf.mxu1 }
 0x5d7   :  { %v3266_v59 = vsel %vm891_vm7, %v3206_v44, 0.0 }
 0x5d8   :  { %v3267_v15 = vadd.f32 %v3266_v59, %v3265_v6 }
 0x5d9   :  { %v3210_v47 = vpop.f32.mrf.mxu1 }
 0x5da   :  { %v3211_v55 = vadd.f32 %v6570_v16, %v3210_v47 }
 0x5db   :  { %v3212_v3 = vpop.f32.mrf.mxu1 }
 0x5dc   :  { %v3268_v17 = vsel %vm891_vm7, %v3211_v55, 0.0 }
 0x5dd   :  { %v3269_v24 = vadd.f32 %v3268_v17, %v3267_v15  ;;  %v3213_v41 = vpop.f32.mrf.mxu1 }
 0x5de   :  { %v3214_v37 = vadd.f32 %v6570_v16, %v3213_v41 }
 0x5df   :  { %v3215_v21 = vpop.f32.mrf.mxu1 }
 0x5e0   :  { %v3270_v12 = vsel %vm891_vm7, %v3214_v37, 0.0 }
 0x5e1   :  { %v3271_v54 = vadd.f32 %v3270_v12, %v3269_v24 }
 0x5e4   :  { %v3218_v14 = vpop.f32.mrf.mxu1 }
 0x5e5   :  { %v3219_v18 = vadd.f32 %v6570_v16, %v3218_v14 }
 0x5e6   :  { %v3220_v13 = vpop.f32.mrf.mxu1 }
 0x5e7   :  { %v3272_v49 = vsel %vm891_vm7, %v3219_v18, 0.0 }
 0x5e8   :  { %v3273_v28 = vadd.f32 %v3272_v49, %v3271_v54  ;;  %v3221_v52 = vpop.f32.mrf.mxu1 }
 0x5e9   :  { %v3222_v19 = vadd.f32 %v6570_v16, %v3221_v52 }
 0x5ea   :  { %v3223_v45 = vpop.f32.mrf.mxu1 }
 0x5eb   :  { %v3274_v48 = vsel %vm891_vm7, %v3222_v19, 0.0 }
 0x5ec   :  { %v3275_v7 = vadd.f32 %v3274_v48, %v3273_v28  ;;  %v16_v28 = vstv %s6750_s10 }
 0x5ed   :  { %17 = vst [vmem:[#allocation2] sm:$0x1] %v16_v28 }
 0x5ff   :  { %v3226_v23 = vpop.f32.mrf.mxu1 }
 0x600   :  { %v3227_v46 = vadd.f32 %v6570_v16, %v3226_v23 }
 0x601   :  { %v3228_v34 = vpop.f32.mrf.mxu1 }
 0x602   :  { %v3276_v8 = vsel %vm891_vm7, %v3227_v46, 0.0 }
 0x603   :  { %v3229_v60 = vpop.f32.mrf.mxu1  ;;  %v3277_v58 = vadd.f32 %v3276_v8, %v3275_v7 }
 0x604   :  { %v3230_v50 = vadd.f32 %v6570_v16, %v3229_v60 }
 0x605   :  { %v3231_v9 = vpop.f32.mrf.mxu1 }
 0x606   :  { %v3278_v63 = vsel %vm891_vm7, %v3230_v50, 0.0 }
 0x607   :  { %v3279_v33 = vadd.f32 %v3278_v63, %v3277_v58  ;;  %v3234_v26 = vpop.f32.mrf.mxu1 }
 0x608   :  { %v6592_v57 = vadd.f32 %v6570_v16, %v3234_v26 }
 0x609   :  { %v3280_v42 = vrot.slane %v3279_v33, 4  ;;  %v3236_v30 = vpop.f32.mrf.mxu1 }
 0x60b   :  { %v3281_v35 = vadd.f32 %v3280_v42, %v3279_v33  ;;  %v3237_v40 = vpop.f32.mrf.mxu1 }
 0x60c   :  { %v6589_v53 = vadd.f32 %v6570_v16, %v3237_v40 }
 0x60d   :  { %v3282_v22 = vrot.slane %v3281_v35, 2  ;;  %v3239_v25 = vpop.f32.mrf.mxu1 }
 0x60f   :  { %v3283_v20 = vadd.f32 %v3282_v22, %v3281_v35  ;;  %v3242_v56 = vpop.f32.mrf.mxu1 }
 0x610   :  { %v6607_v43 = vadd.f32 %v6570_v16, %v3242_v56 }
 0x611   :  { %v3284_v0 = vrot.slane %v3283_v20, 1  ;;  %v3244_v31 = vpop.f32.mrf.mxu1 }
 0x612   :  { %v3289_v24 = vsel %vm891_vm7, %v6607_v43, 0.0 }
 0x613   :  { %v3285_v5 = vadd.f32 %v3284_v0, %v3283_v20  ;;  %v3245_v32 = vpop.f32.mrf.mxu1 }
 0x614   :  { %v6618_v27 = vadd.f32 %v6570_v16, %v3245_v32 }
 0x615   :  { %v3307_v2 = vmul.f32 0.015625, %v3285_v5  ;;  %v3247_v61 = vpop.f32.mrf.mxu1 }
 0x617   :  { %v6594_v51 = vsub.f32 %v3203_v1, %v3307_v2  ;;  %v6596_v4 = vsub.f32 %v3206_v44, %v3307_v2  ;;  %v6598_v36 = vsub.f32 %v3211_v55, %v3307_v2  ;;  %v6600_v39 = vsub.f32 %v3214_v37, %v3307_v2 }
 0x618   :  { %v6602_v11 = vsub.f32 %v3219_v18, %v3307_v2  ;;  %v6604_v38 = vsub.f32 %v3222_v19, %v3307_v2  ;;  %v3250_v29 = vpop.f32.mrf.mxu1  ;;  %v3287_v44 = vsel %vm891_vm7, %v6589_v53, 0.0  ;;  %v3286_v55 = vsel %vm891_vm7, %v6592_v57, 0.0 }
 0x619   :  { %v3325_v62 = vmul.f32 %v6594_v51, %v6594_v51  ;;  %v3326_v1 = vmul.f32 %v6596_v4, %v6596_v4  ;;  %v3327_v10 = vmul.f32 %v6598_v36, %v6598_v36  ;;  %v3328_v59 = vmul.f32 %v6600_v39, %v6600_v39 }
 0x61a   :  { %v3252_v6 = vpop.f32.mrf.mxu1  ;;  %v3288_v17 = vadd.f32 %v3287_v44, %v3286_v55  ;;  %v6628_v37 = vsub.f32 %v3227_v46, %v3307_v2  ;;  %v3329_v21 = vmul.f32 %v6602_v11, %v6602_v11  ;;  %v3251_v54 = vadd.f32 %v6570_v16, %v3250_v29 }
 0x61b   :  { %v3341_v15 = vsel %vm891_vm7, %v3325_v62, 0.0  ;;  %v3342_v47 = vsel %vm891_vm7, %v3326_v1, 0.0  ;;  %v3344_v12 = vsel %vm891_vm7, %v3327_v10, 0.0  ;;  %v3291_v18 = vsel %vm891_vm7, %v6618_v27, 0.0 }
 0x61c   :  { %v3343_v3 = vadd.f32 %v3342_v47, %v3341_v15  ;;  %v3253_v41 = vpop.f32.mrf.mxu1  ;;  %v6640_v52 = vsub.f32 %v3230_v50, %v3307_v2  ;;  %v3330_v19 = vmul.f32 %v6604_v38, %v6604_v38  ;;  %v3346_v45 = vsel %vm891_vm7, %v3328_v59, 0.0 }
 0x61d   :  { %v3254_v13 = vadd.f32 %v6570_v16, %v3253_v41  ;;  %v3290_v48 = vadd.f32 %v3289_v24, %v3288_v17  ;;  %v3293_v23 = vsel %vm891_vm7, %v3251_v54, 0.0  ;;  %v3331_v46 = vmul.f32 %v6628_v37, %v6628_v37 }
 0x61e   :  { %v3345_v14 = vadd.f32 %v3344_v12, %v3343_v3  ;;  %v3255_v49 = vpop.f32.mrf.mxu1  ;;  %v3348_v34 = vsel %vm891_vm7, %v3329_v21, 0.0  ;;  %v3332_v63 = vmul.f32 %v6640_v52, %v6640_v52  ;;  %v3350_v33 = vsel %vm891_vm7, %v3330_v19, 0.0 }
 0x61f   :  { %v3292_v8 = vadd.f32 %v3291_v18, %v3290_v48  ;;  %v3295_v50 = vsel %vm891_vm7, %v3254_v13, 0.0  ;;  %v3352_v40 = vsel %vm891_vm7, %v3331_v46, 0.0 }
 0x620   :  { %v3347_v7 = vadd.f32 %v3346_v45, %v3345_v14  ;;  %v3354_v0 = vsel %vm891_vm7, %v3332_v63, 0.0 }
 0x621   :  { %v3258_v60 = vpop.f32.mrf.mxu1  ;;  %v3294_v26 = vadd.f32 %v3293_v23, %v3292_v8 }
 0x622   :  { %v3349_v58 = vadd.f32 %v3348_v34, %v3347_v7  ;;  %v3259_v9 = vadd.f32 %v6570_v16, %v3258_v60 }
 0x623   :  { %v3260_v42 = vpop.f32.mrf.mxu1  ;;  %v3296_v22 = vadd.f32 %v3295_v50, %v3294_v26 }
 0x624   :  { %v3351_v30 = vadd.f32 %v3350_v33, %v3349_v58  ;;  %v3297_v35 = vsel %vm891_vm7, %v3259_v9, 0.0 }
 0x625   :  { %v3261_v25 = vpop.f32.mrf.mxu1  ;;  %v3298_v31 = vadd.f32 %v3297_v35, %v3296_v22 }
 0x626   :  { %v3353_v20 = vadd.f32 %v3352_v40, %v3351_v30  ;;  %v3262_v56 = vadd.f32 %v6570_v16, %v3261_v25 }
 0x627   :  { %v3263_v5 = vpop.f32.mrf.mxu1 }
 0x628   :  { %v3355_v32 = vadd.f32 %v3354_v0, %v3353_v20  ;;  %v3299_v2 = vsel %vm891_vm7, %v3262_v56, 0.0 }
 0x629   :  { %v3300_v61 = vadd.f32 %v3299_v2, %v3298_v31 }
 0x62a   :  { %v3356_v29 = vrot.slane %v3355_v32, 4 }
 0x62b   :  { %v3301_v62 = vrot.slane %v3300_v61, 4 }
 0x62c   :  { %v3357_v1 = vadd.f32 %v3356_v29, %v3355_v32 }
 0x62d   :  { %v3302_v10 = vadd.f32 %v3301_v62, %v3300_v61 }
 0x62e   :  { %v3358_v44 = vrot.slane %v3357_v1, 2 }
 0x62f   :  { %v3303_v6 = vrot.slane %v3302_v10, 2 }
 0x630   :  { %v3359_v59 = vadd.f32 %v3358_v44, %v3357_v1 }
 0x631   :  { %v3304_v15 = vadd.f32 %v3303_v6, %v3302_v10 }
 0x632   :  { %v3360_v47 = vrot.slane %v3359_v59, 1 }
 0x633   :  { %v3305_v55 = vrot.slane %v3304_v15, 1 }
 0x634   :  { %v3361_v3 = vadd.f32 %v3360_v47, %v3359_v59 }
 0x635   :  { %v3306_v16 = vadd.f32 %v3305_v55, %v3304_v15 }
 0x636   :  { %v3383_v17 = vmul.f32 0.015625, %v3361_v3 }
 0x637   :  { %v3308_v24 = vmul.f32 0.015625, %v3306_v16 }
 0x638   :  { %v3385_v41 = vadd.f32 1e-05, %v3383_v17 }
 0x639   :  { %v6660_v21 = vsub.f32 %v6592_v57, %v3308_v24  ;;  %v6663_v12 = vsub.f32 %v6589_v53, %v3308_v24  ;;  %v6666_v14 = vsub.f32 %v6607_v43, %v3308_v24  ;;  %v6669_v18 = vsub.f32 %v6618_v27, %v3308_v24 }
 0x63a   :  { %4520 = vrsqrt.f32 %v3385_v41  ;;  %v6671_v49 = vsub.f32 %v3251_v54, %v3308_v24  ;;  %v6683_v45 = vsub.f32 %v3254_v13, %v3308_v24  ;;  %v6691_v60 = vsub.f32 %v3259_v9, %v3308_v24 }
 0x63b   :  { %v3333_v28 = vmul.f32 %v6660_v21, %v6660_v21  ;;  %v3334_v19 = vmul.f32 %v6663_v12, %v6663_v12  ;;  %v3335_v57 = vmul.f32 %v6666_v14, %v6666_v14  ;;  %v3336_v53 = vmul.f32 %v6669_v18, %v6669_v18 }
 0x63c   :  { %v3337_v48 = vmul.f32 %v6671_v49, %v6671_v49  ;;  %v3338_v34 = vmul.f32 %v6683_v45, %v6683_v45  ;;  %v6695_v33 = vsub.f32 %v3262_v56, %v3308_v24  ;;  %v3339_v26 = vmul.f32 %v6691_v60, %v6691_v60 }
 0x63d   :  { %v3362_v43 = vsel %vm891_vm7, %v3333_v28, 0.0  ;;  %v3363_v27 = vsel %vm891_vm7, %v3334_v19, 0.0  ;;  %v3365_v7 = vsel %vm891_vm7, %v3335_v57, 0.0  ;;  %v3367_v46 = vsel %vm891_vm7, %v3336_v53, 0.0 }
 0x63e   :  { %v3364_v54 = vadd.f32 %v3363_v27, %v3362_v43  ;;  %v3369_v58 = vsel %vm891_vm7, %v3337_v48, 0.0  ;;  %v3371_v13 = vsel %vm891_vm7, %v3338_v34, 0.0 }
 0x640   :  { %v3366_v23 = vadd.f32 %v3365_v7, %v3364_v54 }
 0x642   :  { %v3368_v8 = vadd.f32 %v3367_v46, %v3366_v23 }
 0x644   :  { %v3370_v50 = vadd.f32 %v3369_v58, %v3368_v8 }
 0x646   :  { %v3372_v42 = vadd.f32 %v3371_v13, %v3370_v50 }
 0x647   :  { %v4521_v63 = vpop.eup %4520 }
 0x648   :  { %v3389_v30 = vmul.f32 %v4521_v63, %v6594_v51  ;;  %v3390_v35 = vmul.f32 %v4521_v63, %v6596_v4  ;;  %v3391_v40 = vmul.f32 %v4521_v63, %v6598_v36  ;;  %v3392_v9 = vmul.f32 %v4521_v63, %v6600_v39 }
 0x649   :  { %v3393_v22 = vmul.f32 %v4521_v63, %v6602_v11  ;;  %v3394_v25 = vmul.f32 %v4521_v63, %v6604_v38  ;;  %v3395_v20 = vmul.f32 %v4521_v63, %v6628_v37  ;;  %v3396_v56 = vmul.f32 %v4521_v63, %v6640_v52 }
 0x64a   :  { %v3405_v0 = vmul.f32 0.2, %v3389_v30  ;;  %v3406_v31 = vmul.f32 0.2, %v3390_v35  ;;  %v3407_v5 = vmul.f32 0.2, %v3391_v40  ;;  %v3340_v51 = vmul.f32 %v6695_v33, %v6695_v33 }
 0x64b   :  { %v3408_v32 = vmul.f32 0.2, %v3392_v9  ;;  %v3373_v4 = vsel %vm891_vm7, %v3339_v26, 0.0  ;;  %v3409_v36 = vmul.f32 0.2, %v3393_v22 }
 0x64c   :  { %v3421_v2 = vmax.f32 %v3389_v30, %v3405_v0  ;;  %v3422_v39 = vmax.f32 %v3390_v35, %v3406_v31  ;;  %v3374_v61 = vadd.f32 %v3373_v4, %v3372_v42  ;;  %v3423_v11 = vmax.f32 %v3391_v40, %v3407_v5 }
 0x64d   :  { %v3410_v29 = vmul.f32 0.2, %v3394_v25  ;;  %v3424_v38 = vmax.f32 %v3392_v9, %v3408_v32  ;;  %v3375_v1 = vsel %vm891_vm7, %v3340_v51, 0.0  ;;  %v3411_v10 = vmul.f32 0.2, %v3395_v20 }
 0x64e   :  { %v3437_v37 = vsel %vm891_vm7, %v3421_v2, 0.0  ;;  %v3438_v52 = vsel %vm891_vm7, %v3422_v39, 0.0  ;;  %v3425_v44 = vmax.f32 %v3393_v22, %v3409_v36  ;;  %v3440_v6 = vsel %vm891_vm7, %v3423_v11, 0.0 }
 0x64f   :  { %v3439_v62 = vadd.f32 %v3438_v52, %v3437_v37  ;;  %v3376_v59 = vadd.f32 %v3375_v1, %v3374_v61  ;;  %v3412_v47 = vmul.f32 0.2, %v3396_v56  ;;  %v3426_v55 = vmax.f32 %v3394_v25, %v3410_v29 }
 0x650   :  { %v3442_v3 = vsel %vm891_vm7, %v3424_v38, 0.0  ;;  %v3427_v24 = vmax.f32 %v3395_v20, %v3411_v10  ;;  %v3444_v41 = vsel %vm891_vm7, %v3425_v44, 0.0 }
 0x651   :  { %v3441_v15 = vadd.f32 %v3440_v6, %v3439_v62  ;;  %v3377_v16 = vrot.slane %v3376_v59, 4  ;;  %v3428_v57 = vmax.f32 %v3396_v56, %v3412_v47  ;;  %v3446_v53 = vsel %vm891_vm7, %v3426_v55, 0.0 }
 0x652   :  { %v3448_v54 = vsel %vm891_vm7, %v3427_v24, 0.0 }
 0x653   :  { %v3443_v17 = vadd.f32 %v3442_v3, %v3441_v15  ;;  %v3378_v28 = vadd.f32 %v3377_v16, %v3376_v59  ;;  %v3450_v23 = vsel %vm891_vm7, %v3428_v57, 0.0 }
 0x655   :  { %v3445_v19 = vadd.f32 %v3444_v41, %v3443_v17  ;;  %v3379_v43 = vrot.slane %v3378_v28, 2 }
 0x657   :  { %v3447_v27 = vadd.f32 %v3446_v53, %v3445_v19  ;;  %v3380_v48 = vadd.f32 %v3379_v43, %v3378_v28 }
 0x659   :  { %v3449_v7 = vadd.f32 %v3448_v54, %v3447_v27  ;;  %v3381_v46 = vrot.slane %v3380_v48, 1  ;;  %v3584_v27 = vld [vmem:[%s6751_s9] ss:$0 sm:$0xff] }
 0x65b   :  { %v3451_v34 = vadd.f32 %v3450_v23, %v3449_v7  ;;  %v3382_v8 = vadd.f32 %v3381_v46, %v3380_v48 }
 0x65d   :  { %v3384_v58 = vmul.f32 0.015625, %v3382_v8  ;;  %v3452_v2 = vrot.slane %v3451_v34, 4 }
 0x65f   :  { %v3386_v50 = vadd.f32 1e-05, %v3384_v58  ;;  %v3453_v37 = vadd.f32 %v3452_v2, %v3451_v34  ;;  %v3585_v34 = vld [vmem:[#allocation2] ss:$0 sm:$0xff] }
 0x661   :  { %4522 = vrsqrt.f32 %v3386_v50  ;;  %v3454_v6 = vrot.slane %v3453_v37, 2 }
 0x663   :  { %v3455_v3 = vadd.f32 %v3454_v6, %v3453_v37 }
 0x665   :  { %v3456_v24 = vrot.slane %v3455_v3, 1 }
 0x667   :  { %v3457_v28 = vadd.f32 %v3456_v24, %v3455_v3 }
 0x669   :  { %v3479_v53 = vmul.f32 0.015625, %v3457_v28 }
 0x66b   :  { %v3488_v48 = vmul.f32 %v3584_v27, %v3479_v53 }
 0x66e   :  { %v4523_v13 = vpop.eup %4522 }
 0x66f   :  { %v3397_v63 = vmul.f32 %v4523_v13, %v6660_v21  ;;  %v3398_v26 = vmul.f32 %v4523_v13, %v6663_v12  ;;  %v3399_v42 = vmul.f32 %v4523_v13, %v6666_v14  ;;  %v3400_v30 = vmul.f32 %v4523_v13, %v6669_v18 }
 0x670   :  { %v3401_v35 = vmul.f32 %v4523_v13, %v6671_v49  ;;  %v3402_v40 = vmul.f32 %v4523_v13, %v6683_v45  ;;  %v3403_v56 = vmul.f32 %v4523_v13, %v6691_v60  ;;  %v3404_v21 = vmul.f32 %v4523_v13, %v6695_v33 }
 0x671   :  { %v3413_v9 = vmul.f32 0.2, %v3397_v63  ;;  %v3414_v22 = vmul.f32 0.2, %v3398_v26  ;;  %v3415_v25 = vmul.f32 0.2, %v3399_v42 }
 0x672   :  { %v3416_v20 = vmul.f32 0.2, %v3400_v30  ;;  %v3417_v0 = vmul.f32 0.2, %v3401_v35  ;;  %v3418_v32 = vmul.f32 0.2, %v3402_v40 }
 0x673   :  { %v3429_v31 = vmax.f32 %v3397_v63, %v3413_v9  ;;  %v3430_v5 = vmax.f32 %v3398_v26, %v3414_v22  ;;  %v3431_v12 = vmax.f32 %v3399_v42, %v3415_v25  ;;  %v3419_v45 = vmul.f32 0.2, %v3403_v56 }
 0x674   :  { %v3432_v14 = vmax.f32 %v3400_v30, %v3416_v20  ;;  %v3433_v4 = vmax.f32 %v3401_v35, %v3417_v0  ;;  %v3420_v60 = vmul.f32 0.2, %v3404_v21  ;;  %v3434_v61 = vmax.f32 %v3402_v40, %v3418_v32 }
 0x675   :  { %v3458_v18 = vsel %vm891_vm7, %v3429_v31, 0.0  ;;  %v3459_v49 = vsel %vm891_vm7, %v3430_v5, 0.0  ;;  %v3461_v36 = vsel %vm891_vm7, %v3431_v12, 0.0  ;;  %v3435_v33 = vmax.f32 %v3403_v56, %v3419_v45 }
 0x676   :  { %v3460_v51 = vadd.f32 %v3459_v49, %v3458_v18  ;;  %v3463_v11 = vsel %vm891_vm7, %v3432_v14, 0.0  ;;  %v3465_v38 = vsel %vm891_vm7, %v3433_v4, 0.0  ;;  %v3436_v62 = vmax.f32 %v3404_v21, %v3420_v60 }
 0x677   :  { %v3467_v1 = vsel %vm891_vm7, %v3434_v61, 0.0  ;;  %v3469_v44 = vsel %vm891_vm7, %v3435_v33, 0.0 }
 0x678   :  { %v3462_v39 = vadd.f32 %v3461_v36, %v3460_v51  ;;  %v3471_v15 = vsel %vm891_vm7, %v3436_v62, 0.0 }
 0x67a   :  { %v3464_v29 = vadd.f32 %v3463_v11, %v3462_v39 }
 0x67c   :  { %v3466_v52 = vadd.f32 %v3465_v38, %v3464_v29 }
 0x67e   :  { %v3468_v10 = vadd.f32 %v3467_v1, %v3466_v52 }
 0x680   :  { %v3470_v59 = vadd.f32 %v3469_v44, %v3468_v10 }
 0x682   :  { %v3472_v47 = vadd.f32 %v3471_v15, %v3470_v59 }
 0x684   :  { %v3473_v55 = vrot.slane %v3472_v47, 4 }
 0x686   :  { %v3474_v16 = vadd.f32 %v3473_v55, %v3472_v47 }
 0x688   :  { %v3475_v17 = vrot.slane %v3474_v16, 2 }
 0x68a   :  { %v3476_v41 = vadd.f32 %v3475_v17, %v3474_v16 }
 0x68c   :  { %v3477_v19 = vrot.slane %v3476_v41, 1 }
 0x68e   :  { %v3478_v57 = vadd.f32 %v3477_v19, %v3476_v41 }
 0x690   :  { %v3480_v43 = vmul.f32 0.015625, %v3478_v57 }
 0x692   :  { %v3489_v54 = vmul.f32 %v3584_v27, %v3480_v43 }
 0x694   :  { %v3492_v7 = vrot.slane %v3489_v54, 7 }
 0x696   :  { %v3494_v23 = vsel %vm3493_vm2, %v3492_v7, %v3488_v48 }
 0x697   :  { %v3497_v46 = vsel %vm3496_vm3, %v3494_v23, 0.0 }
 0x698   :  { %3498 = vadd.xlane.f32.xlu0 %v3497_v46 }
 0x721   :  { %v3499_v8 = vpop.xlane.xlu0 %3498 }
 0x722   :  { %v3507_v58 = vadd.f32 %v3585_v34, %v3499_v8 }
 0x724   :  { %3509 = vst.msk [vmem:[%s6752_s11] sm:$0x3] %vm3508_vm4, %v3507_v58 }

</bundles_post_ra>
